<compile_context>
chip_gen: v7x
topology: tpu7x:2x2x1
jax: 0.10.0
libtpu: 0.0.40
codegen_flags: <defaults>
</compile_context>

<pallas_src>
import functools

import jax
import jax.numpy as jnp
from jax.experimental import pallas as pl
from jax.experimental.pallas import tpu as pltpu


def _round_up(a, m):
    return -(-a // m) * m


def _ccpm_fused_kernel(*refs, cfgs, num_fields, n_sub, n_lane, lane_chunk):
    """Fused CCPM conv stack for one batch slab.

    refs = (x_ref, w0_ref, b0_ref, w1_ref, b1_ref, ..., o_ref)
      x_ref : (1, c_in0, H, S_blk, L)          VMEM
      wi    : (c_out*c_in*kh,)                 SMEM f32 (flattened Conv2d weight)
      bi    : (c_out,)                         SMEM f32
      o_ref : (1, c_out_last, k_last, S_blk, L) VMEM
    cfgs  : static tuple of (c_in, c_out, kh, k) per layer.
    The body loops over (8, lane_chunk) sub-slabs of the block; per sub-slab the
    whole stack (ZeroPad2d+Conv2d -> KMaxPooling -> bias -> Tanh, per layer)
    runs on values held in vregs; the field axis is a static Python list.
    """
    x_ref = refs[0]
    o_ref = refs[-1]
    param_refs = refs[1:-1]

    # Hoist the tiny conv parameters out of the inner loop as SMEM scalars.
    weights, biases = [], []
    for li, (c_in, c_out, kh, k) in enumerate(cfgs):
        w_ref, b_ref = param_refs[2 * li], param_refs[2 * li + 1]
        weights.append([[[w_ref[(co * c_in + ci) * kh + t] for t in range(kh)]
                         for ci in range(c_in)] for co in range(c_out)])
        biases.append([b_ref[co] for co in range(c_out)])

    c_in0 = cfgs[0][0]
    c_out_last, k_last = cfgs[-1][1], cfgs[-1][3]

    def process_slab(sub, lane):
        # rows[ci][h] -> (8, lane_chunk) f32 slab of batch x embedding.
        rows = [[x_ref[0, ci, h, pl.ds(sub, 8), pl.ds(lane, lane_chunk)]
                 .astype(jnp.float32) for h in range(num_fields)]
                for ci in range(c_in0)]
        h_cur = num_fields

        for li, (c_in, c_out, kh, k) in enumerate(cfgs):
            w, b = weights[li], biases[li]
            h_out = h_cur + kh - 1          # ZeroPad2d((0,0,kh-1,kh-1)) + valid conv
            new_rows = []
            for co in range(c_out):
                # ---- Conv2d(c_in, c_out, kernel=(kh, 1)); zero-padding folded
                #      into the static valid range; bias deferred to after k-max.
                y = []
                for h in range(h_out):
                    acc = None
                    for ci in range(c_in):
                        for t in range(kh):
                            hi = h + t - (kh - 1)
                            if 0 <= hi < h_cur:
                                term = rows[ci][hi] * w[co][ci][t]
                                acc = term if acc is None else acc + term
                    y.append(acc)

                # ---- K-max pooling: keep k largest along the field axis in
                #      original order (ties -> smaller index).
                #      rank[i] = #rows beating row i. Symmetric counting: for
                #      i<j, bij=(y[i]>=y[j]); rank[j]+=bij, rank[i]+=1-bij; the
                #      constant (h_out-1-i) is folded into the threshold below.
                diff = [None] * h_out
                for i in range(h_out):
                    for j in range(i + 1, h_out):
                        bij = (y[i] >= y[j]).astype(jnp.int32)
                        diff[j] = bij if diff[j] is None else diff[j] + bij
                        diff[i] = -bij if diff[i] is None else diff[i] - bij

                # ---- h-ordered selection: accumulate straight into the k
                #      output rows with a pre-masked running position; only
                #      feasible (h, j) pairs are emitted.
                out_rows = [None] * k
                run = None
                for h in range(h_out):
                    thr = k - (h_out - 1 - h)
                    if diff[h] is None:                     # only when h_out == 1
                        sel = jnp.full(y[h].shape, thr > 0, jnp.bool_)
                    else:
                        sel = diff[h] < thr                 # rank[h] < k
                    pos = jnp.where(sel, run if run is not None else 0, k)
                    for j in range(max(0, k - (h_out - h)), min(k, h + 1)):
                        pick = pos == j
                        out_rows[j] = (jnp.where(pick, y[h], 0.0)
                                       if out_rows[j] is None
                                       else jnp.where(pick, y[h], out_rows[j]))
                    if h + 1 < h_out:
                        s01 = sel.astype(jnp.int32)
                        run = s01 if run is None else run + s01

                # ---- bias (per-channel constant, order-invariant) + Tanh (EUP)
                new_rows.append([jnp.tanh(out_rows[j] + b[co]) for j in range(k)])
            rows, h_cur = new_rows, k

        for co in range(c_out_last):
            for j in range(k_last):
                o_ref[0, co, j, pl.ds(sub, 8), pl.ds(lane, lane_chunk)] = (
                    rows[co][j].astype(o_ref.dtype))

    n_iter = n_sub * n_lane
    if n_iter == 1:
        process_slab(0, 0)                  # static path for tiny blocks
    else:
        def body(it, carry):
            if n_lane == 1:
                sub = pl.multiple_of(it * 8, 8)
                lane = 0
            else:
                sub = pl.multiple_of((it // n_lane) * 8, 8)
                lane = pl.multiple_of((it % n_lane) * lane_chunk, lane_chunk)
            process_slab(sub, lane)
            return carry
        jax.lax.fori_loop(0, n_iter, body, 0)


def ccpm_conv_forward(x, params, kernel_heights, ks, *, target_sub_block=64):
    """x: (B, 1, num_fields, E) -> (B, c_out_last, k_last, E)."""
    B, c_in0, H, E = x.shape

    # Static per-layer configs + sanity checks (torch.topk would raise if k > h_out).
    cfgs = []
    c_prev, h = c_in0, H
    for (w, _), kh, k in zip(params, kernel_heights, ks):
        c_out = w.shape[0]
        h_out = h + kh - 1
        if k > h_out:
            raise ValueError(f"k={k} exceeds pooled axis length {h_out}")
        cfgs.append((c_prev, c_out, kh, k))
        c_prev, h = c_out, k
    cfgs = tuple(cfgs)
    c_out_last, k_last = cfgs[-1][1], cfgs[-1][3]

    # ---- batch -> (sublane, lane) packing ------------------------------------
    lane_batch = 1 if E >= 128 else max(1, 128 // E)
    L = lane_batch * E
    S_total = _round_up(-(-B // lane_batch), 8)          # sublanes needed
    S_blk = _round_up(min(target_sub_block, S_total), 8)
    nb = -(-S_total // S_blk)
    if nb == 1 and S_total >= 16:
        # v7x has two TensorCores: give the "parallel" grid at least 2 steps.
        S_blk = max(8, _round_up(-(-S_total // 2), 8))
        nb = -(-S_total // S_blk)
    S_pad = nb * S_blk
    B_pad = S_pad * lane_batch
    if B_pad != B:
        x = jnp.pad(x, ((0, B_pad - B), (0, 0), (0, 0), (0, 0)))

    # (B,c,H,E) -> (nb, c, H, S_blk, L): layout plumbing so every in-kernel op
    # runs on dense vregs (batch on sublanes, batch*E on lanes, lane-dense stores).
    xr = x.reshape(nb, S_blk, lane_batch, c_in0, H, E)
    xr = jnp.transpose(xr, (0, 3, 4, 1, 2, 5)).reshape(nb, c_in0, H, S_blk, L)

    # Inner-loop decomposition of the block into (8, lane_chunk) sub-slabs.
    n_sub = S_blk // 8
    if L > 128 and L % 128 == 0:
        n_lane, lane_chunk = L // 128, 128
    else:
        n_lane, lane_chunk = 1, L

    kernel = functools.partial(_ccpm_fused_kernel, cfgs=cfgs, num_fields=H,
                               n_sub=n_sub, n_lane=n_lane, lane_chunk=lane_chunk)

    in_specs = [pl.BlockSpec((1, c_in0, H, S_blk, L), lambda i: (i, 0, 0, 0, 0))]
    flat_params = []
    for (w, b) in params:
        in_specs.append(pl.BlockSpec(memory_space=pltpu.MemorySpace.SMEM))
        in_specs.append(pl.BlockSpec(memory_space=pltpu.MemorySpace.SMEM))
        flat_params.append(w.reshape(-1).astype(jnp.float32))
        flat_params.append(b.reshape(-1).astype(jnp.float32))

    # Advisory cost estimate (VALU-dominated), per (batch, e) scalar position.
    per_pos_flops, per_pos_trans = 0, 0
    hh = H
    for (c_in, c_out, kh, k) in cfgs:
        h_out = hh + kh - 1
        per_pos_flops += c_out * (2 * c_in * kh * h_out        # conv FMAs
                                  + 2 * h_out * (h_out - 1)    # pairwise ranking
                                  + 6 * h_out + 2 * k)         # selection + bias
        per_pos_trans += c_out * k                             # tanh
        hh = k
    n_pos = B_pad * E
    cost = pl.CostEstimate(
        flops=int(n_pos * per_pos_flops),
        transcendentals=int(n_pos * per_pos_trans),
        bytes_accessed=int(4 * n_pos * (c_in0 * H + c_out_last * k_last)),
    )

    out = pl.pallas_call(
        kernel,
        out_shape=jax.ShapeDtypeStruct((nb, c_out_last, k_last, S_blk, L), x.dtype),
        grid_spec=pltpu.PrefetchScalarGridSpec(
            num_scalar_prefetch=0,
            grid=(nb,),
            in_specs=in_specs,
            out_specs=pl.BlockSpec((1, c_out_last, k_last, S_blk, L),
                                   lambda i: (i, 0, 0, 0, 0)),
        ),
        compiler_params=pltpu.CompilerParams(dimension_semantics=("parallel",)),
        cost_estimate=cost,
    )(xr, *flat_params)

    out = out.reshape(nb, c_out_last, k_last, S_blk, lane_batch, E)
    out = jnp.transpose(out, (0, 3, 4, 1, 2, 5)).reshape(B_pad, c_out_last, k_last, E)
    return out[:B]


class CCPMConvLayerPallas:
    """Pallas implementation of CCPM_ConvLayer (activation='Tanh')."""

    def __init__(self, num_fields, channels=(3,), kernel_heights=(3,), key=None):
        channels = list(channels)
        if not isinstance(kernel_heights, (list, tuple)):
            kernel_heights = [kernel_heights] * len(channels)
        kernel_heights = list(kernel_heights)
        if len(kernel_heights) != len(channels):
            raise ValueError("channels and kernel_heights must have the same length")

        self.channels = [1] + channels
        self.kernel_heights = kernel_heights
        layers = len(kernel_heights)
        self.ks = []
        for i in range(1, len(self.channels)):
            if i < layers:
                kk = max(3, int((1 - pow(float(i) / layers, layers - i)) * num_fields))
            else:
                kk = 3
            self.ks.append(kk)

        # Deterministic PyTorch-style (uniform +/- 1/sqrt(fan_in)) parameter init.
        if key is None:
            key = jax.random.PRNGKey(42)
        self.params = []
        for i in range(1, len(self.channels)):
            cin, cout, kh = self.channels[i - 1], self.channels[i], kernel_heights[i - 1]
            key, k1, k2 = jax.random.split(key, 3)
            bound = 1.0 / float(cin * kh) ** 0.5
            w = jax.random.uniform(k1, (cout, cin, kh), jnp.float32, -bound, bound)
            b = jax.random.uniform(k2, (cout,), jnp.float32, -bound, bound)
            self.params.append((w, b))

    def __call__(self, x):
        return ccpm_conv_forward(x, self.params, self.kernel_heights, self.ks)


def _reference_forward(x, params, kernel_heights, ks):
    """Pure-JAX reference matching the PyTorch module semantics."""
    for (w, b), kh, k in zip(params, kernel_heights, ks):
        xp = jnp.pad(x, ((0, 0), (0, 0), (kh - 1, kh - 1), (0, 0)))
        bsz, cin, hp, e = xp.shape
        ho = hp - kh + 1
        y = jnp.zeros((bsz, w.shape[0], ho, e), jnp.float32)
        for ci in range(cin):
            for t in range(kh):
                y = y + w[None, :, ci, t, None, None] * xp[:, None, ci, t:t + ho, :]
        y = y + b[None, :, None, None]
        # KMaxPooling(k, dim=2): topk then restore original order (stable on ties).
        idx = jnp.argsort(-y, axis=2, stable=True)[:, :, :k, :]
        idx = jnp.sort(idx, axis=2)
        y = jnp.take_along_axis(y, idx, axis=2)
        x = jnp.tanh(y)
    return x


if __name__ == "__main__":
    # ---- Test 1: module defaults (single layer), tiny batch --------------------
    batch, num_fields, embedding_dim = 2, 8, 32
    key = jax.random.PRNGKey(0)
    x = jax.random.normal(key, (batch, 1, num_fields, embedding_dim), jnp.float32)

    model = CCPMConvLayerPallas(num_fields=num_fields, channels=[3], kernel_heights=[3])
    out = jax.block_until_ready(jax.jit(lambda inp: model(inp))(x))

    ref = _reference_forward(x, model.params, model.kernel_heights, model.ks)
    assert out.shape == (batch, 3, 3, embedding_dim), out.shape
    assert jnp.allclose(out, ref, atol=1e-5, rtol=1e-5), "mismatch vs reference (test 1)"

    # ---- Test 2: two stacked layers; batch large enough to exercise the
    #      multi-slab inner fori_loop and a 2-step parallel grid ------------------
    batch2, num_fields2, e2 = 96, 10, 32
    x2 = jax.random.normal(jax.random.PRNGKey(1), (batch2, 1, num_fields2, e2), jnp.float32)
    model2 = CCPMConvLayerPallas(num_fields=num_fields2, channels=[4, 3],
                                 kernel_heights=[3, 3])
    out2 = jax.block_until_ready(jax.jit(lambda inp: model2(inp))(x2))
    ref2 = _reference_forward(x2, model2.params, model2.kernel_heights, model2.ks)
    assert out2.shape == ref2.shape == (batch2, 3, 3, e2), out2.shape
    assert jnp.allclose(out2, ref2, atol=1e-4, rtol=1e-4), "mismatch vs reference (test 2)"

    print("KERNEL_OK")
</pallas_src>

<mosaic_0001>
module attributes {stable_mosaic.version = 11 : i64} {
  func.func @_ccpm_fused_kernel(%arg0: i32, %arg1: memref<1x1x8x8x128xf32, #tpu.memory_space<vmem>>, %arg2: memref<9xf32, #tpu.memory_space<smem>>, %arg3: memref<3xf32, #tpu.memory_space<smem>>, %arg4: memref<1x3x3x8x128xf32, #tpu.memory_space<vmem>>) attributes {dimension_semantics = [#tpu.dimension_semantics<parallel>], iteration_bounds = array<i64: 1>, scalar_prefetch = 0 : i64, scratch_operands = 0 : i64, tpu.core_type = #tpu.core_type<tc>, window_params = [{transform_indices = @transform_0, window_bounds = array<i64: 1, 1, 8, 8, 128>}, {transform_indices = @transform_1, window_bounds = array<i64: 9>}, {transform_indices = @transform_2, window_bounds = array<i64: 3>}, {transform_indices = @transform_3, window_bounds = array<i64: 1, 3, 3, 8, 128>}]} {
    %c0 = arith.constant 0 : index
    %0 = memref.load %arg2[%c0] : memref<9xf32, #tpu.memory_space<smem>>
    %c1 = arith.constant 1 : index
    %1 = memref.load %arg2[%c1] : memref<9xf32, #tpu.memory_space<smem>>
    %c2 = arith.constant 2 : index
    %2 = memref.load %arg2[%c2] : memref<9xf32, #tpu.memory_space<smem>>
    %c3 = arith.constant 3 : index
    %3 = memref.load %arg2[%c3] : memref<9xf32, #tpu.memory_space<smem>>
    %c4 = arith.constant 4 : index
    %4 = memref.load %arg2[%c4] : memref<9xf32, #tpu.memory_space<smem>>
    %c5 = arith.constant 5 : index
    %5 = memref.load %arg2[%c5] : memref<9xf32, #tpu.memory_space<smem>>
    %c6 = arith.constant 6 : index
    %6 = memref.load %arg2[%c6] : memref<9xf32, #tpu.memory_space<smem>>
    %c7 = arith.constant 7 : index
    %7 = memref.load %arg2[%c7] : memref<9xf32, #tpu.memory_space<smem>>
    %c8 = arith.constant 8 : index
    %8 = memref.load %arg2[%c8] : memref<9xf32, #tpu.memory_space<smem>>
    %c0_0 = arith.constant 0 : index
    %9 = memref.load %arg3[%c0_0] : memref<3xf32, #tpu.memory_space<smem>>
    %c1_1 = arith.constant 1 : index
    %10 = memref.load %arg3[%c1_1] : memref<3xf32, #tpu.memory_space<smem>>
    %c2_2 = arith.constant 2 : index
    %11 = memref.load %arg3[%c2_2] : memref<3xf32, #tpu.memory_space<smem>>
    %c0_3 = arith.constant 0 : index
    %c0_4 = arith.constant 0 : index
    %c0_5 = arith.constant 0 : index
    %c0_6 = arith.constant 0 : index
    %c0_7 = arith.constant 0 : index
    %12 = vector.load %arg1[%c0_3, %c0_4, %c0_5, %c0_6, %c0_7] : memref<1x1x8x8x128xf32, #tpu.memory_space<vmem>>, vector<1x1x1x8x128xf32>
    %13 = vector.shape_cast %12 : vector<1x1x1x8x128xf32> to vector<8x128xf32>
    %c0_8 = arith.constant 0 : index
    %c0_9 = arith.constant 0 : index
    %c1_10 = arith.constant 1 : index
    %c0_11 = arith.constant 0 : index
    %c0_12 = arith.constant 0 : index
    %14 = vector.load %arg1[%c0_8, %c0_9, %c1_10, %c0_11, %c0_12] : memref<1x1x8x8x128xf32, #tpu.memory_space<vmem>>, vector<1x1x1x8x128xf32>
    %15 = vector.shape_cast %14 : vector<1x1x1x8x128xf32> to vector<8x128xf32>
    %c0_13 = arith.constant 0 : index
    %c0_14 = arith.constant 0 : index
    %c2_15 = arith.constant 2 : index
    %c0_16 = arith.constant 0 : index
    %c0_17 = arith.constant 0 : index
    %16 = vector.load %arg1[%c0_13, %c0_14, %c2_15, %c0_16, %c0_17] : memref<1x1x8x8x128xf32, #tpu.memory_space<vmem>>, vector<1x1x1x8x128xf32>
    %17 = vector.shape_cast %16 : vector<1x1x1x8x128xf32> to vector<8x128xf32>
    %c0_18 = arith.constant 0 : index
    %c0_19 = arith.constant 0 : index
    %c3_20 = arith.constant 3 : index
    %c0_21 = arith.constant 0 : index
    %c0_22 = arith.constant 0 : index
    %18 = vector.load %arg1[%c0_18, %c0_19, %c3_20, %c0_21, %c0_22] : memref<1x1x8x8x128xf32, #tpu.memory_space<vmem>>, vector<1x1x1x8x128xf32>
    %19 = vector.shape_cast %18 : vector<1x1x1x8x128xf32> to vector<8x128xf32>
    %c0_23 = arith.constant 0 : index
    %c0_24 = arith.constant 0 : index
    %c4_25 = arith.constant 4 : index
    %c0_26 = arith.constant 0 : index
    %c0_27 = arith.constant 0 : index
    %20 = vector.load %arg1[%c0_23, %c0_24, %c4_25, %c0_26, %c0_27] : memref<1x1x8x8x128xf32, #tpu.memory_space<vmem>>, vector<1x1x1x8x128xf32>
    %21 = vector.shape_cast %20 : vector<1x1x1x8x128xf32> to vector<8x128xf32>
    %c0_28 = arith.constant 0 : index
    %c0_29 = arith.constant 0 : index
    %c5_30 = arith.constant 5 : index
    %c0_31 = arith.constant 0 : index
    %c0_32 = arith.constant 0 : index
    %22 = vector.load %arg1[%c0_28, %c0_29, %c5_30, %c0_31, %c0_32] : memref<1x1x8x8x128xf32, #tpu.memory_space<vmem>>, vector<1x1x1x8x128xf32>
    %23 = vector.shape_cast %22 : vector<1x1x1x8x128xf32> to vector<8x128xf32>
    %c0_33 = arith.constant 0 : index
    %c0_34 = arith.constant 0 : index
    %c6_35 = arith.constant 6 : index
    %c0_36 = arith.constant 0 : index
    %c0_37 = arith.constant 0 : index
    %24 = vector.load %arg1[%c0_33, %c0_34, %c6_35, %c0_36, %c0_37] : memref<1x1x8x8x128xf32, #tpu.memory_space<vmem>>, vector<1x1x1x8x128xf32>
    %25 = vector.shape_cast %24 : vector<1x1x1x8x128xf32> to vector<8x128xf32>
    %c0_38 = arith.constant 0 : index
    %c0_39 = arith.constant 0 : index
    %c7_40 = arith.constant 7 : index
    %c0_41 = arith.constant 0 : index
    %c0_42 = arith.constant 0 : index
    %26 = vector.load %arg1[%c0_38, %c0_39, %c7_40, %c0_41, %c0_42] : memref<1x1x8x8x128xf32, #tpu.memory_space<vmem>>, vector<1x1x1x8x128xf32>
    %27 = vector.shape_cast %26 : vector<1x1x1x8x128xf32> to vector<8x128xf32>
    %28 = vector.broadcast %2 : f32 to vector<8x128xf32>
    %29 = arith.mulf %13, %28 : vector<8x128xf32>
    %30 = vector.broadcast %1 : f32 to vector<8x128xf32>
    %31 = arith.mulf %13, %30 : vector<8x128xf32>
    %32 = vector.broadcast %2 : f32 to vector<8x128xf32>
    %33 = arith.mulf %15, %32 : vector<8x128xf32>
    %34 = arith.addf %31, %33 : vector<8x128xf32>
    %35 = vector.broadcast %0 : f32 to vector<8x128xf32>
    %36 = arith.mulf %13, %35 : vector<8x128xf32>
    %37 = vector.broadcast %1 : f32 to vector<8x128xf32>
    %38 = arith.mulf %15, %37 : vector<8x128xf32>
    %39 = arith.addf %36, %38 : vector<8x128xf32>
    %40 = vector.broadcast %2 : f32 to vector<8x128xf32>
    %41 = arith.mulf %17, %40 : vector<8x128xf32>
    %42 = arith.addf %39, %41 : vector<8x128xf32>
    %43 = vector.broadcast %0 : f32 to vector<8x128xf32>
    %44 = arith.mulf %15, %43 : vector<8x128xf32>
    %45 = vector.broadcast %1 : f32 to vector<8x128xf32>
    %46 = arith.mulf %17, %45 : vector<8x128xf32>
    %47 = arith.addf %44, %46 : vector<8x128xf32>
    %48 = vector.broadcast %2 : f32 to vector<8x128xf32>
    %49 = arith.mulf %19, %48 : vector<8x128xf32>
    %50 = arith.addf %47, %49 : vector<8x128xf32>
    %51 = vector.broadcast %0 : f32 to vector<8x128xf32>
    %52 = arith.mulf %17, %51 : vector<8x128xf32>
    %53 = vector.broadcast %1 : f32 to vector<8x128xf32>
    %54 = arith.mulf %19, %53 : vector<8x128xf32>
    %55 = arith.addf %52, %54 : vector<8x128xf32>
    %56 = vector.broadcast %2 : f32 to vector<8x128xf32>
    %57 = arith.mulf %21, %56 : vector<8x128xf32>
    %58 = arith.addf %55, %57 : vector<8x128xf32>
    %59 = vector.broadcast %0 : f32 to vector<8x128xf32>
    %60 = arith.mulf %19, %59 : vector<8x128xf32>
    %61 = vector.broadcast %1 : f32 to vector<8x128xf32>
    %62 = arith.mulf %21, %61 : vector<8x128xf32>
    %63 = arith.addf %60, %62 : vector<8x128xf32>
    %64 = vector.broadcast %2 : f32 to vector<8x128xf32>
    %65 = arith.mulf %23, %64 : vector<8x128xf32>
    %66 = arith.addf %63, %65 : vector<8x128xf32>
    %67 = vector.broadcast %0 : f32 to vector<8x128xf32>
    %68 = arith.mulf %21, %67 : vector<8x128xf32>
    %69 = vector.broadcast %1 : f32 to vector<8x128xf32>
    %70 = arith.mulf %23, %69 : vector<8x128xf32>
    %71 = arith.addf %68, %70 : vector<8x128xf32>
    %72 = vector.broadcast %2 : f32 to vector<8x128xf32>
    %73 = arith.mulf %25, %72 : vector<8x128xf32>
    %74 = arith.addf %71, %73 : vector<8x128xf32>
    %75 = vector.broadcast %0 : f32 to vector<8x128xf32>
    %76 = arith.mulf %23, %75 : vector<8x128xf32>
    %77 = vector.broadcast %1 : f32 to vector<8x128xf32>
    %78 = arith.mulf %25, %77 : vector<8x128xf32>
    %79 = arith.addf %76, %78 : vector<8x128xf32>
    %80 = vector.broadcast %2 : f32 to vector<8x128xf32>
    %81 = arith.mulf %27, %80 : vector<8x128xf32>
    %82 = arith.addf %79, %81 : vector<8x128xf32>
    %83 = vector.broadcast %0 : f32 to vector<8x128xf32>
    %84 = arith.mulf %25, %83 : vector<8x128xf32>
    %85 = vector.broadcast %1 : f32 to vector<8x128xf32>
    %86 = arith.mulf %27, %85 : vector<8x128xf32>
    %87 = arith.addf %84, %86 : vector<8x128xf32>
    %88 = vector.broadcast %0 : f32 to vector<8x128xf32>
    %89 = arith.mulf %27, %88 : vector<8x128xf32>
    %90 = arith.cmpf oge, %29, %34 : vector<8x128xf32>
    %91 = arith.extui %90 : vector<8x128xi1> to vector<8x128xi32>
    %c0_i32 = arith.constant 0 : i32
    %92 = vector.broadcast %c0_i32 : i32 to vector<8x128xi32>
    %93 = arith.subi %92, %91 : vector<8x128xi32>
    %94 = arith.cmpf oge, %29, %42 : vector<8x128xf32>
    %95 = arith.extui %94 : vector<8x128xi1> to vector<8x128xi32>
    %96 = arith.subi %93, %95 : vector<8x128xi32>
    %97 = arith.cmpf oge, %29, %50 : vector<8x128xf32>
    %98 = arith.extui %97 : vector<8x128xi1> to vector<8x128xi32>
    %99 = arith.subi %96, %98 : vector<8x128xi32>
    %100 = arith.cmpf oge, %29, %58 : vector<8x128xf32>
    %101 = arith.extui %100 : vector<8x128xi1> to vector<8x128xi32>
    %102 = arith.subi %99, %101 : vector<8x128xi32>
    %103 = arith.cmpf oge, %29, %66 : vector<8x128xf32>
    %104 = arith.extui %103 : vector<8x128xi1> to vector<8x128xi32>
    %105 = arith.subi %102, %104 : vector<8x128xi32>
    %106 = arith.cmpf oge, %29, %74 : vector<8x128xf32>
    %107 = arith.extui %106 : vector<8x128xi1> to vector<8x128xi32>
    %108 = arith.subi %105, %107 : vector<8x128xi32>
    %109 = arith.cmpf oge, %29, %82 : vector<8x128xf32>
    %110 = arith.extui %109 : vector<8x128xi1> to vector<8x128xi32>
    %111 = arith.subi %108, %110 : vector<8x128xi32>
    %112 = arith.cmpf oge, %29, %87 : vector<8x128xf32>
    %113 = arith.extui %112 : vector<8x128xi1> to vector<8x128xi32>
    %114 = arith.subi %111, %113 : vector<8x128xi32>
    %115 = arith.cmpf oge, %29, %89 : vector<8x128xf32>
    %116 = arith.extui %115 : vector<8x128xi1> to vector<8x128xi32>
    %117 = arith.subi %114, %116 : vector<8x128xi32>
    %118 = arith.cmpf oge, %34, %42 : vector<8x128xf32>
    %119 = arith.extui %118 : vector<8x128xi1> to vector<8x128xi32>
    %120 = arith.addi %95, %119 : vector<8x128xi32>
    %121 = arith.subi %91, %119 : vector<8x128xi32>
    %122 = arith.cmpf oge, %34, %50 : vector<8x128xf32>
    %123 = arith.extui %122 : vector<8x128xi1> to vector<8x128xi32>
    %124 = arith.addi %98, %123 : vector<8x128xi32>
    %125 = arith.subi %121, %123 : vector<8x128xi32>
    %126 = arith.cmpf oge, %34, %58 : vector<8x128xf32>
    %127 = arith.extui %126 : vector<8x128xi1> to vector<8x128xi32>
    %128 = arith.addi %101, %127 : vector<8x128xi32>
    %129 = arith.subi %125, %127 : vector<8x128xi32>
    %130 = arith.cmpf oge, %34, %66 : vector<8x128xf32>
    %131 = arith.extui %130 : vector<8x128xi1> to vector<8x128xi32>
    %132 = arith.addi %104, %131 : vector<8x128xi32>
    %133 = arith.subi %129, %131 : vector<8x128xi32>
    %134 = arith.cmpf oge, %34, %74 : vector<8x128xf32>
    %135 = arith.extui %134 : vector<8x128xi1> to vector<8x128xi32>
    %136 = arith.addi %107, %135 : vector<8x128xi32>
    %137 = arith.subi %133, %135 : vector<8x128xi32>
    %138 = arith.cmpf oge, %34, %82 : vector<8x128xf32>
    %139 = arith.extui %138 : vector<8x128xi1> to vector<8x128xi32>
    %140 = arith.addi %110, %139 : vector<8x128xi32>
    %141 = arith.subi %137, %139 : vector<8x128xi32>
    %142 = arith.cmpf oge, %34, %87 : vector<8x128xf32>
    %143 = arith.extui %142 : vector<8x128xi1> to vector<8x128xi32>
    %144 = arith.addi %113, %143 : vector<8x128xi32>
    %145 = arith.subi %141, %143 : vector<8x128xi32>
    %146 = arith.cmpf oge, %34, %89 : vector<8x128xf32>
    %147 = arith.extui %146 : vector<8x128xi1> to vector<8x128xi32>
    %148 = arith.addi %116, %147 : vector<8x128xi32>
    %149 = arith.subi %145, %147 : vector<8x128xi32>
    %150 = arith.cmpf oge, %42, %50 : vector<8x128xf32>
    %151 = arith.extui %150 : vector<8x128xi1> to vector<8x128xi32>
    %152 = arith.addi %124, %151 : vector<8x128xi32>
    %153 = arith.subi %120, %151 : vector<8x128xi32>
    %154 = arith.cmpf oge, %42, %58 : vector<8x128xf32>
    %155 = arith.extui %154 : vector<8x128xi1> to vector<8x128xi32>
    %156 = arith.addi %128, %155 : vector<8x128xi32>
    %157 = arith.subi %153, %155 : vector<8x128xi32>
    %158 = arith.cmpf oge, %42, %66 : vector<8x128xf32>
    %159 = arith.extui %158 : vector<8x128xi1> to vector<8x128xi32>
    %160 = arith.addi %132, %159 : vector<8x128xi32>
    %161 = arith.subi %157, %159 : vector<8x128xi32>
    %162 = arith.cmpf oge, %42, %74 : vector<8x128xf32>
    %163 = arith.extui %162 : vector<8x128xi1> to vector<8x128xi32>
    %164 = arith.addi %136, %163 : vector<8x128xi32>
    %165 = arith.subi %161, %163 : vector<8x128xi32>
    %166 = arith.cmpf oge, %42, %82 : vector<8x128xf32>
    %167 = arith.extui %166 : vector<8x128xi1> to vector<8x128xi32>
    %168 = arith.addi %140, %167 : vector<8x128xi32>
    %169 = arith.subi %165, %167 : vector<8x128xi32>
    %170 = arith.cmpf oge, %42, %87 : vector<8x128xf32>
    %171 = arith.extui %170 : vector<8x128xi1> to vector<8x128xi32>
    %172 = arith.addi %144, %171 : vector<8x128xi32>
    %173 = arith.subi %169, %171 : vector<8x128xi32>
    %174 = arith.cmpf oge, %42, %89 : vector<8x128xf32>
    %175 = arith.extui %174 : vector<8x128xi1> to vector<8x128xi32>
    %176 = arith.addi %148, %175 : vector<8x128xi32>
    %177 = arith.subi %173, %175 : vector<8x128xi32>
    %178 = arith.cmpf oge, %50, %58 : vector<8x128xf32>
    %179 = arith.extui %178 : vector<8x128xi1> to vector<8x128xi32>
    %180 = arith.addi %156, %179 : vector<8x128xi32>
    %181 = arith.subi %152, %179 : vector<8x128xi32>
    %182 = arith.cmpf oge, %50, %66 : vector<8x128xf32>
    %183 = arith.extui %182 : vector<8x128xi1> to vector<8x128xi32>
    %184 = arith.addi %160, %183 : vector<8x128xi32>
    %185 = arith.subi %181, %183 : vector<8x128xi32>
    %186 = arith.cmpf oge, %50, %74 : vector<8x128xf32>
    %187 = arith.extui %186 : vector<8x128xi1> to vector<8x128xi32>
    %188 = arith.addi %164, %187 : vector<8x128xi32>
    %189 = arith.subi %185, %187 : vector<8x128xi32>
    %190 = arith.cmpf oge, %50, %82 : vector<8x128xf32>
    %191 = arith.extui %190 : vector<8x128xi1> to vector<8x128xi32>
    %192 = arith.addi %168, %191 : vector<8x128xi32>
    %193 = arith.subi %189, %191 : vector<8x128xi32>
    %194 = arith.cmpf oge, %50, %87 : vector<8x128xf32>
    %195 = arith.extui %194 : vector<8x128xi1> to vector<8x128xi32>
    %196 = arith.addi %172, %195 : vector<8x128xi32>
    %197 = arith.subi %193, %195 : vector<8x128xi32>
    %198 = arith.cmpf oge, %50, %89 : vector<8x128xf32>
    %199 = arith.extui %198 : vector<8x128xi1> to vector<8x128xi32>
    %200 = arith.addi %176, %199 : vector<8x128xi32>
    %201 = arith.subi %197, %199 : vector<8x128xi32>
    %202 = arith.cmpf oge, %58, %66 : vector<8x128xf32>
    %203 = arith.extui %202 : vector<8x128xi1> to vector<8x128xi32>
    %204 = arith.addi %184, %203 : vector<8x128xi32>
    %205 = arith.subi %180, %203 : vector<8x128xi32>
    %206 = arith.cmpf oge, %58, %74 : vector<8x128xf32>
    %207 = arith.extui %206 : vector<8x128xi1> to vector<8x128xi32>
    %208 = arith.addi %188, %207 : vector<8x128xi32>
    %209 = arith.subi %205, %207 : vector<8x128xi32>
    %210 = arith.cmpf oge, %58, %82 : vector<8x128xf32>
    %211 = arith.extui %210 : vector<8x128xi1> to vector<8x128xi32>
    %212 = arith.addi %192, %211 : vector<8x128xi32>
    %213 = arith.subi %209, %211 : vector<8x128xi32>
    %214 = arith.cmpf oge, %58, %87 : vector<8x128xf32>
    %215 = arith.extui %214 : vector<8x128xi1> to vector<8x128xi32>
    %216 = arith.addi %196, %215 : vector<8x128xi32>
    %217 = arith.subi %213, %215 : vector<8x128xi32>
    %218 = arith.cmpf oge, %58, %89 : vector<8x128xf32>
    %219 = arith.extui %218 : vector<8x128xi1> to vector<8x128xi32>
    %220 = arith.addi %200, %219 : vector<8x128xi32>
    %221 = arith.subi %217, %219 : vector<8x128xi32>
    %222 = arith.cmpf oge, %66, %74 : vector<8x128xf32>
    %223 = arith.extui %222 : vector<8x128xi1> to vector<8x128xi32>
    %224 = arith.addi %208, %223 : vector<8x128xi32>
    %225 = arith.subi %204, %223 : vector<8x128xi32>
    %226 = arith.cmpf oge, %66, %82 : vector<8x128xf32>
    %227 = arith.extui %226 : vector<8x128xi1> to vector<8x128xi32>
    %228 = arith.addi %212, %227 : vector<8x128xi32>
    %229 = arith.subi %225, %227 : vector<8x128xi32>
    %230 = arith.cmpf oge, %66, %87 : vector<8x128xf32>
    %231 = arith.extui %230 : vector<8x128xi1> to vector<8x128xi32>
    %232 = arith.addi %216, %231 : vector<8x128xi32>
    %233 = arith.subi %229, %231 : vector<8x128xi32>
    %234 = arith.cmpf oge, %66, %89 : vector<8x128xf32>
    %235 = arith.extui %234 : vector<8x128xi1> to vector<8x128xi32>
    %236 = arith.addi %220, %235 : vector<8x128xi32>
    %237 = arith.subi %233, %235 : vector<8x128xi32>
    %238 = arith.cmpf oge, %74, %82 : vector<8x128xf32>
    %239 = arith.extui %238 : vector<8x128xi1> to vector<8x128xi32>
    %240 = arith.addi %228, %239 : vector<8x128xi32>
    %241 = arith.subi %224, %239 : vector<8x128xi32>
    %242 = arith.cmpf oge, %74, %87 : vector<8x128xf32>
    %243 = arith.extui %242 : vector<8x128xi1> to vector<8x128xi32>
    %244 = arith.addi %232, %243 : vector<8x128xi32>
    %245 = arith.subi %241, %243 : vector<8x128xi32>
    %246 = arith.cmpf oge, %74, %89 : vector<8x128xf32>
    %247 = arith.extui %246 : vector<8x128xi1> to vector<8x128xi32>
    %248 = arith.addi %236, %247 : vector<8x128xi32>
    %249 = arith.subi %245, %247 : vector<8x128xi32>
    %250 = arith.cmpf oge, %82, %87 : vector<8x128xf32>
    %251 = arith.extui %250 : vector<8x128xi1> to vector<8x128xi32>
    %252 = arith.addi %244, %251 : vector<8x128xi32>
    %253 = arith.subi %240, %251 : vector<8x128xi32>
    %254 = arith.cmpf oge, %82, %89 : vector<8x128xf32>
    %255 = arith.extui %254 : vector<8x128xi1> to vector<8x128xi32>
    %256 = arith.addi %248, %255 : vector<8x128xi32>
    %257 = arith.subi %253, %255 : vector<8x128xi32>
    %258 = arith.cmpf oge, %87, %89 : vector<8x128xf32>
    %259 = arith.extui %258 : vector<8x128xi1> to vector<8x128xi32>
    %260 = arith.addi %256, %259 : vector<8x128xi32>
    %261 = arith.subi %252, %259 : vector<8x128xi32>
    %c-6_i32 = arith.constant -6 : i32
    %262 = vector.broadcast %c-6_i32 : i32 to vector<8x128xi32>
    %263 = arith.cmpi slt, %117, %262 : vector<8x128xi32>
    %c0_i32_43 = arith.constant 0 : i32
    %c3_i32 = arith.constant 3 : i32
    %264 = vector.broadcast %c0_i32_43 : i32 to vector<8x128xi32>
    %265 = vector.broadcast %c3_i32 : i32 to vector<8x128xi32>
    %266 = arith.select %263, %264, %265 : vector<8x128xi1>, vector<8x128xi32>
    %c0_i32_44 = arith.constant 0 : i32
    %267 = vector.broadcast %c0_i32_44 : i32 to vector<8x128xi32>
    %268 = arith.cmpi eq, %266, %267 : vector<8x128xi32>
    %cst = arith.constant 0.000000e+00 : f32
    %269 = vector.broadcast %cst : f32 to vector<8x128xf32>
    %270 = arith.select %268, %29, %269 : vector<8x128xi1>, vector<8x128xf32>
    %271 = arith.extui %263 : vector<8x128xi1> to vector<8x128xi32>
    %c-5_i32 = arith.constant -5 : i32
    %272 = vector.broadcast %c-5_i32 : i32 to vector<8x128xi32>
    %273 = arith.cmpi slt, %149, %272 : vector<8x128xi32>
    %c3_i32_45 = arith.constant 3 : i32
    %274 = vector.broadcast %c3_i32_45 : i32 to vector<8x128xi32>
    %275 = arith.select %273, %271, %274 : vector<8x128xi1>, vector<8x128xi32>
    %c0_i32_46 = arith.constant 0 : i32
    %276 = vector.broadcast %c0_i32_46 : i32 to vector<8x128xi32>
    %277 = arith.cmpi eq, %275, %276 : vector<8x128xi32>
    %278 = arith.select %277, %34, %270 : vector<8x128xi1>, vector<8x128xf32>
    %c1_i32 = arith.constant 1 : i32
    %279 = vector.broadcast %c1_i32 : i32 to vector<8x128xi32>
    %280 = arith.cmpi eq, %275, %279 : vector<8x128xi32>
    %cst_47 = arith.constant 0.000000e+00 : f32
    %281 = vector.broadcast %cst_47 : f32 to vector<8x128xf32>
    %282 = arith.select %280, %34, %281 : vector<8x128xi1>, vector<8x128xf32>
    %283 = arith.extui %273 : vector<8x128xi1> to vector<8x128xi32>
    %284 = arith.addi %271, %283 : vector<8x128xi32>
    %c-4_i32 = arith.constant -4 : i32
    %285 = vector.broadcast %c-4_i32 : i32 to vector<8x128xi32>
    %286 = arith.cmpi slt, %177, %285 : vector<8x128xi32>
    %c3_i32_48 = arith.constant 3 : i32
    %287 = vector.broadcast %c3_i32_48 : i32 to vector<8x128xi32>
    %288 = arith.select %286, %284, %287 : vector<8x128xi1>, vector<8x128xi32>
    %c0_i32_49 = arith.constant 0 : i32
    %289 = vector.broadcast %c0_i32_49 : i32 to vector<8x128xi32>
    %290 = arith.cmpi eq, %288, %289 : vector<8x128xi32>
    %291 = arith.select %290, %42, %278 : vector<8x128xi1>, vector<8x128xf32>
    %c1_i32_50 = arith.constant 1 : i32
    %292 = vector.broadcast %c1_i32_50 : i32 to vector<8x128xi32>
    %293 = arith.cmpi eq, %288, %292 : vector<8x128xi32>
    %294 = arith.select %293, %42, %282 : vector<8x128xi1>, vector<8x128xf32>
    %c2_i32 = arith.constant 2 : i32
    %295 = vector.broadcast %c2_i32 : i32 to vector<8x128xi32>
    %296 = arith.cmpi eq, %288, %295 : vector<8x128xi32>
    %cst_51 = arith.constant 0.000000e+00 : f32
    %297 = vector.broadcast %cst_51 : f32 to vector<8x128xf32>
    %298 = arith.select %296, %42, %297 : vector<8x128xi1>, vector<8x128xf32>
    %299 = arith.extui %286 : vector<8x128xi1> to vector<8x128xi32>
    %300 = arith.addi %284, %299 : vector<8x128xi32>
    %c-3_i32 = arith.constant -3 : i32
    %301 = vector.broadcast %c-3_i32 : i32 to vector<8x128xi32>
    %302 = arith.cmpi slt, %201, %301 : vector<8x128xi32>
    %c3_i32_52 = arith.constant 3 : i32
    %303 = vector.broadcast %c3_i32_52 : i32 to vector<8x128xi32>
    %304 = arith.select %302, %300, %303 : vector<8x128xi1>, vector<8x128xi32>
    %c0_i32_53 = arith.constant 0 : i32
    %305 = vector.broadcast %c0_i32_53 : i32 to vector<8x128xi32>
    %306 = arith.cmpi eq, %304, %305 : vector<8x128xi32>
    %307 = arith.select %306, %50, %291 : vector<8x128xi1>, vector<8x128xf32>
    %c1_i32_54 = arith.constant 1 : i32
    %308 = vector.broadcast %c1_i32_54 : i32 to vector<8x128xi32>
    %309 = arith.cmpi eq, %304, %308 : vector<8x128xi32>
    %310 = arith.select %309, %50, %294 : vector<8x128xi1>, vector<8x128xf32>
    %c2_i32_55 = arith.constant 2 : i32
    %311 = vector.broadcast %c2_i32_55 : i32 to vector<8x128xi32>
    %312 = arith.cmpi eq, %304, %311 : vector<8x128xi32>
    %313 = arith.select %312, %50, %298 : vector<8x128xi1>, vector<8x128xf32>
    %314 = arith.extui %302 : vector<8x128xi1> to vector<8x128xi32>
    %315 = arith.addi %300, %314 : vector<8x128xi32>
    %c-2_i32 = arith.constant -2 : i32
    %316 = vector.broadcast %c-2_i32 : i32 to vector<8x128xi32>
    %317 = arith.cmpi slt, %221, %316 : vector<8x128xi32>
    %c3_i32_56 = arith.constant 3 : i32
    %318 = vector.broadcast %c3_i32_56 : i32 to vector<8x128xi32>
    %319 = arith.select %317, %315, %318 : vector<8x128xi1>, vector<8x128xi32>
    %c0_i32_57 = arith.constant 0 : i32
    %320 = vector.broadcast %c0_i32_57 : i32 to vector<8x128xi32>
    %321 = arith.cmpi eq, %319, %320 : vector<8x128xi32>
    %322 = arith.select %321, %58, %307 : vector<8x128xi1>, vector<8x128xf32>
    %c1_i32_58 = arith.constant 1 : i32
    %323 = vector.broadcast %c1_i32_58 : i32 to vector<8x128xi32>
    %324 = arith.cmpi eq, %319, %323 : vector<8x128xi32>
    %325 = arith.select %324, %58, %310 : vector<8x128xi1>, vector<8x128xf32>
    %c2_i32_59 = arith.constant 2 : i32
    %326 = vector.broadcast %c2_i32_59 : i32 to vector<8x128xi32>
    %327 = arith.cmpi eq, %319, %326 : vector<8x128xi32>
    %328 = arith.select %327, %58, %313 : vector<8x128xi1>, vector<8x128xf32>
    %329 = arith.extui %317 : vector<8x128xi1> to vector<8x128xi32>
    %330 = arith.addi %315, %329 : vector<8x128xi32>
    %c-1_i32 = arith.constant -1 : i32
    %331 = vector.broadcast %c-1_i32 : i32 to vector<8x128xi32>
    %332 = arith.cmpi slt, %237, %331 : vector<8x128xi32>
    %c3_i32_60 = arith.constant 3 : i32
    %333 = vector.broadcast %c3_i32_60 : i32 to vector<8x128xi32>
    %334 = arith.select %332, %330, %333 : vector<8x128xi1>, vector<8x128xi32>
    %c0_i32_61 = arith.constant 0 : i32
    %335 = vector.broadcast %c0_i32_61 : i32 to vector<8x128xi32>
    %336 = arith.cmpi eq, %334, %335 : vector<8x128xi32>
    %337 = arith.select %336, %66, %322 : vector<8x128xi1>, vector<8x128xf32>
    %c1_i32_62 = arith.constant 1 : i32
    %338 = vector.broadcast %c1_i32_62 : i32 to vector<8x128xi32>
    %339 = arith.cmpi eq, %334, %338 : vector<8x128xi32>
    %340 = arith.select %339, %66, %325 : vector<8x128xi1>, vector<8x128xf32>
    %c2_i32_63 = arith.constant 2 : i32
    %341 = vector.broadcast %c2_i32_63 : i32 to vector<8x128xi32>
    %342 = arith.cmpi eq, %334, %341 : vector<8x128xi32>
    %343 = arith.select %342, %66, %328 : vector<8x128xi1>, vector<8x128xf32>
    %344 = arith.extui %332 : vector<8x128xi1> to vector<8x128xi32>
    %345 = arith.addi %330, %344 : vector<8x128xi32>
    %c0_i32_64 = arith.constant 0 : i32
    %346 = vector.broadcast %c0_i32_64 : i32 to vector<8x128xi32>
    %347 = arith.cmpi slt, %249, %346 : vector<8x128xi32>
    %c3_i32_65 = arith.constant 3 : i32
    %348 = vector.broadcast %c3_i32_65 : i32 to vector<8x128xi32>
    %349 = arith.select %347, %345, %348 : vector<8x128xi1>, vector<8x128xi32>
    %c0_i32_66 = arith.constant 0 : i32
    %350 = vector.broadcast %c0_i32_66 : i32 to vector<8x128xi32>
    %351 = arith.cmpi eq, %349, %350 : vector<8x128xi32>
    %352 = arith.select %351, %74, %337 : vector<8x128xi1>, vector<8x128xf32>
    %c1_i32_67 = arith.constant 1 : i32
    %353 = vector.broadcast %c1_i32_67 : i32 to vector<8x128xi32>
    %354 = arith.cmpi eq, %349, %353 : vector<8x128xi32>
    %355 = arith.select %354, %74, %340 : vector<8x128xi1>, vector<8x128xf32>
    %c2_i32_68 = arith.constant 2 : i32
    %356 = vector.broadcast %c2_i32_68 : i32 to vector<8x128xi32>
    %357 = arith.cmpi eq, %349, %356 : vector<8x128xi32>
    %358 = arith.select %357, %74, %343 : vector<8x128xi1>, vector<8x128xf32>
    %359 = arith.extui %347 : vector<8x128xi1> to vector<8x128xi32>
    %360 = arith.addi %345, %359 : vector<8x128xi32>
    %c1_i32_69 = arith.constant 1 : i32
    %361 = vector.broadcast %c1_i32_69 : i32 to vector<8x128xi32>
    %362 = arith.cmpi slt, %257, %361 : vector<8x128xi32>
    %c3_i32_70 = arith.constant 3 : i32
    %363 = vector.broadcast %c3_i32_70 : i32 to vector<8x128xi32>
    %364 = arith.select %362, %360, %363 : vector<8x128xi1>, vector<8x128xi32>
    %c0_i32_71 = arith.constant 0 : i32
    %365 = vector.broadcast %c0_i32_71 : i32 to vector<8x128xi32>
    %366 = arith.cmpi eq, %364, %365 : vector<8x128xi32>
    %367 = arith.select %366, %82, %352 : vector<8x128xi1>, vector<8x128xf32>
    %c1_i32_72 = arith.constant 1 : i32
    %368 = vector.broadcast %c1_i32_72 : i32 to vector<8x128xi32>
    %369 = arith.cmpi eq, %364, %368 : vector<8x128xi32>
    %370 = arith.select %369, %82, %355 : vector<8x128xi1>, vector<8x128xf32>
    %c2_i32_73 = arith.constant 2 : i32
    %371 = vector.broadcast %c2_i32_73 : i32 to vector<8x128xi32>
    %372 = arith.cmpi eq, %364, %371 : vector<8x128xi32>
    %373 = arith.select %372, %82, %358 : vector<8x128xi1>, vector<8x128xf32>
    %374 = arith.extui %362 : vector<8x128xi1> to vector<8x128xi32>
    %375 = arith.addi %360, %374 : vector<8x128xi32>
    %c2_i32_74 = arith.constant 2 : i32
    %376 = vector.broadcast %c2_i32_74 : i32 to vector<8x128xi32>
    %377 = arith.cmpi slt, %261, %376 : vector<8x128xi32>
    %c3_i32_75 = arith.constant 3 : i32
    %378 = vector.broadcast %c3_i32_75 : i32 to vector<8x128xi32>
    %379 = arith.select %377, %375, %378 : vector<8x128xi1>, vector<8x128xi32>
    %c1_i32_76 = arith.constant 1 : i32
    %380 = vector.broadcast %c1_i32_76 : i32 to vector<8x128xi32>
    %381 = arith.cmpi eq, %379, %380 : vector<8x128xi32>
    %382 = arith.select %381, %87, %370 : vector<8x128xi1>, vector<8x128xf32>
    %c2_i32_77 = arith.constant 2 : i32
    %383 = vector.broadcast %c2_i32_77 : i32 to vector<8x128xi32>
    %384 = arith.cmpi eq, %379, %383 : vector<8x128xi32>
    %385 = arith.select %384, %87, %373 : vector<8x128xi1>, vector<8x128xf32>
    %386 = arith.extui %377 : vector<8x128xi1> to vector<8x128xi32>
    %387 = arith.addi %375, %386 : vector<8x128xi32>
    %c3_i32_78 = arith.constant 3 : i32
    %388 = vector.broadcast %c3_i32_78 : i32 to vector<8x128xi32>
    %389 = arith.cmpi slt, %260, %388 : vector<8x128xi32>
    %c3_i32_79 = arith.constant 3 : i32
    %390 = vector.broadcast %c3_i32_79 : i32 to vector<8x128xi32>
    %391 = arith.select %389, %387, %390 : vector<8x128xi1>, vector<8x128xi32>
    %c2_i32_80 = arith.constant 2 : i32
    %392 = vector.broadcast %c2_i32_80 : i32 to vector<8x128xi32>
    %393 = arith.cmpi eq, %391, %392 : vector<8x128xi32>
    %394 = arith.select %393, %89, %385 : vector<8x128xi1>, vector<8x128xf32>
    %395 = vector.broadcast %9 : f32 to vector<8x128xf32>
    %396 = arith.addf %367, %395 : vector<8x128xf32>
    %397 = math.tanh %396 : vector<8x128xf32>
    %398 = vector.broadcast %9 : f32 to vector<8x128xf32>
    %399 = arith.addf %382, %398 : vector<8x128xf32>
    %400 = math.tanh %399 : vector<8x128xf32>
    %401 = vector.broadcast %9 : f32 to vector<8x128xf32>
    %402 = arith.addf %394, %401 : vector<8x128xf32>
    %403 = math.tanh %402 : vector<8x128xf32>
    %404 = vector.broadcast %5 : f32 to vector<8x128xf32>
    %405 = arith.mulf %13, %404 : vector<8x128xf32>
    %406 = vector.broadcast %4 : f32 to vector<8x128xf32>
    %407 = arith.mulf %13, %406 : vector<8x128xf32>
    %408 = vector.broadcast %5 : f32 to vector<8x128xf32>
    %409 = arith.mulf %15, %408 : vector<8x128xf32>
    %410 = arith.addf %407, %409 : vector<8x128xf32>
    %411 = vector.broadcast %3 : f32 to vector<8x128xf32>
    %412 = arith.mulf %13, %411 : vector<8x128xf32>
    %413 = vector.broadcast %4 : f32 to vector<8x128xf32>
    %414 = arith.mulf %15, %413 : vector<8x128xf32>
    %415 = arith.addf %412, %414 : vector<8x128xf32>
    %416 = vector.broadcast %5 : f32 to vector<8x128xf32>
    %417 = arith.mulf %17, %416 : vector<8x128xf32>
    %418 = arith.addf %415, %417 : vector<8x128xf32>
    %419 = vector.broadcast %3 : f32 to vector<8x128xf32>
    %420 = arith.mulf %15, %419 : vector<8x128xf32>
    %421 = vector.broadcast %4 : f32 to vector<8x128xf32>
    %422 = arith.mulf %17, %421 : vector<8x128xf32>
    %423 = arith.addf %420, %422 : vector<8x128xf32>
    %424 = vector.broadcast %5 : f32 to vector<8x128xf32>
    %425 = arith.mulf %19, %424 : vector<8x128xf32>
    %426 = arith.addf %423, %425 : vector<8x128xf32>
    %427 = vector.broadcast %3 : f32 to vector<8x128xf32>
    %428 = arith.mulf %17, %427 : vector<8x128xf32>
    %429 = vector.broadcast %4 : f32 to vector<8x128xf32>
    %430 = arith.mulf %19, %429 : vector<8x128xf32>
    %431 = arith.addf %428, %430 : vector<8x128xf32>
    %432 = vector.broadcast %5 : f32 to vector<8x128xf32>
    %433 = arith.mulf %21, %432 : vector<8x128xf32>
    %434 = arith.addf %431, %433 : vector<8x128xf32>
    %435 = vector.broadcast %3 : f32 to vector<8x128xf32>
    %436 = arith.mulf %19, %435 : vector<8x128xf32>
    %437 = vector.broadcast %4 : f32 to vector<8x128xf32>
    %438 = arith.mulf %21, %437 : vector<8x128xf32>
    %439 = arith.addf %436, %438 : vector<8x128xf32>
    %440 = vector.broadcast %5 : f32 to vector<8x128xf32>
    %441 = arith.mulf %23, %440 : vector<8x128xf32>
    %442 = arith.addf %439, %441 : vector<8x128xf32>
    %443 = vector.broadcast %3 : f32 to vector<8x128xf32>
    %444 = arith.mulf %21, %443 : vector<8x128xf32>
    %445 = vector.broadcast %4 : f32 to vector<8x128xf32>
    %446 = arith.mulf %23, %445 : vector<8x128xf32>
    %447 = arith.addf %444, %446 : vector<8x128xf32>
    %448 = vector.broadcast %5 : f32 to vector<8x128xf32>
    %449 = arith.mulf %25, %448 : vector<8x128xf32>
    %450 = arith.addf %447, %449 : vector<8x128xf32>
    %451 = vector.broadcast %3 : f32 to vector<8x128xf32>
    %452 = arith.mulf %23, %451 : vector<8x128xf32>
    %453 = vector.broadcast %4 : f32 to vector<8x128xf32>
    %454 = arith.mulf %25, %453 : vector<8x128xf32>
    %455 = arith.addf %452, %454 : vector<8x128xf32>
    %456 = vector.broadcast %5 : f32 to vector<8x128xf32>
    %457 = arith.mulf %27, %456 : vector<8x128xf32>
    %458 = arith.addf %455, %457 : vector<8x128xf32>
    %459 = vector.broadcast %3 : f32 to vector<8x128xf32>
    %460 = arith.mulf %25, %459 : vector<8x128xf32>
    %461 = vector.broadcast %4 : f32 to vector<8x128xf32>
    %462 = arith.mulf %27, %461 : vector<8x128xf32>
    %463 = arith.addf %460, %462 : vector<8x128xf32>
    %464 = vector.broadcast %3 : f32 to vector<8x128xf32>
    %465 = arith.mulf %27, %464 : vector<8x128xf32>
    %466 = arith.cmpf oge, %405, %410 : vector<8x128xf32>
    %467 = arith.extui %466 : vector<8x128xi1> to vector<8x128xi32>
    %c0_i32_81 = arith.constant 0 : i32
    %468 = vector.broadcast %c0_i32_81 : i32 to vector<8x128xi32>
    %469 = arith.subi %468, %467 : vector<8x128xi32>
    %470 = arith.cmpf oge, %405, %418 : vector<8x128xf32>
    %471 = arith.extui %470 : vector<8x128xi1> to vector<8x128xi32>
    %472 = arith.subi %469, %471 : vector<8x128xi32>
    %473 = arith.cmpf oge, %405, %426 : vector<8x128xf32>
    %474 = arith.extui %473 : vector<8x128xi1> to vector<8x128xi32>
    %475 = arith.subi %472, %474 : vector<8x128xi32>
    %476 = arith.cmpf oge, %405, %434 : vector<8x128xf32>
    %477 = arith.extui %476 : vector<8x128xi1> to vector<8x128xi32>
    %478 = arith.subi %475, %477 : vector<8x128xi32>
    %479 = arith.cmpf oge, %405, %442 : vector<8x128xf32>
    %480 = arith.extui %479 : vector<8x128xi1> to vector<8x128xi32>
    %481 = arith.subi %478, %480 : vector<8x128xi32>
    %482 = arith.cmpf oge, %405, %450 : vector<8x128xf32>
    %483 = arith.extui %482 : vector<8x128xi1> to vector<8x128xi32>
    %484 = arith.subi %481, %483 : vector<8x128xi32>
    %485 = arith.cmpf oge, %405, %458 : vector<8x128xf32>
    %486 = arith.extui %485 : vector<8x128xi1> to vector<8x128xi32>
    %487 = arith.subi %484, %486 : vector<8x128xi32>
    %488 = arith.cmpf oge, %405, %463 : vector<8x128xf32>
    %489 = arith.extui %488 : vector<8x128xi1> to vector<8x128xi32>
    %490 = arith.subi %487, %489 : vector<8x128xi32>
    %491 = arith.cmpf oge, %405, %465 : vector<8x128xf32>
    %492 = arith.extui %491 : vector<8x128xi1> to vector<8x128xi32>
    %493 = arith.subi %490, %492 : vector<8x128xi32>
    %494 = arith.cmpf oge, %410, %418 : vector<8x128xf32>
    %495 = arith.extui %494 : vector<8x128xi1> to vector<8x128xi32>
    %496 = arith.addi %471, %495 : vector<8x128xi32>
    %497 = arith.subi %467, %495 : vector<8x128xi32>
    %498 = arith.cmpf oge, %410, %426 : vector<8x128xf32>
    %499 = arith.extui %498 : vector<8x128xi1> to vector<8x128xi32>
    %500 = arith.addi %474, %499 : vector<8x128xi32>
    %501 = arith.subi %497, %499 : vector<8x128xi32>
    %502 = arith.cmpf oge, %410, %434 : vector<8x128xf32>
    %503 = arith.extui %502 : vector<8x128xi1> to vector<8x128xi32>
    %504 = arith.addi %477, %503 : vector<8x128xi32>
    %505 = arith.subi %501, %503 : vector<8x128xi32>
    %506 = arith.cmpf oge, %410, %442 : vector<8x128xf32>
    %507 = arith.extui %506 : vector<8x128xi1> to vector<8x128xi32>
    %508 = arith.addi %480, %507 : vector<8x128xi32>
    %509 = arith.subi %505, %507 : vector<8x128xi32>
    %510 = arith.cmpf oge, %410, %450 : vector<8x128xf32>
    %511 = arith.extui %510 : vector<8x128xi1> to vector<8x128xi32>
    %512 = arith.addi %483, %511 : vector<8x128xi32>
    %513 = arith.subi %509, %511 : vector<8x128xi32>
    %514 = arith.cmpf oge, %410, %458 : vector<8x128xf32>
    %515 = arith.extui %514 : vector<8x128xi1> to vector<8x128xi32>
    %516 = arith.addi %486, %515 : vector<8x128xi32>
    %517 = arith.subi %513, %515 : vector<8x128xi32>
    %518 = arith.cmpf oge, %410, %463 : vector<8x128xf32>
    %519 = arith.extui %518 : vector<8x128xi1> to vector<8x128xi32>
    %520 = arith.addi %489, %519 : vector<8x128xi32>
    %521 = arith.subi %517, %519 : vector<8x128xi32>
    %522 = arith.cmpf oge, %410, %465 : vector<8x128xf32>
    %523 = arith.extui %522 : vector<8x128xi1> to vector<8x128xi32>
    %524 = arith.addi %492, %523 : vector<8x128xi32>
    %525 = arith.subi %521, %523 : vector<8x128xi32>
    %526 = arith.cmpf oge, %418, %426 : vector<8x128xf32>
    %527 = arith.extui %526 : vector<8x128xi1> to vector<8x128xi32>
    %528 = arith.addi %500, %527 : vector<8x128xi32>
    %529 = arith.subi %496, %527 : vector<8x128xi32>
    %530 = arith.cmpf oge, %418, %434 : vector<8x128xf32>
    %531 = arith.extui %530 : vector<8x128xi1> to vector<8x128xi32>
    %532 = arith.addi %504, %531 : vector<8x128xi32>
    %533 = arith.subi %529, %531 : vector<8x128xi32>
    %534 = arith.cmpf oge, %418, %442 : vector<8x128xf32>
    %535 = arith.extui %534 : vector<8x128xi1> to vector<8x128xi32>
    %536 = arith.addi %508, %535 : vector<8x128xi32>
    %537 = arith.subi %533, %535 : vector<8x128xi32>
    %538 = arith.cmpf oge, %418, %450 : vector<8x128xf32>
    %539 = arith.extui %538 : vector<8x128xi1> to vector<8x128xi32>
    %540 = arith.addi %512, %539 : vector<8x128xi32>
    %541 = arith.subi %537, %539 : vector<8x128xi32>
    %542 = arith.cmpf oge, %418, %458 : vector<8x128xf32>
    %543 = arith.extui %542 : vector<8x128xi1> to vector<8x128xi32>
    %544 = arith.addi %516, %543 : vector<8x128xi32>
    %545 = arith.subi %541, %543 : vector<8x128xi32>
    %546 = arith.cmpf oge, %418, %463 : vector<8x128xf32>
    %547 = arith.extui %546 : vector<8x128xi1> to vector<8x128xi32>
    %548 = arith.addi %520, %547 : vector<8x128xi32>
    %549 = arith.subi %545, %547 : vector<8x128xi32>
    %550 = arith.cmpf oge, %418, %465 : vector<8x128xf32>
    %551 = arith.extui %550 : vector<8x128xi1> to vector<8x128xi32>
    %552 = arith.addi %524, %551 : vector<8x128xi32>
    %553 = arith.subi %549, %551 : vector<8x128xi32>
    %554 = arith.cmpf oge, %426, %434 : vector<8x128xf32>
    %555 = arith.extui %554 : vector<8x128xi1> to vector<8x128xi32>
    %556 = arith.addi %532, %555 : vector<8x128xi32>
    %557 = arith.subi %528, %555 : vector<8x128xi32>
    %558 = arith.cmpf oge, %426, %442 : vector<8x128xf32>
    %559 = arith.extui %558 : vector<8x128xi1> to vector<8x128xi32>
    %560 = arith.addi %536, %559 : vector<8x128xi32>
    %561 = arith.subi %557, %559 : vector<8x128xi32>
    %562 = arith.cmpf oge, %426, %450 : vector<8x128xf32>
    %563 = arith.extui %562 : vector<8x128xi1> to vector<8x128xi32>
    %564 = arith.addi %540, %563 : vector<8x128xi32>
    %565 = arith.subi %561, %563 : vector<8x128xi32>
    %566 = arith.cmpf oge, %426, %458 : vector<8x128xf32>
    %567 = arith.extui %566 : vector<8x128xi1> to vector<8x128xi32>
    %568 = arith.addi %544, %567 : vector<8x128xi32>
    %569 = arith.subi %565, %567 : vector<8x128xi32>
    %570 = arith.cmpf oge, %426, %463 : vector<8x128xf32>
    %571 = arith.extui %570 : vector<8x128xi1> to vector<8x128xi32>
    %572 = arith.addi %548, %571 : vector<8x128xi32>
    %573 = arith.subi %569, %571 : vector<8x128xi32>
    %574 = arith.cmpf oge, %426, %465 : vector<8x128xf32>
    %575 = arith.extui %574 : vector<8x128xi1> to vector<8x128xi32>
    %576 = arith.addi %552, %575 : vector<8x128xi32>
    %577 = arith.subi %573, %575 : vector<8x128xi32>
    %578 = arith.cmpf oge, %434, %442 : vector<8x128xf32>
    %579 = arith.extui %578 : vector<8x128xi1> to vector<8x128xi32>
    %580 = arith.addi %560, %579 : vector<8x128xi32>
    %581 = arith.subi %556, %579 : vector<8x128xi32>
    %582 = arith.cmpf oge, %434, %450 : vector<8x128xf32>
    %583 = arith.extui %582 : vector<8x128xi1> to vector<8x128xi32>
    %584 = arith.addi %564, %583 : vector<8x128xi32>
    %585 = arith.subi %581, %583 : vector<8x128xi32>
    %586 = arith.cmpf oge, %434, %458 : vector<8x128xf32>
    %587 = arith.extui %586 : vector<8x128xi1> to vector<8x128xi32>
    %588 = arith.addi %568, %587 : vector<8x128xi32>
    %589 = arith.subi %585, %587 : vector<8x128xi32>
    %590 = arith.cmpf oge, %434, %463 : vector<8x128xf32>
    %591 = arith.extui %590 : vector<8x128xi1> to vector<8x128xi32>
    %592 = arith.addi %572, %591 : vector<8x128xi32>
    %593 = arith.subi %589, %591 : vector<8x128xi32>
    %594 = arith.cmpf oge, %434, %465 : vector<8x128xf32>
    %595 = arith.extui %594 : vector<8x128xi1> to vector<8x128xi32>
    %596 = arith.addi %576, %595 : vector<8x128xi32>
    %597 = arith.subi %593, %595 : vector<8x128xi32>
    %598 = arith.cmpf oge, %442, %450 : vector<8x128xf32>
    %599 = arith.extui %598 : vector<8x128xi1> to vector<8x128xi32>
    %600 = arith.addi %584, %599 : vector<8x128xi32>
    %601 = arith.subi %580, %599 : vector<8x128xi32>
    %602 = arith.cmpf oge, %442, %458 : vector<8x128xf32>
    %603 = arith.extui %602 : vector<8x128xi1> to vector<8x128xi32>
    %604 = arith.addi %588, %603 : vector<8x128xi32>
    %605 = arith.subi %601, %603 : vector<8x128xi32>
    %606 = arith.cmpf oge, %442, %463 : vector<8x128xf32>
    %607 = arith.extui %606 : vector<8x128xi1> to vector<8x128xi32>
    %608 = arith.addi %592, %607 : vector<8x128xi32>
    %609 = arith.subi %605, %607 : vector<8x128xi32>
    %610 = arith.cmpf oge, %442, %465 : vector<8x128xf32>
    %611 = arith.extui %610 : vector<8x128xi1> to vector<8x128xi32>
    %612 = arith.addi %596, %611 : vector<8x128xi32>
    %613 = arith.subi %609, %611 : vector<8x128xi32>
    %614 = arith.cmpf oge, %450, %458 : vector<8x128xf32>
    %615 = arith.extui %614 : vector<8x128xi1> to vector<8x128xi32>
    %616 = arith.addi %604, %615 : vector<8x128xi32>
    %617 = arith.subi %600, %615 : vector<8x128xi32>
    %618 = arith.cmpf oge, %450, %463 : vector<8x128xf32>
    %619 = arith.extui %618 : vector<8x128xi1> to vector<8x128xi32>
    %620 = arith.addi %608, %619 : vector<8x128xi32>
    %621 = arith.subi %617, %619 : vector<8x128xi32>
    %622 = arith.cmpf oge, %450, %465 : vector<8x128xf32>
    %623 = arith.extui %622 : vector<8x128xi1> to vector<8x128xi32>
    %624 = arith.addi %612, %623 : vector<8x128xi32>
    %625 = arith.subi %621, %623 : vector<8x128xi32>
    %626 = arith.cmpf oge, %458, %463 : vector<8x128xf32>
    %627 = arith.extui %626 : vector<8x128xi1> to vector<8x128xi32>
    %628 = arith.addi %620, %627 : vector<8x128xi32>
    %629 = arith.subi %616, %627 : vector<8x128xi32>
    %630 = arith.cmpf oge, %458, %465 : vector<8x128xf32>
    %631 = arith.extui %630 : vector<8x128xi1> to vector<8x128xi32>
    %632 = arith.addi %624, %631 : vector<8x128xi32>
    %633 = arith.subi %629, %631 : vector<8x128xi32>
    %634 = arith.cmpf oge, %463, %465 : vector<8x128xf32>
    %635 = arith.extui %634 : vector<8x128xi1> to vector<8x128xi32>
    %636 = arith.addi %632, %635 : vector<8x128xi32>
    %637 = arith.subi %628, %635 : vector<8x128xi32>
    %c-6_i32_82 = arith.constant -6 : i32
    %638 = vector.broadcast %c-6_i32_82 : i32 to vector<8x128xi32>
    %639 = arith.cmpi slt, %493, %638 : vector<8x128xi32>
    %c0_i32_83 = arith.constant 0 : i32
    %c3_i32_84 = arith.constant 3 : i32
    %640 = vector.broadcast %c0_i32_83 : i32 to vector<8x128xi32>
    %641 = vector.broadcast %c3_i32_84 : i32 to vector<8x128xi32>
    %642 = arith.select %639, %640, %641 : vector<8x128xi1>, vector<8x128xi32>
    %c0_i32_85 = arith.constant 0 : i32
    %643 = vector.broadcast %c0_i32_85 : i32 to vector<8x128xi32>
    %644 = arith.cmpi eq, %642, %643 : vector<8x128xi32>
    %cst_86 = arith.constant 0.000000e+00 : f32
    %645 = vector.broadcast %cst_86 : f32 to vector<8x128xf32>
    %646 = arith.select %644, %405, %645 : vector<8x128xi1>, vector<8x128xf32>
    %647 = arith.extui %639 : vector<8x128xi1> to vector<8x128xi32>
    %c-5_i32_87 = arith.constant -5 : i32
    %648 = vector.broadcast %c-5_i32_87 : i32 to vector<8x128xi32>
    %649 = arith.cmpi slt, %525, %648 : vector<8x128xi32>
    %c3_i32_88 = arith.constant 3 : i32
    %650 = vector.broadcast %c3_i32_88 : i32 to vector<8x128xi32>
    %651 = arith.select %649, %647, %650 : vector<8x128xi1>, vector<8x128xi32>
    %c0_i32_89 = arith.constant 0 : i32
    %652 = vector.broadcast %c0_i32_89 : i32 to vector<8x128xi32>
    %653 = arith.cmpi eq, %651, %652 : vector<8x128xi32>
    %654 = arith.select %653, %410, %646 : vector<8x128xi1>, vector<8x128xf32>
    %c1_i32_90 = arith.constant 1 : i32
    %655 = vector.broadcast %c1_i32_90 : i32 to vector<8x128xi32>
    %656 = arith.cmpi eq, %651, %655 : vector<8x128xi32>
    %cst_91 = arith.constant 0.000000e+00 : f32
    %657 = vector.broadcast %cst_91 : f32 to vector<8x128xf32>
    %658 = arith.select %656, %410, %657 : vector<8x128xi1>, vector<8x128xf32>
    %659 = arith.extui %649 : vector<8x128xi1> to vector<8x128xi32>
    %660 = arith.addi %647, %659 : vector<8x128xi32>
    %c-4_i32_92 = arith.constant -4 : i32
    %661 = vector.broadcast %c-4_i32_92 : i32 to vector<8x128xi32>
    %662 = arith.cmpi slt, %553, %661 : vector<8x128xi32>
    %c3_i32_93 = arith.constant 3 : i32
    %663 = vector.broadcast %c3_i32_93 : i32 to vector<8x128xi32>
    %664 = arith.select %662, %660, %663 : vector<8x128xi1>, vector<8x128xi32>
    %c0_i32_94 = arith.constant 0 : i32
    %665 = vector.broadcast %c0_i32_94 : i32 to vector<8x128xi32>
    %666 = arith.cmpi eq, %664, %665 : vector<8x128xi32>
    %667 = arith.select %666, %418, %654 : vector<8x128xi1>, vector<8x128xf32>
    %c1_i32_95 = arith.constant 1 : i32
    %668 = vector.broadcast %c1_i32_95 : i32 to vector<8x128xi32>
    %669 = arith.cmpi eq, %664, %668 : vector<8x128xi32>
    %670 = arith.select %669, %418, %658 : vector<8x128xi1>, vector<8x128xf32>
    %c2_i32_96 = arith.constant 2 : i32
    %671 = vector.broadcast %c2_i32_96 : i32 to vector<8x128xi32>
    %672 = arith.cmpi eq, %664, %671 : vector<8x128xi32>
    %cst_97 = arith.constant 0.000000e+00 : f32
    %673 = vector.broadcast %cst_97 : f32 to vector<8x128xf32>
    %674 = arith.select %672, %418, %673 : vector<8x128xi1>, vector<8x128xf32>
    %675 = arith.extui %662 : vector<8x128xi1> to vector<8x128xi32>
    %676 = arith.addi %660, %675 : vector<8x128xi32>
    %c-3_i32_98 = arith.constant -3 : i32
    %677 = vector.broadcast %c-3_i32_98 : i32 to vector<8x128xi32>
    %678 = arith.cmpi slt, %577, %677 : vector<8x128xi32>
    %c3_i32_99 = arith.constant 3 : i32
    %679 = vector.broadcast %c3_i32_99 : i32 to vector<8x128xi32>
    %680 = arith.select %678, %676, %679 : vector<8x128xi1>, vector<8x128xi32>
    %c0_i32_100 = arith.constant 0 : i32
    %681 = vector.broadcast %c0_i32_100 : i32 to vector<8x128xi32>
    %682 = arith.cmpi eq, %680, %681 : vector<8x128xi32>
    %683 = arith.select %682, %426, %667 : vector<8x128xi1>, vector<8x128xf32>
    %c1_i32_101 = arith.constant 1 : i32
    %684 = vector.broadcast %c1_i32_101 : i32 to vector<8x128xi32>
    %685 = arith.cmpi eq, %680, %684 : vector<8x128xi32>
    %686 = arith.select %685, %426, %670 : vector<8x128xi1>, vector<8x128xf32>
    %c2_i32_102 = arith.constant 2 : i32
    %687 = vector.broadcast %c2_i32_102 : i32 to vector<8x128xi32>
    %688 = arith.cmpi eq, %680, %687 : vector<8x128xi32>
    %689 = arith.select %688, %426, %674 : vector<8x128xi1>, vector<8x128xf32>
    %690 = arith.extui %678 : vector<8x128xi1> to vector<8x128xi32>
    %691 = arith.addi %676, %690 : vector<8x128xi32>
    %c-2_i32_103 = arith.constant -2 : i32
    %692 = vector.broadcast %c-2_i32_103 : i32 to vector<8x128xi32>
    %693 = arith.cmpi slt, %597, %692 : vector<8x128xi32>
    %c3_i32_104 = arith.constant 3 : i32
    %694 = vector.broadcast %c3_i32_104 : i32 to vector<8x128xi32>
    %695 = arith.select %693, %691, %694 : vector<8x128xi1>, vector<8x128xi32>
    %c0_i32_105 = arith.constant 0 : i32
    %696 = vector.broadcast %c0_i32_105 : i32 to vector<8x128xi32>
    %697 = arith.cmpi eq, %695, %696 : vector<8x128xi32>
    %698 = arith.select %697, %434, %683 : vector<8x128xi1>, vector<8x128xf32>
    %c1_i32_106 = arith.constant 1 : i32
    %699 = vector.broadcast %c1_i32_106 : i32 to vector<8x128xi32>
    %700 = arith.cmpi eq, %695, %699 : vector<8x128xi32>
    %701 = arith.select %700, %434, %686 : vector<8x128xi1>, vector<8x128xf32>
    %c2_i32_107 = arith.constant 2 : i32
    %702 = vector.broadcast %c2_i32_107 : i32 to vector<8x128xi32>
    %703 = arith.cmpi eq, %695, %702 : vector<8x128xi32>
    %704 = arith.select %703, %434, %689 : vector<8x128xi1>, vector<8x128xf32>
    %705 = arith.extui %693 : vector<8x128xi1> to vector<8x128xi32>
    %706 = arith.addi %691, %705 : vector<8x128xi32>
    %c-1_i32_108 = arith.constant -1 : i32
    %707 = vector.broadcast %c-1_i32_108 : i32 to vector<8x128xi32>
    %708 = arith.cmpi slt, %613, %707 : vector<8x128xi32>
    %c3_i32_109 = arith.constant 3 : i32
    %709 = vector.broadcast %c3_i32_109 : i32 to vector<8x128xi32>
    %710 = arith.select %708, %706, %709 : vector<8x128xi1>, vector<8x128xi32>
    %c0_i32_110 = arith.constant 0 : i32
    %711 = vector.broadcast %c0_i32_110 : i32 to vector<8x128xi32>
    %712 = arith.cmpi eq, %710, %711 : vector<8x128xi32>
    %713 = arith.select %712, %442, %698 : vector<8x128xi1>, vector<8x128xf32>
    %c1_i32_111 = arith.constant 1 : i32
    %714 = vector.broadcast %c1_i32_111 : i32 to vector<8x128xi32>
    %715 = arith.cmpi eq, %710, %714 : vector<8x128xi32>
    %716 = arith.select %715, %442, %701 : vector<8x128xi1>, vector<8x128xf32>
    %c2_i32_112 = arith.constant 2 : i32
    %717 = vector.broadcast %c2_i32_112 : i32 to vector<8x128xi32>
    %718 = arith.cmpi eq, %710, %717 : vector<8x128xi32>
    %719 = arith.select %718, %442, %704 : vector<8x128xi1>, vector<8x128xf32>
    %720 = arith.extui %708 : vector<8x128xi1> to vector<8x128xi32>
    %721 = arith.addi %706, %720 : vector<8x128xi32>
    %c0_i32_113 = arith.constant 0 : i32
    %722 = vector.broadcast %c0_i32_113 : i32 to vector<8x128xi32>
    %723 = arith.cmpi slt, %625, %722 : vector<8x128xi32>
    %c3_i32_114 = arith.constant 3 : i32
    %724 = vector.broadcast %c3_i32_114 : i32 to vector<8x128xi32>
    %725 = arith.select %723, %721, %724 : vector<8x128xi1>, vector<8x128xi32>
    %c0_i32_115 = arith.constant 0 : i32
    %726 = vector.broadcast %c0_i32_115 : i32 to vector<8x128xi32>
    %727 = arith.cmpi eq, %725, %726 : vector<8x128xi32>
    %728 = arith.select %727, %450, %713 : vector<8x128xi1>, vector<8x128xf32>
    %c1_i32_116 = arith.constant 1 : i32
    %729 = vector.broadcast %c1_i32_116 : i32 to vector<8x128xi32>
    %730 = arith.cmpi eq, %725, %729 : vector<8x128xi32>
    %731 = arith.select %730, %450, %716 : vector<8x128xi1>, vector<8x128xf32>
    %c2_i32_117 = arith.constant 2 : i32
    %732 = vector.broadcast %c2_i32_117 : i32 to vector<8x128xi32>
    %733 = arith.cmpi eq, %725, %732 : vector<8x128xi32>
    %734 = arith.select %733, %450, %719 : vector<8x128xi1>, vector<8x128xf32>
    %735 = arith.extui %723 : vector<8x128xi1> to vector<8x128xi32>
    %736 = arith.addi %721, %735 : vector<8x128xi32>
    %c1_i32_118 = arith.constant 1 : i32
    %737 = vector.broadcast %c1_i32_118 : i32 to vector<8x128xi32>
    %738 = arith.cmpi slt, %633, %737 : vector<8x128xi32>
    %c3_i32_119 = arith.constant 3 : i32
    %739 = vector.broadcast %c3_i32_119 : i32 to vector<8x128xi32>
    %740 = arith.select %738, %736, %739 : vector<8x128xi1>, vector<8x128xi32>
    %c0_i32_120 = arith.constant 0 : i32
    %741 = vector.broadcast %c0_i32_120 : i32 to vector<8x128xi32>
    %742 = arith.cmpi eq, %740, %741 : vector<8x128xi32>
    %743 = arith.select %742, %458, %728 : vector<8x128xi1>, vector<8x128xf32>
    %c1_i32_121 = arith.constant 1 : i32
    %744 = vector.broadcast %c1_i32_121 : i32 to vector<8x128xi32>
    %745 = arith.cmpi eq, %740, %744 : vector<8x128xi32>
    %746 = arith.select %745, %458, %731 : vector<8x128xi1>, vector<8x128xf32>
    %c2_i32_122 = arith.constant 2 : i32
    %747 = vector.broadcast %c2_i32_122 : i32 to vector<8x128xi32>
    %748 = arith.cmpi eq, %740, %747 : vector<8x128xi32>
    %749 = arith.select %748, %458, %734 : vector<8x128xi1>, vector<8x128xf32>
    %750 = arith.extui %738 : vector<8x128xi1> to vector<8x128xi32>
    %751 = arith.addi %736, %750 : vector<8x128xi32>
    %c2_i32_123 = arith.constant 2 : i32
    %752 = vector.broadcast %c2_i32_123 : i32 to vector<8x128xi32>
    %753 = arith.cmpi slt, %637, %752 : vector<8x128xi32>
    %c3_i32_124 = arith.constant 3 : i32
    %754 = vector.broadcast %c3_i32_124 : i32 to vector<8x128xi32>
    %755 = arith.select %753, %751, %754 : vector<8x128xi1>, vector<8x128xi32>
    %c1_i32_125 = arith.constant 1 : i32
    %756 = vector.broadcast %c1_i32_125 : i32 to vector<8x128xi32>
    %757 = arith.cmpi eq, %755, %756 : vector<8x128xi32>
    %758 = arith.select %757, %463, %746 : vector<8x128xi1>, vector<8x128xf32>
    %c2_i32_126 = arith.constant 2 : i32
    %759 = vector.broadcast %c2_i32_126 : i32 to vector<8x128xi32>
    %760 = arith.cmpi eq, %755, %759 : vector<8x128xi32>
    %761 = arith.select %760, %463, %749 : vector<8x128xi1>, vector<8x128xf32>
    %762 = arith.extui %753 : vector<8x128xi1> to vector<8x128xi32>
    %763 = arith.addi %751, %762 : vector<8x128xi32>
    %c3_i32_127 = arith.constant 3 : i32
    %764 = vector.broadcast %c3_i32_127 : i32 to vector<8x128xi32>
    %765 = arith.cmpi slt, %636, %764 : vector<8x128xi32>
    %c3_i32_128 = arith.constant 3 : i32
    %766 = vector.broadcast %c3_i32_128 : i32 to vector<8x128xi32>
    %767 = arith.select %765, %763, %766 : vector<8x128xi1>, vector<8x128xi32>
    %c2_i32_129 = arith.constant 2 : i32
    %768 = vector.broadcast %c2_i32_129 : i32 to vector<8x128xi32>
    %769 = arith.cmpi eq, %767, %768 : vector<8x128xi32>
    %770 = arith.select %769, %465, %761 : vector<8x128xi1>, vector<8x128xf32>
    %771 = vector.broadcast %10 : f32 to vector<8x128xf32>
    %772 = arith.addf %743, %771 : vector<8x128xf32>
    %773 = math.tanh %772 : vector<8x128xf32>
    %774 = vector.broadcast %10 : f32 to vector<8x128xf32>
    %775 = arith.addf %758, %774 : vector<8x128xf32>
    %776 = math.tanh %775 : vector<8x128xf32>
    %777 = vector.broadcast %10 : f32 to vector<8x128xf32>
    %778 = arith.addf %770, %777 : vector<8x128xf32>
    %779 = math.tanh %778 : vector<8x128xf32>
    %780 = vector.broadcast %8 : f32 to vector<8x128xf32>
    %781 = arith.mulf %13, %780 : vector<8x128xf32>
    %782 = vector.broadcast %7 : f32 to vector<8x128xf32>
    %783 = arith.mulf %13, %782 : vector<8x128xf32>
    %784 = vector.broadcast %8 : f32 to vector<8x128xf32>
    %785 = arith.mulf %15, %784 : vector<8x128xf32>
    %786 = arith.addf %783, %785 : vector<8x128xf32>
    %787 = vector.broadcast %6 : f32 to vector<8x128xf32>
    %788 = arith.mulf %13, %787 : vector<8x128xf32>
    %789 = vector.broadcast %7 : f32 to vector<8x128xf32>
    %790 = arith.mulf %15, %789 : vector<8x128xf32>
    %791 = arith.addf %788, %790 : vector<8x128xf32>
    %792 = vector.broadcast %8 : f32 to vector<8x128xf32>
    %793 = arith.mulf %17, %792 : vector<8x128xf32>
    %794 = arith.addf %791, %793 : vector<8x128xf32>
    %795 = vector.broadcast %6 : f32 to vector<8x128xf32>
    %796 = arith.mulf %15, %795 : vector<8x128xf32>
    %797 = vector.broadcast %7 : f32 to vector<8x128xf32>
    %798 = arith.mulf %17, %797 : vector<8x128xf32>
    %799 = arith.addf %796, %798 : vector<8x128xf32>
    %800 = vector.broadcast %8 : f32 to vector<8x128xf32>
    %801 = arith.mulf %19, %800 : vector<8x128xf32>
    %802 = arith.addf %799, %801 : vector<8x128xf32>
    %803 = vector.broadcast %6 : f32 to vector<8x128xf32>
    %804 = arith.mulf %17, %803 : vector<8x128xf32>
    %805 = vector.broadcast %7 : f32 to vector<8x128xf32>
    %806 = arith.mulf %19, %805 : vector<8x128xf32>
    %807 = arith.addf %804, %806 : vector<8x128xf32>
    %808 = vector.broadcast %8 : f32 to vector<8x128xf32>
    %809 = arith.mulf %21, %808 : vector<8x128xf32>
    %810 = arith.addf %807, %809 : vector<8x128xf32>
    %811 = vector.broadcast %6 : f32 to vector<8x128xf32>
    %812 = arith.mulf %19, %811 : vector<8x128xf32>
    %813 = vector.broadcast %7 : f32 to vector<8x128xf32>
    %814 = arith.mulf %21, %813 : vector<8x128xf32>
    %815 = arith.addf %812, %814 : vector<8x128xf32>
    %816 = vector.broadcast %8 : f32 to vector<8x128xf32>
    %817 = arith.mulf %23, %816 : vector<8x128xf32>
    %818 = arith.addf %815, %817 : vector<8x128xf32>
    %819 = vector.broadcast %6 : f32 to vector<8x128xf32>
    %820 = arith.mulf %21, %819 : vector<8x128xf32>
    %821 = vector.broadcast %7 : f32 to vector<8x128xf32>
    %822 = arith.mulf %23, %821 : vector<8x128xf32>
    %823 = arith.addf %820, %822 : vector<8x128xf32>
    %824 = vector.broadcast %8 : f32 to vector<8x128xf32>
    %825 = arith.mulf %25, %824 : vector<8x128xf32>
    %826 = arith.addf %823, %825 : vector<8x128xf32>
    %827 = vector.broadcast %6 : f32 to vector<8x128xf32>
    %828 = arith.mulf %23, %827 : vector<8x128xf32>
    %829 = vector.broadcast %7 : f32 to vector<8x128xf32>
    %830 = arith.mulf %25, %829 : vector<8x128xf32>
    %831 = arith.addf %828, %830 : vector<8x128xf32>
    %832 = vector.broadcast %8 : f32 to vector<8x128xf32>
    %833 = arith.mulf %27, %832 : vector<8x128xf32>
    %834 = arith.addf %831, %833 : vector<8x128xf32>
    %835 = vector.broadcast %6 : f32 to vector<8x128xf32>
    %836 = arith.mulf %25, %835 : vector<8x128xf32>
    %837 = vector.broadcast %7 : f32 to vector<8x128xf32>
    %838 = arith.mulf %27, %837 : vector<8x128xf32>
    %839 = arith.addf %836, %838 : vector<8x128xf32>
    %840 = vector.broadcast %6 : f32 to vector<8x128xf32>
    %841 = arith.mulf %27, %840 : vector<8x128xf32>
    %842 = arith.cmpf oge, %781, %786 : vector<8x128xf32>
    %843 = arith.extui %842 : vector<8x128xi1> to vector<8x128xi32>
    %c0_i32_130 = arith.constant 0 : i32
    %844 = vector.broadcast %c0_i32_130 : i32 to vector<8x128xi32>
    %845 = arith.subi %844, %843 : vector<8x128xi32>
    %846 = arith.cmpf oge, %781, %794 : vector<8x128xf32>
    %847 = arith.extui %846 : vector<8x128xi1> to vector<8x128xi32>
    %848 = arith.subi %845, %847 : vector<8x128xi32>
    %849 = arith.cmpf oge, %781, %802 : vector<8x128xf32>
    %850 = arith.extui %849 : vector<8x128xi1> to vector<8x128xi32>
    %851 = arith.subi %848, %850 : vector<8x128xi32>
    %852 = arith.cmpf oge, %781, %810 : vector<8x128xf32>
    %853 = arith.extui %852 : vector<8x128xi1> to vector<8x128xi32>
    %854 = arith.subi %851, %853 : vector<8x128xi32>
    %855 = arith.cmpf oge, %781, %818 : vector<8x128xf32>
    %856 = arith.extui %855 : vector<8x128xi1> to vector<8x128xi32>
    %857 = arith.subi %854, %856 : vector<8x128xi32>
    %858 = arith.cmpf oge, %781, %826 : vector<8x128xf32>
    %859 = arith.extui %858 : vector<8x128xi1> to vector<8x128xi32>
    %860 = arith.subi %857, %859 : vector<8x128xi32>
    %861 = arith.cmpf oge, %781, %834 : vector<8x128xf32>
    %862 = arith.extui %861 : vector<8x128xi1> to vector<8x128xi32>
    %863 = arith.subi %860, %862 : vector<8x128xi32>
    %864 = arith.cmpf oge, %781, %839 : vector<8x128xf32>
    %865 = arith.extui %864 : vector<8x128xi1> to vector<8x128xi32>
    %866 = arith.subi %863, %865 : vector<8x128xi32>
    %867 = arith.cmpf oge, %781, %841 : vector<8x128xf32>
    %868 = arith.extui %867 : vector<8x128xi1> to vector<8x128xi32>
    %869 = arith.subi %866, %868 : vector<8x128xi32>
    %870 = arith.cmpf oge, %786, %794 : vector<8x128xf32>
    %871 = arith.extui %870 : vector<8x128xi1> to vector<8x128xi32>
    %872 = arith.addi %847, %871 : vector<8x128xi32>
    %873 = arith.subi %843, %871 : vector<8x128xi32>
    %874 = arith.cmpf oge, %786, %802 : vector<8x128xf32>
    %875 = arith.extui %874 : vector<8x128xi1> to vector<8x128xi32>
    %876 = arith.addi %850, %875 : vector<8x128xi32>
    %877 = arith.subi %873, %875 : vector<8x128xi32>
    %878 = arith.cmpf oge, %786, %810 : vector<8x128xf32>
    %879 = arith.extui %878 : vector<8x128xi1> to vector<8x128xi32>
    %880 = arith.addi %853, %879 : vector<8x128xi32>
    %881 = arith.subi %877, %879 : vector<8x128xi32>
    %882 = arith.cmpf oge, %786, %818 : vector<8x128xf32>
    %883 = arith.extui %882 : vector<8x128xi1> to vector<8x128xi32>
    %884 = arith.addi %856, %883 : vector<8x128xi32>
    %885 = arith.subi %881, %883 : vector<8x128xi32>
    %886 = arith.cmpf oge, %786, %826 : vector<8x128xf32>
    %887 = arith.extui %886 : vector<8x128xi1> to vector<8x128xi32>
    %888 = arith.addi %859, %887 : vector<8x128xi32>
    %889 = arith.subi %885, %887 : vector<8x128xi32>
    %890 = arith.cmpf oge, %786, %834 : vector<8x128xf32>
    %891 = arith.extui %890 : vector<8x128xi1> to vector<8x128xi32>
    %892 = arith.addi %862, %891 : vector<8x128xi32>
    %893 = arith.subi %889, %891 : vector<8x128xi32>
    %894 = arith.cmpf oge, %786, %839 : vector<8x128xf32>
    %895 = arith.extui %894 : vector<8x128xi1> to vector<8x128xi32>
    %896 = arith.addi %865, %895 : vector<8x128xi32>
    %897 = arith.subi %893, %895 : vector<8x128xi32>
    %898 = arith.cmpf oge, %786, %841 : vector<8x128xf32>
    %899 = arith.extui %898 : vector<8x128xi1> to vector<8x128xi32>
    %900 = arith.addi %868, %899 : vector<8x128xi32>
    %901 = arith.subi %897, %899 : vector<8x128xi32>
    %902 = arith.cmpf oge, %794, %802 : vector<8x128xf32>
    %903 = arith.extui %902 : vector<8x128xi1> to vector<8x128xi32>
    %904 = arith.addi %876, %903 : vector<8x128xi32>
    %905 = arith.subi %872, %903 : vector<8x128xi32>
    %906 = arith.cmpf oge, %794, %810 : vector<8x128xf32>
    %907 = arith.extui %906 : vector<8x128xi1> to vector<8x128xi32>
    %908 = arith.addi %880, %907 : vector<8x128xi32>
    %909 = arith.subi %905, %907 : vector<8x128xi32>
    %910 = arith.cmpf oge, %794, %818 : vector<8x128xf32>
    %911 = arith.extui %910 : vector<8x128xi1> to vector<8x128xi32>
    %912 = arith.addi %884, %911 : vector<8x128xi32>
    %913 = arith.subi %909, %911 : vector<8x128xi32>
    %914 = arith.cmpf oge, %794, %826 : vector<8x128xf32>
    %915 = arith.extui %914 : vector<8x128xi1> to vector<8x128xi32>
    %916 = arith.addi %888, %915 : vector<8x128xi32>
    %917 = arith.subi %913, %915 : vector<8x128xi32>
    %918 = arith.cmpf oge, %794, %834 : vector<8x128xf32>
    %919 = arith.extui %918 : vector<8x128xi1> to vector<8x128xi32>
    %920 = arith.addi %892, %919 : vector<8x128xi32>
    %921 = arith.subi %917, %919 : vector<8x128xi32>
    %922 = arith.cmpf oge, %794, %839 : vector<8x128xf32>
    %923 = arith.extui %922 : vector<8x128xi1> to vector<8x128xi32>
    %924 = arith.addi %896, %923 : vector<8x128xi32>
    %925 = arith.subi %921, %923 : vector<8x128xi32>
    %926 = arith.cmpf oge, %794, %841 : vector<8x128xf32>
    %927 = arith.extui %926 : vector<8x128xi1> to vector<8x128xi32>
    %928 = arith.addi %900, %927 : vector<8x128xi32>
    %929 = arith.subi %925, %927 : vector<8x128xi32>
    %930 = arith.cmpf oge, %802, %810 : vector<8x128xf32>
    %931 = arith.extui %930 : vector<8x128xi1> to vector<8x128xi32>
    %932 = arith.addi %908, %931 : vector<8x128xi32>
    %933 = arith.subi %904, %931 : vector<8x128xi32>
    %934 = arith.cmpf oge, %802, %818 : vector<8x128xf32>
    %935 = arith.extui %934 : vector<8x128xi1> to vector<8x128xi32>
    %936 = arith.addi %912, %935 : vector<8x128xi32>
    %937 = arith.subi %933, %935 : vector<8x128xi32>
    %938 = arith.cmpf oge, %802, %826 : vector<8x128xf32>
    %939 = arith.extui %938 : vector<8x128xi1> to vector<8x128xi32>
    %940 = arith.addi %916, %939 : vector<8x128xi32>
    %941 = arith.subi %937, %939 : vector<8x128xi32>
    %942 = arith.cmpf oge, %802, %834 : vector<8x128xf32>
    %943 = arith.extui %942 : vector<8x128xi1> to vector<8x128xi32>
    %944 = arith.addi %920, %943 : vector<8x128xi32>
    %945 = arith.subi %941, %943 : vector<8x128xi32>
    %946 = arith.cmpf oge, %802, %839 : vector<8x128xf32>
    %947 = arith.extui %946 : vector<8x128xi1> to vector<8x128xi32>
    %948 = arith.addi %924, %947 : vector<8x128xi32>
    %949 = arith.subi %945, %947 : vector<8x128xi32>
    %950 = arith.cmpf oge, %802, %841 : vector<8x128xf32>
    %951 = arith.extui %950 : vector<8x128xi1> to vector<8x128xi32>
    %952 = arith.addi %928, %951 : vector<8x128xi32>
    %953 = arith.subi %949, %951 : vector<8x128xi32>
    %954 = arith.cmpf oge, %810, %818 : vector<8x128xf32>
    %955 = arith.extui %954 : vector<8x128xi1> to vector<8x128xi32>
    %956 = arith.addi %936, %955 : vector<8x128xi32>
    %957 = arith.subi %932, %955 : vector<8x128xi32>
    %958 = arith.cmpf oge, %810, %826 : vector<8x128xf32>
    %959 = arith.extui %958 : vector<8x128xi1> to vector<8x128xi32>
    %960 = arith.addi %940, %959 : vector<8x128xi32>
    %961 = arith.subi %957, %959 : vector<8x128xi32>
    %962 = arith.cmpf oge, %810, %834 : vector<8x128xf32>
    %963 = arith.extui %962 : vector<8x128xi1> to vector<8x128xi32>
    %964 = arith.addi %944, %963 : vector<8x128xi32>
    %965 = arith.subi %961, %963 : vector<8x128xi32>
    %966 = arith.cmpf oge, %810, %839 : vector<8x128xf32>
    %967 = arith.extui %966 : vector<8x128xi1> to vector<8x128xi32>
    %968 = arith.addi %948, %967 : vector<8x128xi32>
    %969 = arith.subi %965, %967 : vector<8x128xi32>
    %970 = arith.cmpf oge, %810, %841 : vector<8x128xf32>
    %971 = arith.extui %970 : vector<8x128xi1> to vector<8x128xi32>
    %972 = arith.addi %952, %971 : vector<8x128xi32>
    %973 = arith.subi %969, %971 : vector<8x128xi32>
    %974 = arith.cmpf oge, %818, %826 : vector<8x128xf32>
    %975 = arith.extui %974 : vector<8x128xi1> to vector<8x128xi32>
    %976 = arith.addi %960, %975 : vector<8x128xi32>
    %977 = arith.subi %956, %975 : vector<8x128xi32>
    %978 = arith.cmpf oge, %818, %834 : vector<8x128xf32>
    %979 = arith.extui %978 : vector<8x128xi1> to vector<8x128xi32>
    %980 = arith.addi %964, %979 : vector<8x128xi32>
    %981 = arith.subi %977, %979 : vector<8x128xi32>
    %982 = arith.cmpf oge, %818, %839 : vector<8x128xf32>
    %983 = arith.extui %982 : vector<8x128xi1> to vector<8x128xi32>
    %984 = arith.addi %968, %983 : vector<8x128xi32>
    %985 = arith.subi %981, %983 : vector<8x128xi32>
    %986 = arith.cmpf oge, %818, %841 : vector<8x128xf32>
    %987 = arith.extui %986 : vector<8x128xi1> to vector<8x128xi32>
    %988 = arith.addi %972, %987 : vector<8x128xi32>
    %989 = arith.subi %985, %987 : vector<8x128xi32>
    %990 = arith.cmpf oge, %826, %834 : vector<8x128xf32>
    %991 = arith.extui %990 : vector<8x128xi1> to vector<8x128xi32>
    %992 = arith.addi %980, %991 : vector<8x128xi32>
    %993 = arith.subi %976, %991 : vector<8x128xi32>
    %994 = arith.cmpf oge, %826, %839 : vector<8x128xf32>
    %995 = arith.extui %994 : vector<8x128xi1> to vector<8x128xi32>
    %996 = arith.addi %984, %995 : vector<8x128xi32>
    %997 = arith.subi %993, %995 : vector<8x128xi32>
    %998 = arith.cmpf oge, %826, %841 : vector<8x128xf32>
    %999 = arith.extui %998 : vector<8x128xi1> to vector<8x128xi32>
    %1000 = arith.addi %988, %999 : vector<8x128xi32>
    %1001 = arith.subi %997, %999 : vector<8x128xi32>
    %1002 = arith.cmpf oge, %834, %839 : vector<8x128xf32>
    %1003 = arith.extui %1002 : vector<8x128xi1> to vector<8x128xi32>
    %1004 = arith.addi %996, %1003 : vector<8x128xi32>
    %1005 = arith.subi %992, %1003 : vector<8x128xi32>
    %1006 = arith.cmpf oge, %834, %841 : vector<8x128xf32>
    %1007 = arith.extui %1006 : vector<8x128xi1> to vector<8x128xi32>
    %1008 = arith.addi %1000, %1007 : vector<8x128xi32>
    %1009 = arith.subi %1005, %1007 : vector<8x128xi32>
    %1010 = arith.cmpf oge, %839, %841 : vector<8x128xf32>
    %1011 = arith.extui %1010 : vector<8x128xi1> to vector<8x128xi32>
    %1012 = arith.addi %1008, %1011 : vector<8x128xi32>
    %1013 = arith.subi %1004, %1011 : vector<8x128xi32>
    %c-6_i32_131 = arith.constant -6 : i32
    %1014 = vector.broadcast %c-6_i32_131 : i32 to vector<8x128xi32>
    %1015 = arith.cmpi slt, %869, %1014 : vector<8x128xi32>
    %c0_i32_132 = arith.constant 0 : i32
    %c3_i32_133 = arith.constant 3 : i32
    %1016 = vector.broadcast %c0_i32_132 : i32 to vector<8x128xi32>
    %1017 = vector.broadcast %c3_i32_133 : i32 to vector<8x128xi32>
    %1018 = arith.select %1015, %1016, %1017 : vector<8x128xi1>, vector<8x128xi32>
    %c0_i32_134 = arith.constant 0 : i32
    %1019 = vector.broadcast %c0_i32_134 : i32 to vector<8x128xi32>
    %1020 = arith.cmpi eq, %1018, %1019 : vector<8x128xi32>
    %cst_135 = arith.constant 0.000000e+00 : f32
    %1021 = vector.broadcast %cst_135 : f32 to vector<8x128xf32>
    %1022 = arith.select %1020, %781, %1021 : vector<8x128xi1>, vector<8x128xf32>
    %1023 = arith.extui %1015 : vector<8x128xi1> to vector<8x128xi32>
    %c-5_i32_136 = arith.constant -5 : i32
    %1024 = vector.broadcast %c-5_i32_136 : i32 to vector<8x128xi32>
    %1025 = arith.cmpi slt, %901, %1024 : vector<8x128xi32>
    %c3_i32_137 = arith.constant 3 : i32
    %1026 = vector.broadcast %c3_i32_137 : i32 to vector<8x128xi32>
    %1027 = arith.select %1025, %1023, %1026 : vector<8x128xi1>, vector<8x128xi32>
    %c0_i32_138 = arith.constant 0 : i32
    %1028 = vector.broadcast %c0_i32_138 : i32 to vector<8x128xi32>
    %1029 = arith.cmpi eq, %1027, %1028 : vector<8x128xi32>
    %1030 = arith.select %1029, %786, %1022 : vector<8x128xi1>, vector<8x128xf32>
    %c1_i32_139 = arith.constant 1 : i32
    %1031 = vector.broadcast %c1_i32_139 : i32 to vector<8x128xi32>
    %1032 = arith.cmpi eq, %1027, %1031 : vector<8x128xi32>
    %cst_140 = arith.constant 0.000000e+00 : f32
    %1033 = vector.broadcast %cst_140 : f32 to vector<8x128xf32>
    %1034 = arith.select %1032, %786, %1033 : vector<8x128xi1>, vector<8x128xf32>
    %1035 = arith.extui %1025 : vector<8x128xi1> to vector<8x128xi32>
    %1036 = arith.addi %1023, %1035 : vector<8x128xi32>
    %c-4_i32_141 = arith.constant -4 : i32
    %1037 = vector.broadcast %c-4_i32_141 : i32 to vector<8x128xi32>
    %1038 = arith.cmpi slt, %929, %1037 : vector<8x128xi32>
    %c3_i32_142 = arith.constant 3 : i32
    %1039 = vector.broadcast %c3_i32_142 : i32 to vector<8x128xi32>
    %1040 = arith.select %1038, %1036, %1039 : vector<8x128xi1>, vector<8x128xi32>
    %c0_i32_143 = arith.constant 0 : i32
    %1041 = vector.broadcast %c0_i32_143 : i32 to vector<8x128xi32>
    %1042 = arith.cmpi eq, %1040, %1041 : vector<8x128xi32>
    %1043 = arith.select %1042, %794, %1030 : vector<8x128xi1>, vector<8x128xf32>
    %c1_i32_144 = arith.constant 1 : i32
    %1044 = vector.broadcast %c1_i32_144 : i32 to vector<8x128xi32>
    %1045 = arith.cmpi eq, %1040, %1044 : vector<8x128xi32>
    %1046 = arith.select %1045, %794, %1034 : vector<8x128xi1>, vector<8x128xf32>
    %c2_i32_145 = arith.constant 2 : i32
    %1047 = vector.broadcast %c2_i32_145 : i32 to vector<8x128xi32>
    %1048 = arith.cmpi eq, %1040, %1047 : vector<8x128xi32>
    %cst_146 = arith.constant 0.000000e+00 : f32
    %1049 = vector.broadcast %cst_146 : f32 to vector<8x128xf32>
    %1050 = arith.select %1048, %794, %1049 : vector<8x128xi1>, vector<8x128xf32>
    %1051 = arith.extui %1038 : vector<8x128xi1> to vector<8x128xi32>
    %1052 = arith.addi %1036, %1051 : vector<8x128xi32>
    %c-3_i32_147 = arith.constant -3 : i32
    %1053 = vector.broadcast %c-3_i32_147 : i32 to vector<8x128xi32>
    %1054 = arith.cmpi slt, %953, %1053 : vector<8x128xi32>
    %c3_i32_148 = arith.constant 3 : i32
    %1055 = vector.broadcast %c3_i32_148 : i32 to vector<8x128xi32>
    %1056 = arith.select %1054, %1052, %1055 : vector<8x128xi1>, vector<8x128xi32>
    %c0_i32_149 = arith.constant 0 : i32
    %1057 = vector.broadcast %c0_i32_149 : i32 to vector<8x128xi32>
    %1058 = arith.cmpi eq, %1056, %1057 : vector<8x128xi32>
    %1059 = arith.select %1058, %802, %1043 : vector<8x128xi1>, vector<8x128xf32>
    %c1_i32_150 = arith.constant 1 : i32
    %1060 = vector.broadcast %c1_i32_150 : i32 to vector<8x128xi32>
    %1061 = arith.cmpi eq, %1056, %1060 : vector<8x128xi32>
    %1062 = arith.select %1061, %802, %1046 : vector<8x128xi1>, vector<8x128xf32>
    %c2_i32_151 = arith.constant 2 : i32
    %1063 = vector.broadcast %c2_i32_151 : i32 to vector<8x128xi32>
    %1064 = arith.cmpi eq, %1056, %1063 : vector<8x128xi32>
    %1065 = arith.select %1064, %802, %1050 : vector<8x128xi1>, vector<8x128xf32>
    %1066 = arith.extui %1054 : vector<8x128xi1> to vector<8x128xi32>
    %1067 = arith.addi %1052, %1066 : vector<8x128xi32>
    %c-2_i32_152 = arith.constant -2 : i32
    %1068 = vector.broadcast %c-2_i32_152 : i32 to vector<8x128xi32>
    %1069 = arith.cmpi slt, %973, %1068 : vector<8x128xi32>
    %c3_i32_153 = arith.constant 3 : i32
    %1070 = vector.broadcast %c3_i32_153 : i32 to vector<8x128xi32>
    %1071 = arith.select %1069, %1067, %1070 : vector<8x128xi1>, vector<8x128xi32>
    %c0_i32_154 = arith.constant 0 : i32
    %1072 = vector.broadcast %c0_i32_154 : i32 to vector<8x128xi32>
    %1073 = arith.cmpi eq, %1071, %1072 : vector<8x128xi32>
    %1074 = arith.select %1073, %810, %1059 : vector<8x128xi1>, vector<8x128xf32>
    %c1_i32_155 = arith.constant 1 : i32
    %1075 = vector.broadcast %c1_i32_155 : i32 to vector<8x128xi32>
    %1076 = arith.cmpi eq, %1071, %1075 : vector<8x128xi32>
    %1077 = arith.select %1076, %810, %1062 : vector<8x128xi1>, vector<8x128xf32>
    %c2_i32_156 = arith.constant 2 : i32
    %1078 = vector.broadcast %c2_i32_156 : i32 to vector<8x128xi32>
    %1079 = arith.cmpi eq, %1071, %1078 : vector<8x128xi32>
    %1080 = arith.select %1079, %810, %1065 : vector<8x128xi1>, vector<8x128xf32>
    %1081 = arith.extui %1069 : vector<8x128xi1> to vector<8x128xi32>
    %1082 = arith.addi %1067, %1081 : vector<8x128xi32>
    %c-1_i32_157 = arith.constant -1 : i32
    %1083 = vector.broadcast %c-1_i32_157 : i32 to vector<8x128xi32>
    %1084 = arith.cmpi slt, %989, %1083 : vector<8x128xi32>
    %c3_i32_158 = arith.constant 3 : i32
    %1085 = vector.broadcast %c3_i32_158 : i32 to vector<8x128xi32>
    %1086 = arith.select %1084, %1082, %1085 : vector<8x128xi1>, vector<8x128xi32>
    %c0_i32_159 = arith.constant 0 : i32
    %1087 = vector.broadcast %c0_i32_159 : i32 to vector<8x128xi32>
    %1088 = arith.cmpi eq, %1086, %1087 : vector<8x128xi32>
    %1089 = arith.select %1088, %818, %1074 : vector<8x128xi1>, vector<8x128xf32>
    %c1_i32_160 = arith.constant 1 : i32
    %1090 = vector.broadcast %c1_i32_160 : i32 to vector<8x128xi32>
    %1091 = arith.cmpi eq, %1086, %1090 : vector<8x128xi32>
    %1092 = arith.select %1091, %818, %1077 : vector<8x128xi1>, vector<8x128xf32>
    %c2_i32_161 = arith.constant 2 : i32
    %1093 = vector.broadcast %c2_i32_161 : i32 to vector<8x128xi32>
    %1094 = arith.cmpi eq, %1086, %1093 : vector<8x128xi32>
    %1095 = arith.select %1094, %818, %1080 : vector<8x128xi1>, vector<8x128xf32>
    %1096 = arith.extui %1084 : vector<8x128xi1> to vector<8x128xi32>
    %1097 = arith.addi %1082, %1096 : vector<8x128xi32>
    %c0_i32_162 = arith.constant 0 : i32
    %1098 = vector.broadcast %c0_i32_162 : i32 to vector<8x128xi32>
    %1099 = arith.cmpi slt, %1001, %1098 : vector<8x128xi32>
    %c3_i32_163 = arith.constant 3 : i32
    %1100 = vector.broadcast %c3_i32_163 : i32 to vector<8x128xi32>
    %1101 = arith.select %1099, %1097, %1100 : vector<8x128xi1>, vector<8x128xi32>
    %c0_i32_164 = arith.constant 0 : i32
    %1102 = vector.broadcast %c0_i32_164 : i32 to vector<8x128xi32>
    %1103 = arith.cmpi eq, %1101, %1102 : vector<8x128xi32>
    %1104 = arith.select %1103, %826, %1089 : vector<8x128xi1>, vector<8x128xf32>
    %c1_i32_165 = arith.constant 1 : i32
    %1105 = vector.broadcast %c1_i32_165 : i32 to vector<8x128xi32>
    %1106 = arith.cmpi eq, %1101, %1105 : vector<8x128xi32>
    %1107 = arith.select %1106, %826, %1092 : vector<8x128xi1>, vector<8x128xf32>
    %c2_i32_166 = arith.constant 2 : i32
    %1108 = vector.broadcast %c2_i32_166 : i32 to vector<8x128xi32>
    %1109 = arith.cmpi eq, %1101, %1108 : vector<8x128xi32>
    %1110 = arith.select %1109, %826, %1095 : vector<8x128xi1>, vector<8x128xf32>
    %1111 = arith.extui %1099 : vector<8x128xi1> to vector<8x128xi32>
    %1112 = arith.addi %1097, %1111 : vector<8x128xi32>
    %c1_i32_167 = arith.constant 1 : i32
    %1113 = vector.broadcast %c1_i32_167 : i32 to vector<8x128xi32>
    %1114 = arith.cmpi slt, %1009, %1113 : vector<8x128xi32>
    %c3_i32_168 = arith.constant 3 : i32
    %1115 = vector.broadcast %c3_i32_168 : i32 to vector<8x128xi32>
    %1116 = arith.select %1114, %1112, %1115 : vector<8x128xi1>, vector<8x128xi32>
    %c0_i32_169 = arith.constant 0 : i32
    %1117 = vector.broadcast %c0_i32_169 : i32 to vector<8x128xi32>
    %1118 = arith.cmpi eq, %1116, %1117 : vector<8x128xi32>
    %1119 = arith.select %1118, %834, %1104 : vector<8x128xi1>, vector<8x128xf32>
    %c1_i32_170 = arith.constant 1 : i32
    %1120 = vector.broadcast %c1_i32_170 : i32 to vector<8x128xi32>
    %1121 = arith.cmpi eq, %1116, %1120 : vector<8x128xi32>
    %1122 = arith.select %1121, %834, %1107 : vector<8x128xi1>, vector<8x128xf32>
    %c2_i32_171 = arith.constant 2 : i32
    %1123 = vector.broadcast %c2_i32_171 : i32 to vector<8x128xi32>
    %1124 = arith.cmpi eq, %1116, %1123 : vector<8x128xi32>
    %1125 = arith.select %1124, %834, %1110 : vector<8x128xi1>, vector<8x128xf32>
    %1126 = arith.extui %1114 : vector<8x128xi1> to vector<8x128xi32>
    %1127 = arith.addi %1112, %1126 : vector<8x128xi32>
    %c2_i32_172 = arith.constant 2 : i32
    %1128 = vector.broadcast %c2_i32_172 : i32 to vector<8x128xi32>
    %1129 = arith.cmpi slt, %1013, %1128 : vector<8x128xi32>
    %c3_i32_173 = arith.constant 3 : i32
    %1130 = vector.broadcast %c3_i32_173 : i32 to vector<8x128xi32>
    %1131 = arith.select %1129, %1127, %1130 : vector<8x128xi1>, vector<8x128xi32>
    %c1_i32_174 = arith.constant 1 : i32
    %1132 = vector.broadcast %c1_i32_174 : i32 to vector<8x128xi32>
    %1133 = arith.cmpi eq, %1131, %1132 : vector<8x128xi32>
    %1134 = arith.select %1133, %839, %1122 : vector<8x128xi1>, vector<8x128xf32>
    %c2_i32_175 = arith.constant 2 : i32
    %1135 = vector.broadcast %c2_i32_175 : i32 to vector<8x128xi32>
    %1136 = arith.cmpi eq, %1131, %1135 : vector<8x128xi32>
    %1137 = arith.select %1136, %839, %1125 : vector<8x128xi1>, vector<8x128xf32>
    %1138 = arith.extui %1129 : vector<8x128xi1> to vector<8x128xi32>
    %1139 = arith.addi %1127, %1138 : vector<8x128xi32>
    %c3_i32_176 = arith.constant 3 : i32
    %1140 = vector.broadcast %c3_i32_176 : i32 to vector<8x128xi32>
    %1141 = arith.cmpi slt, %1012, %1140 : vector<8x128xi32>
    %c3_i32_177 = arith.constant 3 : i32
    %1142 = vector.broadcast %c3_i32_177 : i32 to vector<8x128xi32>
    %1143 = arith.select %1141, %1139, %1142 : vector<8x128xi1>, vector<8x128xi32>
    %c2_i32_178 = arith.constant 2 : i32
    %1144 = vector.broadcast %c2_i32_178 : i32 to vector<8x128xi32>
    %1145 = arith.cmpi eq, %1143, %1144 : vector<8x128xi32>
    %1146 = arith.select %1145, %841, %1137 : vector<8x128xi1>, vector<8x128xf32>
    %1147 = vector.broadcast %11 : f32 to vector<8x128xf32>
    %1148 = arith.addf %1119, %1147 : vector<8x128xf32>
    %1149 = math.tanh %1148 : vector<8x128xf32>
    %1150 = vector.broadcast %11 : f32 to vector<8x128xf32>
    %1151 = arith.addf %1134, %1150 : vector<8x128xf32>
    %1152 = math.tanh %1151 : vector<8x128xf32>
    %1153 = vector.broadcast %11 : f32 to vector<8x128xf32>
    %1154 = arith.addf %1146, %1153 : vector<8x128xf32>
    %1155 = math.tanh %1154 : vector<8x128xf32>
    %c0_179 = arith.constant 0 : index
    %c0_180 = arith.constant 0 : index
    %c0_181 = arith.constant 0 : index
    %c0_182 = arith.constant 0 : index
    %c0_183 = arith.constant 0 : index
    %1156 = vector.load %arg4[%c0_179, %c0_180, %c0_181, %c0_182, %c0_183] : memref<1x3x3x8x128xf32, #tpu.memory_space<vmem>>, vector<1x1x1x8x128xf32>
    %1157 = vector.shape_cast %1156 : vector<1x1x1x8x128xf32> to vector<8x128xf32>
    %1158 = vector.shape_cast %397 : vector<8x128xf32> to vector<1x1x1x8x128xf32>
    tpu.vector_store %arg4[%c0_179, %c0_180, %c0_181, %c0_182, %c0_183], %1158 {strides = array<i32>} : memref<1x3x3x8x128xf32, #tpu.memory_space<vmem>>, vector<1x1x1x8x128xf32>,
    %c0_184 = arith.constant 0 : index
    %c0_185 = arith.constant 0 : index
    %c1_186 = arith.constant 1 : index
    %c0_187 = arith.constant 0 : index
    %c0_188 = arith.constant 0 : index
    %1159 = vector.load %arg4[%c0_184, %c0_185, %c1_186, %c0_187, %c0_188] : memref<1x3x3x8x128xf32, #tpu.memory_space<vmem>>, vector<1x1x1x8x128xf32>
    %1160 = vector.shape_cast %1159 : vector<1x1x1x8x128xf32> to vector<8x128xf32>
    %1161 = vector.shape_cast %400 : vector<8x128xf32> to vector<1x1x1x8x128xf32>
    tpu.vector_store %arg4[%c0_184, %c0_185, %c1_186, %c0_187, %c0_188], %1161 {strides = array<i32>} : memref<1x3x3x8x128xf32, #tpu.memory_space<vmem>>, vector<1x1x1x8x128xf32>,
    %c0_189 = arith.constant 0 : index
    %c0_190 = arith.constant 0 : index
    %c2_191 = arith.constant 2 : index
    %c0_192 = arith.constant 0 : index
    %c0_193 = arith.constant 0 : index
    %1162 = vector.load %arg4[%c0_189, %c0_190, %c2_191, %c0_192, %c0_193] : memref<1x3x3x8x128xf32, #tpu.memory_space<vmem>>, vector<1x1x1x8x128xf32>
    %1163 = vector.shape_cast %1162 : vector<1x1x1x8x128xf32> to vector<8x128xf32>
    %1164 = vector.shape_cast %403 : vector<8x128xf32> to vector<1x1x1x8x128xf32>
    tpu.vector_store %arg4[%c0_189, %c0_190, %c2_191, %c0_192, %c0_193], %1164 {strides = array<i32>} : memref<1x3x3x8x128xf32, #tpu.memory_space<vmem>>, vector<1x1x1x8x128xf32>,
    %c0_194 = arith.constant 0 : index
    %c1_195 = arith.constant 1 : index
    %c0_196 = arith.constant 0 : index
    %c0_197 = arith.constant 0 : index
    %c0_198 = arith.constant 0 : index
    %1165 = vector.load %arg4[%c0_194, %c1_195, %c0_196, %c0_197, %c0_198] : memref<1x3x3x8x128xf32, #tpu.memory_space<vmem>>, vector<1x1x1x8x128xf32>
    %1166 = vector.shape_cast %1165 : vector<1x1x1x8x128xf32> to vector<8x128xf32>
    %1167 = vector.shape_cast %773 : vector<8x128xf32> to vector<1x1x1x8x128xf32>
    tpu.vector_store %arg4[%c0_194, %c1_195, %c0_196, %c0_197, %c0_198], %1167 {strides = array<i32>} : memref<1x3x3x8x128xf32, #tpu.memory_space<vmem>>, vector<1x1x1x8x128xf32>,
    %c0_199 = arith.constant 0 : index
    %c1_200 = arith.constant 1 : index
    %c1_201 = arith.constant 1 : index
    %c0_202 = arith.constant 0 : index
    %c0_203 = arith.constant 0 : index
    %1168 = vector.load %arg4[%c0_199, %c1_200, %c1_201, %c0_202, %c0_203] : memref<1x3x3x8x128xf32, #tpu.memory_space<vmem>>, vector<1x1x1x8x128xf32>
    %1169 = vector.shape_cast %1168 : vector<1x1x1x8x128xf32> to vector<8x128xf32>
    %1170 = vector.shape_cast %776 : vector<8x128xf32> to vector<1x1x1x8x128xf32>
    tpu.vector_store %arg4[%c0_199, %c1_200, %c1_201, %c0_202, %c0_203], %1170 {strides = array<i32>} : memref<1x3x3x8x128xf32, #tpu.memory_space<vmem>>, vector<1x1x1x8x128xf32>,
    %c0_204 = arith.constant 0 : index
    %c1_205 = arith.constant 1 : index
    %c2_206 = arith.constant 2 : index
    %c0_207 = arith.constant 0 : index
    %c0_208 = arith.constant 0 : index
    %1171 = vector.load %arg4[%c0_204, %c1_205, %c2_206, %c0_207, %c0_208] : memref<1x3x3x8x128xf32, #tpu.memory_space<vmem>>, vector<1x1x1x8x128xf32>
    %1172 = vector.shape_cast %1171 : vector<1x1x1x8x128xf32> to vector<8x128xf32>
    %1173 = vector.shape_cast %779 : vector<8x128xf32> to vector<1x1x1x8x128xf32>
    tpu.vector_store %arg4[%c0_204, %c1_205, %c2_206, %c0_207, %c0_208], %1173 {strides = array<i32>} : memref<1x3x3x8x128xf32, #tpu.memory_space<vmem>>, vector<1x1x1x8x128xf32>,
    %c0_209 = arith.constant 0 : index
    %c2_210 = arith.constant 2 : index
    %c0_211 = arith.constant 0 : index
    %c0_212 = arith.constant 0 : index
    %c0_213 = arith.constant 0 : index
    %1174 = vector.load %arg4[%c0_209, %c2_210, %c0_211, %c0_212, %c0_213] : memref<1x3x3x8x128xf32, #tpu.memory_space<vmem>>, vector<1x1x1x8x128xf32>
    %1175 = vector.shape_cast %1174 : vector<1x1x1x8x128xf32> to vector<8x128xf32>
    %1176 = vector.shape_cast %1149 : vector<8x128xf32> to vector<1x1x1x8x128xf32>
    tpu.vector_store %arg4[%c0_209, %c2_210, %c0_211, %c0_212, %c0_213], %1176 {strides = array<i32>} : memref<1x3x3x8x128xf32, #tpu.memory_space<vmem>>, vector<1x1x1x8x128xf32>,
    %c0_214 = arith.constant 0 : index
    %c2_215 = arith.constant 2 : index
    %c1_216 = arith.constant 1 : index
    %c0_217 = arith.constant 0 : index
    %c0_218 = arith.constant 0 : index
    %1177 = vector.load %arg4[%c0_214, %c2_215, %c1_216, %c0_217, %c0_218] : memref<1x3x3x8x128xf32, #tpu.memory_space<vmem>>, vector<1x1x1x8x128xf32>
    %1178 = vector.shape_cast %1177 : vector<1x1x1x8x128xf32> to vector<8x128xf32>
    %1179 = vector.shape_cast %1152 : vector<8x128xf32> to vector<1x1x1x8x128xf32>
    tpu.vector_store %arg4[%c0_214, %c2_215, %c1_216, %c0_217, %c0_218], %1179 {strides = array<i32>} : memref<1x3x3x8x128xf32, #tpu.memory_space<vmem>>, vector<1x1x1x8x128xf32>,
    %c0_219 = arith.constant 0 : index
    %c2_220 = arith.constant 2 : index
    %c2_221 = arith.constant 2 : index
    %c0_222 = arith.constant 0 : index
    %c0_223 = arith.constant 0 : index
    %1180 = vector.load %arg4[%c0_219, %c2_220, %c2_221, %c0_222, %c0_223] : memref<1x3x3x8x128xf32, #tpu.memory_space<vmem>>, vector<1x1x1x8x128xf32>
    %1181 = vector.shape_cast %1180 : vector<1x1x1x8x128xf32> to vector<8x128xf32>
    %1182 = vector.shape_cast %1155 : vector<8x128xf32> to vector<1x1x1x8x128xf32>
    tpu.vector_store %arg4[%c0_219, %c2_220, %c2_221, %c0_222, %c0_223], %1182 {strides = array<i32>} : memref<1x3x3x8x128xf32, #tpu.memory_space<vmem>>, vector<1x1x1x8x128xf32>,
    return
  }
  func.func @transform_0(%arg0: i32) -> (i32, i32, i32, i32, i32) {
    %c0_i32 = arith.constant 0 : i32
    %c0_i32_0 = arith.constant 0 : i32
    %c0_i32_1 = arith.constant 0 : i32
    %c0_i32_2 = arith.constant 0 : i32
    %c0_i32_3 = arith.constant 0 : i32
    return %arg0, %c0_i32, %c0_i32_0, %c0_i32_1, %c0_i32_2 : i32, i32, i32, i32, i32
  }
  func.func @transform_1(%arg0: i32) -> i32 {
    %c0_i32 = arith.constant 0 : i32
    %c0_i32_0 = arith.constant 0 : i32
    return %c0_i32 : i32
  }
  func.func @transform_2(%arg0: i32) -> i32 {
    %c0_i32 = arith.constant 0 : i32
    %c0_i32_0 = arith.constant 0 : i32
    return %c0_i32 : i32
  }
  func.func @transform_3(%arg0: i32) -> (i32, i32, i32, i32, i32) {
    %c0_i32 = arith.constant 0 : i32
    %c0_i32_0 = arith.constant 0 : i32
    %c0_i32_1 = arith.constant 0 : i32
    %c0_i32_2 = arith.constant 0 : i32
    %c0_i32_3 = arith.constant 0 : i32
    return %arg0, %c0_i32, %c0_i32_0, %c0_i32_1, %c0_i32_2 : i32, i32, i32, i32, i32
  }
}

</mosaic_0001>

<bundles_post_ra>
// kernel: _lambda_.1
= control target key start
LH: loop header
LB: loop body
LE: loop exit
PB: predicated region body
PF: predicated region fallthrough
CT: control target
= control target key end

     0   :  { %8 = vsyncpa [#allocation3], 0  ;;  %s2068_s0 = inlined_call_operand.vmem [shape: f32[1,1,8,8,128], index: 0, kind: input, shape index: {}]   ;;  %s2069_s1 = inlined_call_operand.vmem [shape: f32[9], index: 1, kind: input, shape index: {}]   ;;  %s2070_s2 = inlined_call_operand.vmem [shape: f32[3], index: 2, kind: input, shape index: {}]   ;;  %s2071_s3 = inlined_call_operand.vmem [shape: f32[1,3,3,8,128], index: 3, kind: output, shape index: {}]  }
   0x1   :  { %s18_s14 = sshll.u32 %s2069_s1, 4  ;;  %s19_s14 = int_to_ptr.vmem [resolvable:$true] %s18_s14 }
   0x2   :  { %9 = vsyncpa [#allocation5], 0  ;;  %s28_s17 = sshll.u32 %s2070_s2, 4  ;;  %s1055_s18 = scalar_lea.vmem %s19_s14, 16  ;;  %s29_s17 = int_to_ptr.vmem [resolvable:$true] %s28_s17 }
   0x3   :  { %p1056_p0 = scmp.ne.s32.totalorder %s19_s14, %s1055_s18  ;;  %p1060_p1 = scmp.lt.s32.totalorder %s19_s14, %s19_s14 }
   0x4   :  { %p1061_p2 = scmp.lt.s32.totalorder %s1055_s18, %s1055_s18 }
   0x6   :  { %p1062_p3 = por %p1061_p2, %p1060_p1 }
   0x8   :  { %p1063_p4 = pnand %p1062_p3, %p1056_p0 }
   0xa   :  { %1066 = shalt.err (!%p1063_p4)
}
   0xb   :  { %s1083_s19 = smov [#allocation2]   ;;  %s1067_s20 = scalar_lea.vmem %s29_s17, 16 }
   0xc   :  { %21 = dma.vmem_to_smem %s19_s14, 16, %s1083_s19, [#allocation3]  }
   0xd   :  { %p1068_p5 = scmp.ne.s32.totalorder %s29_s17, %s1067_s20  ;;  %p1072_p6 = scmp.lt.s32.totalorder %s29_s17, %s29_s17 }
   0xe   :  { %p1073_p7 = scmp.lt.s32.totalorder %s1067_s20, %s1067_s20 }
  0x10   :  { %p1074_p8 = por %p1073_p7, %p1072_p6 }
  0x12   :  { %p1075_p9 = pnand %p1074_p8, %p1068_p5 }
  0x14   :  { %1078 = shalt.err (!%p1075_p9)
}
  0x15   :  { %s1084_s1 = smov [#allocation4]  }
  0x16   :  { %31 = dma.vmem_to_smem %s29_s17, 16, %s1084_s1, [#allocation5]  }
  0x17   :  { %1079 = dma.done.wait [#allocation3], 16  }
  0x18   :  { %1080 = vsyncadd [#allocation3], 4294967280 }
  0x19   :  { %1081 = dma.done.wait [#allocation5], 16  }
  0x1a   :  { %1082 = vsyncadd [#allocation5], 4294967280 }
  0x1b   :  { %38 = sfence }
  0x1c   :  { %s39_s2 = sld [smem:[#allocation2]]  ;;  %s1001_s21 = sld [smem:[#allocation2 + $0x1]]  ;;  %v1115_v0 = vld [vmem:[%s2068_s0] sm:$0xff]  ;;  %v1120_v1 = vld [vmem:[%s2068_s0 + $0x8] sm:$0xff]  ;;  %v1125_v2 = vld [vmem:[%s2068_s0 + $0x10] sm:$0xff]  ;;  %v1085_v49 = vmov 0  }
  0x1d   :  { %s1002_s22 = sld [smem:[#allocation2 + $0x2]]  ;;  %v1130_v3 = vld [vmem:[%s2068_s0 + $0x18] sm:$0xff]  ;;  %v1135_v6 = vld [vmem:[%s2068_s0 + $0x20] sm:$0xff]  ;;  %v1143_v11 = vld [vmem:[%s2068_s0 + $0x28] sm:$0xff]  ;;  %s1406_s12 = sld [smem:[#allocation2 + $0x5]] }
  0x1e   :  { %v1154_v16 = vld [vmem:[%s2068_s0 + $0x30] sm:$0xff]  ;;  %v1167_v25 = vld [vmem:[%s2068_s0 + $0x38] sm:$0xff]  ;;  %s1408_s13 = sld [smem:[#allocation4]]  ;;  %s1413_s14 = sld [smem:[#allocation2 + $0x4]] }
  0x1f   :  { %s1426_s15 = sld [smem:[#allocation2 + $0x3]]  ;;  %s1741_s23 = sld [smem:[#allocation2 + $0x6]] }
  0x20   :  { %s2027_s18 = sld [smem:[#allocation4 + $0x2]] }
  0x22   :  { %v68_v4 = vstv %s1001_s21  ;;  %v72_v5 = vstv %s39_s2  ;;  %s1707_s2 = sld [smem:[#allocation4 + $0x1]]  ;;  %s1722_s21 = sld [smem:[#allocation2 + $0x8]] }
  0x23   :  { %v66_v7 = vstv %s1002_s22  ;;  %v69_v8 = vmul.f32 %v68_v4, %v1115_v0  ;;  %v73_v9 = vmul.f32 %v72_v5, %v1115_v0  ;;  %v74_v10 = vmul.f32 %v1120_v1, %v68_v4  ;;  %s1732_s22 = sld [smem:[#allocation2 + $0x7]] }
  0x24   :  { %v1146_v12 = vmul.f32 %v66_v7, %v1115_v0  ;;  %v70_v13 = vmul.f32 %v1120_v1, %v66_v7  ;;  %v76_v14 = vmul.f32 %v1125_v2, %v66_v7  ;;  %v78_v15 = vmul.f32 %v1120_v1, %v72_v5 }
  0x25   :  { %v75_v17 = vadd.f32 %v74_v10, %v73_v9  ;;  %v79_v18 = vmul.f32 %v1125_v2, %v68_v4  ;;  %v81_v19 = vmul.f32 %v1130_v3, %v66_v7  ;;  %v83_v20 = vmul.f32 %v1125_v2, %v72_v5 }
  0x26   :  { %v1159_v21 = vadd.f32 %v70_v13, %v69_v8  ;;  %v84_v22 = vmul.f32 %v1130_v3, %v68_v4  ;;  %v86_v23 = vmul.f32 %v1135_v6, %v66_v7  ;;  %v88_v24 = vmul.f32 %v1130_v3, %v72_v5 }
  0x27   :  { %v1169_v26 = vadd.f32 %v76_v14, %v75_v17  ;;  %v80_v27 = vadd.f32 %v79_v18, %v78_v15  ;;  %v89_v28 = vmul.f32 %v1135_v6, %v68_v4  ;;  %v91_v29 = vmul.f32 %v1143_v11, %v66_v7 }
  0x28   :  { %v85_v30 = vadd.f32 %v84_v22, %v83_v20  ;;  %v93_v31 = vmul.f32 %v1135_v6, %v72_v5  ;;  %v94_v32 = vmul.f32 %v1143_v11, %v68_v4  ;;  %v96_v33 = vmul.f32 %v1154_v16, %v66_v7 }
  0x29   :  { %v1176_v34 = vadd.f32 %v81_v19, %v80_v27  ;;  %v90_v35 = vadd.f32 %v89_v28, %v88_v24  ;;  %v98_v36 = vmul.f32 %v1143_v11, %v72_v5  ;;  %v99_v37 = vmul.f32 %v1154_v16, %v68_v4 }
  0x2a   :  { %v1180_v38 = vadd.f32 %v86_v23, %v85_v30  ;;  %v95_v39 = vadd.f32 %v94_v32, %v93_v31  ;;  %v101_v40 = vmul.f32 %v1167_v25, %v66_v7  ;;  %v103_v41 = vmul.f32 %v1154_v16, %v72_v5 }
  0x2b   :  { %v1184_v42 = vadd.f32 %v91_v29, %v90_v35  ;;  %v100_v43 = vadd.f32 %v99_v37, %v98_v36  ;;  %v104_v44 = vmul.f32 %v1167_v25, %v68_v4  ;;  %v1188_v45 = vmul.f32 %v1167_v25, %v72_v5 }
  0x2c   :  { %v1190_v46 = vadd.f32 %v96_v33, %v95_v39  ;;  %vm107_vm0 = vcmp.ge.f32.partialorder %v1146_v12, %v1159_v21  ;;  %vm110_vm1 = vcmp.ge.f32.partialorder %v1146_v12, %v1169_v26  ;;  %vm113_vm2 = vcmp.ge.f32.partialorder %v1146_v12, %v1176_v34 }
  0x2d   :  { %v1198_v47 = vadd.f32 %v101_v40, %v100_v43  ;;  %v1200_v48 = vadd.f32 %v104_v44, %v103_v41  ;;  %v108_v50 = vsel %vm107_vm0, 1, %v1085_v49  ;;  %v111_v51 = vsel %vm110_vm1, 1, %v1085_v49 }
  0x2e   :  { %v109_v52 = vsub.s32 0, %v108_v50  ;;  %v114_v53 = vsel %vm113_vm2, 1, %v1085_v49  ;;  %vm116_vm3 = vcmp.ge.f32.partialorder %v1146_v12, %v1180_v38  ;;  %vm119_vm4 = vcmp.ge.f32.partialorder %v1146_v12, %v1184_v42 }
  0x2f   :  { %v117_v54 = vsel %vm116_vm3, 1, %v1085_v49  ;;  %v120_v55 = vsel %vm119_vm4, 1, %v1085_v49  ;;  %vm122_vm5 = vcmp.ge.f32.partialorder %v1146_v12, %v1190_v46  ;;  %vm125_vm6 = vcmp.ge.f32.partialorder %v1146_v12, %v1198_v47 }
  0x30   :  { %v112_v56 = vsub.s32 %v109_v52, %v111_v51  ;;  %v123_v57 = vsel %vm122_vm5, 1, %v1085_v49  ;;  %v126_v58 = vsel %vm125_vm6, 1, %v1085_v49  ;;  %vm128_vm7 = vcmp.ge.f32.partialorder %v1146_v12, %v1200_v48 }
  0x31   :  { %v129_v59 = vsel %vm128_vm7, 1, %v1085_v49  ;;  %vm131_vm8 = vcmp.ge.f32.partialorder %v1146_v12, %v1188_v45  ;;  %vm134_vm9 = vcmp.ge.f32.partialorder %v1159_v21, %v1169_v26  ;;  %vm138_vm10 = vcmp.ge.f32.partialorder %v1159_v21, %v1176_v34 }
  0x32   :  { %v115_v60 = vsub.s32 %v112_v56, %v114_v53  ;;  %v1227_v61 = vsel %vm131_vm8, 1, %v1085_v49  ;;  %v135_v62 = vsel %vm134_vm9, 1, %v1085_v49  ;;  %v139_v63 = vsel %vm138_vm10, 1, %v1085_v49 }
  0x33   :  { %v136_v4 = vadd.s32 %v135_v62, %v111_v51  ;;  %v137_v5 = vsub.s32 %v108_v50, %v135_v62  ;;  %v140_v7 = vadd.s32 %v139_v63, %v114_v53  ;;  %vm142_vm11 = vcmp.ge.f32.partialorder %v1159_v21, %v1180_v38 }
  0x34   :  { %v118_v8 = vsub.s32 %v115_v60, %v117_v54  ;;  %v143_v9 = vsel %vm142_vm11, 1, %v1085_v49  ;;  %vm146_vm12 = vcmp.ge.f32.partialorder %v1159_v21, %v1184_v42  ;;  %vm150_vm13 = vcmp.ge.f32.partialorder %v1159_v21, %v1190_v46 }
  0x35   :  { %v141_v10 = vsub.s32 %v137_v5, %v139_v63  ;;  %v144_v13 = vadd.s32 %v143_v9, %v117_v54  ;;  %v147_v14 = vsel %vm146_vm12, 1, %v1085_v49  ;;  %v151_v15 = vsel %vm150_vm13, 1, %v1085_v49 }
  0x36   :  { %v121_v17 = vsub.s32 %v118_v8, %v120_v55  ;;  %v148_v18 = vadd.s32 %v147_v14, %v120_v55  ;;  %v152_v19 = vadd.s32 %v151_v15, %v123_v57  ;;  %vm154_vm14 = vcmp.ge.f32.partialorder %v1159_v21, %v1198_v47 }
  0x37   :  { %v145_v20 = vsub.s32 %v141_v10, %v143_v9  ;;  %v155_v22 = vsel %vm154_vm14, 1, %v1085_v49  ;;  %vm158_vm15 = vcmp.ge.f32.partialorder %v1159_v21, %v1200_v48  ;;  %vm162_vm0 = vcmp.ge.f32.partialorder %v1159_v21, %v1188_v45 }
  0x38   :  { %v124_v23 = vsub.s32 %v121_v17, %v123_v57  ;;  %v156_v24 = vadd.s32 %v155_v22, %v126_v58  ;;  %v159_v27 = vsel %vm158_vm15, 1, %v1085_v49  ;;  %v163_v28 = vsel %vm162_vm0, 1, %v1085_v49 }
  0x39   :  { %v149_v29 = vsub.s32 %v145_v20, %v147_v14  ;;  %v160_v30 = vadd.s32 %v159_v27, %v129_v59  ;;  %v164_v31 = vadd.s32 %v163_v28, %v1227_v61  ;;  %vm166_vm1 = vcmp.ge.f32.partialorder %v1169_v26, %v1176_v34 }
  0x3a   :  { %v127_v32 = vsub.s32 %v124_v23, %v126_v58  ;;  %v167_v33 = vsel %vm166_vm1, 1, %v1085_v49  ;;  %vm170_vm2 = vcmp.ge.f32.partialorder %v1169_v26, %v1180_v38  ;;  %vm174_vm3 = vcmp.ge.f32.partialorder %v1169_v26, %v1184_v42 }
  0x3b   :  { %v153_v35 = vsub.s32 %v149_v29, %v151_v15  ;;  %v168_v36 = vadd.s32 %v167_v33, %v140_v7  ;;  %v169_v37 = vsub.s32 %v136_v4, %v167_v33  ;;  %v171_v39 = vsel %vm170_vm2, 1, %v1085_v49 }
  0x3c   :  { %v1258_v40 = vsub.s32 %v127_v32, %v129_v59  ;;  %v172_v41 = vadd.s32 %v171_v39, %v144_v13  ;;  %v175_v43 = vsel %vm174_vm3, 1, %v1085_v49  ;;  %vm178_vm4 = vcmp.ge.f32.partialorder %v1169_v26, %v1190_v46 }
  0x3d   :  { %v157_v44 = vsub.s32 %v153_v35, %v155_v22  ;;  %v173_v50 = vsub.s32 %v169_v37, %v171_v39  ;;  %v176_v51 = vadd.s32 %v175_v43, %v148_v18  ;;  %v179_v52 = vsel %vm178_vm4, 1, %v1085_v49 }
  0x3e   :  { %v133_v53 = vsub.s32 %v1258_v40, %v1227_v61  ;;  %v180_v54 = vadd.s32 %v179_v52, %v152_v19  ;;  %vm182_vm5 = vcmp.ge.f32.partialorder %v1169_v26, %v1198_v47  ;;  %vm186_vm6 = vcmp.ge.f32.partialorder %v1169_v26, %v1200_v48 }
  0x3f   :  { %v161_v55 = vsub.s32 %v157_v44, %v159_v27  ;;  %v177_v56 = vsub.s32 %v173_v50, %v175_v43  ;;  %v183_v57 = vsel %vm182_vm5, 1, %v1085_v49  ;;  %v187_v58 = vsel %vm186_vm6, 1, %v1085_v49 }
  0x40   :  { %v184_v59 = vadd.s32 %v183_v57, %v156_v24  ;;  %v188_v60 = vadd.s32 %v187_v58, %v160_v30  ;;  %vm190_vm7 = vcmp.ge.f32.partialorder %v1169_v26, %v1188_v45  ;;  %vm194_vm8 = vcmp.ge.f32.partialorder %v1176_v34, %v1180_v38 }
  0x41   :  { %v1276_v62 = vsub.s32 %v161_v55, %v163_v28  ;;  %v181_v63 = vsub.s32 %v177_v56, %v179_v52  ;;  %v1279_v4 = vsel %vm190_vm7, 1, %v1085_v49  ;;  %v195_v5 = vsel %vm194_vm8, 1, %v1085_v49 }
  0x42   :  { %v192_v7 = vadd.s32 %v1279_v4, %v164_v31  ;;  %v196_v8 = vadd.s32 %v195_v5, %v172_v41  ;;  %v197_v9 = vsub.s32 %v168_v36, %v195_v5  ;;  %vm198_vm9 = vcmp.ge.f32.partialorder %v1176_v34, %v1184_v42 }
  0x43   :  { %v185_v10 = vsub.s32 %v181_v63, %v183_v57  ;;  %v199_v13 = vsel %vm198_vm9, 1, %v1085_v49  ;;  %vm202_vm10 = vcmp.ge.f32.partialorder %v1176_v34, %v1190_v46  ;;  %vm206_vm11 = vcmp.ge.f32.partialorder %v1176_v34, %v1198_v47 }
  0x44   :  { %v200_v14 = vadd.s32 %v199_v13, %v176_v51  ;;  %v201_v15 = vsub.s32 %v197_v9, %v199_v13  ;;  %v203_v17 = vsel %vm202_vm10, 1, %v1085_v49  ;;  %v207_v18 = vsel %vm206_vm11, 1, %v1085_v49 }
  0x45   :  { %v1292_v19 = vsub.s32 %v185_v10, %v187_v58  ;;  %v204_v20 = vadd.s32 %v203_v17, %v180_v54  ;;  %v208_v22 = vadd.s32 %v207_v18, %v184_v59  ;;  %vm210_vm12 = vcmp.ge.f32.partialorder %v1176_v34, %v1200_v48 }
  0x46   :  { %v205_v23 = vsub.s32 %v201_v15, %v203_v17  ;;  %v211_v24 = vsel %vm210_vm12, 1, %v1085_v49  ;;  %vm214_vm13 = vcmp.ge.f32.partialorder %v1176_v34, %v1188_v45  ;;  %vm218_vm14 = vcmp.ge.f32.partialorder %v1180_v38, %v1184_v42 }
  0x47   :  { %v193_v27 = vsub.s32 %v1292_v19, %v1279_v4  ;;  %v212_v28 = vadd.s32 %v211_v24, %v188_v60  ;;  %v215_v29 = vsel %vm214_vm13, 1, %v1085_v49  ;;  %v219_v30 = vsel %vm218_vm14, 1, %v1085_v49 }
  0x48   :  { %v209_v31 = vsub.s32 %v205_v23, %v207_v18  ;;  %v216_v32 = vadd.s32 %v215_v29, %v192_v7  ;;  %v220_v33 = vadd.s32 %v219_v30, %v200_v14  ;;  %v221_v35 = vsub.s32 %v196_v8, %v219_v30 }
  0x49   :  { %vm222_vm15 = vcmp.ge.f32.partialorder %v1180_v38, %v1190_v46  ;;  %vm226_vm0 = vcmp.ge.f32.partialorder %v1180_v38, %v1198_v47  ;;  %vm230_vm1 = vcmp.ge.f32.partialorder %v1180_v38, %v1200_v48  ;;  %vm234_vm2 = vcmp.ge.f32.partialorder %v1180_v38, %v1188_v45 }
  0x4a   :  { %v213_v36 = vsub.s32 %v209_v31, %v211_v24  ;;  %v223_v37 = vsel %vm222_vm15, 1, %v1085_v49  ;;  %v227_v39 = vsel %vm226_vm0, 1, %v1085_v49  ;;  %v231_v41 = vsel %vm230_vm1, 1, %v1085_v49 }
  0x4b   :  { %v224_v43 = vadd.s32 %v223_v37, %v204_v20  ;;  %v225_v44 = vsub.s32 %v221_v35, %v223_v37  ;;  %v228_v50 = vadd.s32 %v227_v39, %v208_v22  ;;  %v232_v51 = vadd.s32 %v231_v41, %v212_v28 }
  0x4c   :  { %v1316_v52 = vsub.s32 %v213_v36, %v215_v29  ;;  %v235_v54 = vsel %vm234_vm2, 1, %v1085_v49  ;;  %vm238_vm3 = vcmp.ge.f32.partialorder %v1184_v42, %v1190_v46  ;;  %vm242_vm4 = vcmp.ge.f32.partialorder %v1184_v42, %v1198_v47 }
  0x4d   :  { %v229_v55 = vsub.s32 %v225_v44, %v227_v39  ;;  %v236_v56 = vadd.s32 %v235_v54, %v216_v32  ;;  %v239_v57 = vsel %vm238_vm3, 1, %v1085_v49  ;;  %v243_v58 = vsel %vm242_vm4, 1, %v1085_v49 }
  0x4e   :  { %v240_v59 = vadd.s32 %v239_v57, %v224_v43  ;;  %v241_v60 = vsub.s32 %v220_v33, %v239_v57  ;;  %v244_v63 = vadd.s32 %v243_v58, %v228_v50  ;;  %vm246_vm5 = vcmp.ge.f32.partialorder %v1184_v42, %v1200_v48 }
  0x4f   :  { %v233_v5 = vsub.s32 %v229_v55, %v231_v41  ;;  %v247_v7 = vsel %vm246_vm5, 1, %v1085_v49  ;;  %vm250_vm6 = vcmp.ge.f32.partialorder %v1184_v42, %v1188_v45  ;;  %vm254_vm7 = vcmp.ge.f32.partialorder %v1190_v46, %v1198_v47 }
  0x50   :  { %v245_v8 = vsub.s32 %v241_v60, %v243_v58  ;;  %v248_v9 = vadd.s32 %v247_v7, %v232_v51  ;;  %v251_v10 = vsel %vm250_vm6, 1, %v1085_v49  ;;  %v255_v13 = vsel %vm254_vm7, 1, %v1085_v49 }
  0x51   :  { %v237_v14 = vsub.s32 %v233_v5, %v235_v54  ;;  %v252_v15 = vadd.s32 %v251_v10, %v236_v56  ;;  %v256_v17 = vadd.s32 %v255_v13, %v244_v63  ;;  %v257_v18 = vsub.s32 %v240_v59, %v255_v13 }
  0x52   :  { %v249_v20 = vsub.s32 %v245_v8, %v247_v7  ;;  %vm258_vm8 = vcmp.ge.f32.partialorder %v1190_v46, %v1200_v48  ;;  %vm262_vm9 = vcmp.ge.f32.partialorder %v1190_v46, %v1188_v45  ;;  %vm266_vm10 = vcmp.ge.f32.partialorder %v1198_v47, %v1200_v48 }
  0x53   :  { %v259_v22 = vsel %vm258_vm8, 1, %v1085_v49  ;;  %v263_v23 = vsel %vm262_vm9, 1, %v1085_v49  ;;  %v267_v24 = vsel %vm266_vm10, 1, %v1085_v49  ;;  %vm270_vm11 = vcmp.ge.f32.partialorder %v1198_v47, %v1188_v45 }
  0x54   :  { %v253_v28 = vsub.s32 %v249_v20, %v251_v10  ;;  %v260_v29 = vadd.s32 %v259_v22, %v248_v9  ;;  %v261_v30 = vsub.s32 %v257_v18, %v259_v22  ;;  %v264_v31 = vadd.s32 %v263_v23, %v252_v15 }
  0x55   :  { %v269_v32 = vsub.s32 %v256_v17, %v267_v24  ;;  %v271_v33 = vsel %vm270_vm11, 1, %v1085_v49  ;;  %vm274_vm12 = vcmp.ge.f32.partialorder %v1200_v48, %v1188_v45  ;;  %vm1351_vm13 = vcmp.lt.s32.totalorder %v133_v53, 4294967290 }
  0x56   :  { %v265_v36 = vsub.s32 %v261_v30, %v263_v23  ;;  %v1355_v37 = vadd.s32 %v267_v24, %v260_v29  ;;  %v272_v39 = vadd.s32 %v271_v33, %v264_v31  ;;  %v1358_v41 = vsel %vm274_vm12, 1, %v1085_v49 }
  0x57   :  { %v1360_v43 = vsub.s32 %v269_v32, %v271_v33  ;;  %v281_v44 = vsel %vm1351_vm13, %v1146_v12, 0.0  ;;  %v282_v61 = vsel %vm1351_vm13, 1, %v1085_v49  ;;  %vm283_vm14 = vcmp.lt.s32.totalorder %v1276_v62, 4294967291 }
  0x58   :  { %v1370_v40 = vadd.s32 %v1358_v41, %v272_v39  ;;  %v277_v53 = vsub.s32 %v1355_v37, %v1358_v41  ;;  %v284_v50 = vsel %vm283_vm14, %v282_v61, 3  ;;  %v289_v51 = vsel %vm283_vm14, 1, %v1085_v49 }
  0x59   :  { %vm285_vm15 = vcmp.eq.s32.totalorder %v284_v50, 0  ;;  %vm287_vm0 = vcmp.eq.s32.totalorder %v284_v50, 1  ;;  %v290_v54 = vadd.s32 %v289_v51, %v282_v61  ;;  %vm291_vm1 = vcmp.lt.s32.totalorder %v193_v27, 4294967292 }
  0x5a   :  { %v286_v12 = vsel %vm285_vm15, %v1159_v21, %v281_v44  ;;  %v288_v62 = vsel %vm287_vm0, %v1159_v21, 0.0  ;;  %v299_v55 = vsel %vm291_vm1, 1, %v1085_v49  ;;  %vm301_vm2 = vcmp.lt.s32.totalorder %v1316_v52, 4294967293 }
  0x5b   :  { %v292_v56 = vsel %vm291_vm1, %v290_v54, 3  ;;  %v300_v57 = vadd.s32 %v299_v55, %v290_v54  ;;  %v309_v58 = vsel %vm301_vm2, 1, %v1085_v49  ;;  %vm1383_vm3 = vcmp.lt.s32.totalorder %v237_v14, 4294967294 }
  0x5c   :  { %vm293_vm4 = vcmp.eq.s32.totalorder %v292_v56, 0  ;;  %vm295_vm5 = vcmp.eq.s32.totalorder %v292_v56, 1  ;;  %vm297_vm6 = vcmp.eq.s32.totalorder %v292_v56, 2  ;;  %v319_v4 = vsel %vm1383_vm3, 1, %v1085_v49 }
  0x5d   :  { %v294_v21 = vsel %vm293_vm4, %v1169_v26, %v286_v12  ;;  %v296_v19 = vsel %vm295_vm5, %v1169_v26, %v288_v62  ;;  %v298_v27 = vsel %vm297_vm6, %v1169_v26, 0.0  ;;  %v302_v52 = vsel %vm301_vm2, %v300_v57, 3 }
  0x5e   :  { %vm303_vm7 = vcmp.eq.s32.totalorder %v302_v52, 0  ;;  %vm305_vm8 = vcmp.eq.s32.totalorder %v302_v52, 1  ;;  %vm307_vm9 = vcmp.eq.s32.totalorder %v302_v52, 2  ;;  %v310_v60 = vadd.s32 %v309_v58, %v300_v57 }
  0x5f   :  { %v304_v63 = vsel %vm303_vm7, %v1176_v34, %v294_v21  ;;  %v306_v5 = vsel %vm305_vm8, %v1176_v34, %v296_v19  ;;  %v308_v7 = vsel %vm307_vm9, %v1176_v34, %v298_v27  ;;  %vm321_vm10 = vcmp.lt.s32.totalorder %v253_v28, 4294967295 }
  0x60   :  { %v312_v8 = vsel %vm1383_vm3, %v310_v60, 3  ;;  %v320_v9 = vadd.s32 %v319_v4, %v310_v60  ;;  %v329_v10 = vsel %vm321_vm10, 1, %v1085_v49  ;;  %vm1399_vm11 = vcmp.lt.s32.totalorder %v265_v36, 0 }
  0x61   :  { %vm313_vm12 = vcmp.eq.s32.totalorder %v312_v8, 0  ;;  %vm315_vm13 = vcmp.eq.s32.totalorder %v312_v8, 1  ;;  %vm317_vm14 = vcmp.eq.s32.totalorder %v312_v8, 2  ;;  %v339_v13 = vsel %vm1399_vm11, 1, %v1085_v49 }
  0x62   :  { %v314_v34 = vsel %vm313_vm12, %v1180_v38, %v304_v63  ;;  %v316_v14 = vsel %vm315_vm13, %v1180_v38, %v306_v5  ;;  %v318_v15 = vsel %vm317_vm14, %v1180_v38, %v308_v7  ;;  %v322_v17 = vsel %vm321_vm10, %v320_v9, 3 }
  0x63   :  { %vm323_vm15 = vcmp.eq.s32.totalorder %v322_v17, 0  ;;  %vm325_vm0 = vcmp.eq.s32.totalorder %v322_v17, 1  ;;  %vm327_vm1 = vcmp.eq.s32.totalorder %v322_v17, 2  ;;  %v330_v18 = vadd.s32 %v329_v10, %v320_v9 }
  0x64   :  { %v324_v20 = vsel %vm323_vm15, %v1184_v42, %v314_v34  ;;  %v326_v22 = vsel %vm325_vm0, %v1184_v42, %v316_v14  ;;  %v328_v23 = vsel %vm327_vm1, %v1184_v42, %v318_v15  ;;  %vm341_vm2 = vcmp.lt.s32.totalorder %v1360_v43, 1 }
  0x65   :  { %v332_v24 = vsel %vm1399_vm11, %v330_v18, 3  ;;  %v340_v28 = vadd.s32 %v339_v13, %v330_v18  ;;  %v349_v38 = vsel %vm341_vm2, 1, %v1085_v49  ;;  %vm1422_vm3 = vcmp.lt.s32.totalorder %v277_v53, 2 }
  0x66   :  { %vm333_vm4 = vcmp.eq.s32.totalorder %v332_v24, 0  ;;  %vm335_vm5 = vcmp.eq.s32.totalorder %v332_v24, 1  ;;  %vm337_vm6 = vcmp.eq.s32.totalorder %v332_v24, 2  ;;  %v357_v42 = vsel %vm1422_vm3, 1, %v1085_v49 }
  0x67   :  { %v334_v30 = vsel %vm333_vm4, %v1190_v46, %v324_v20  ;;  %v336_v31 = vsel %vm335_vm5, %v1190_v46, %v326_v22  ;;  %v338_v32 = vsel %vm337_vm6, %v1190_v46, %v328_v23  ;;  %v342_v33 = vsel %vm341_vm2, %v340_v28, 3 }
  0x68   :  { %vm343_vm7 = vcmp.eq.s32.totalorder %v342_v33, 0  ;;  %vm345_vm8 = vcmp.eq.s32.totalorder %v342_v33, 1  ;;  %vm347_vm9 = vcmp.eq.s32.totalorder %v342_v33, 2  ;;  %v350_v35 = vadd.s32 %v349_v38, %v340_v28 }
  0x69   :  { %v344_v36 = vsel %vm343_vm7, %v1198_v47, %v334_v30  ;;  %v346_v37 = vsel %vm345_vm8, %v1198_v47, %v336_v31  ;;  %v348_v39 = vsel %vm347_vm9, %v1198_v47, %v338_v32  ;;  %vm359_vm10 = vcmp.lt.s32.totalorder %v1370_v40, 3 }
  0x6a   :  { %v352_v41 = vsel %vm1422_vm3, %v350_v35, 3  ;;  %v358_v43 = vadd.s32 %v357_v42, %v350_v35  ;;  %v363_v44 = vstv %s1408_s13  ;;  %v370_v46 = vstv %s1406_s12 }
  0x6b   :  { %vm353_vm11 = vcmp.eq.s32.totalorder %v352_v41, 1  ;;  %vm355_vm12 = vcmp.eq.s32.totalorder %v352_v41, 2  ;;  %v364_v61 = vadd.f32 %v363_v44, %v344_v36  ;;  %v1443_v53 = vmul.f32 %v370_v46, %v1115_v0 }
  0x6c   :  { %v354_v50 = vsel %vm353_vm11, %v1200_v48, %v346_v37  ;;  %v356_v51 = vsel %vm355_vm12, %v1200_v48, %v348_v39  ;;  %v360_v47 = vsel %vm359_vm10, %v358_v43, 3  ;;  %v372_v54 = vstv %s1413_s14 }
  0x6d   :  { %vm361_vm13 = vcmp.eq.s32.totalorder %v360_v47, 2  ;;  %1029 = vtanh.f32 %v364_v61  ;;  %v366_v40 = vadd.f32 %v363_v44, %v354_v50  ;;  %v373_v12 = vmul.f32 %v372_v54, %v1115_v0 }
  0x6e   :  { %v362_v62 = vsel %vm361_vm13, %v1188_v45, %v356_v51  ;;  %v374_v55 = vmul.f32 %v1120_v1, %v370_v46  ;;  %v376_v56 = vstv %s1426_s15  ;;  %v378_v57 = vmul.f32 %v1120_v1, %v372_v54 }
  0x6f   :  { %1031 = vtanh.f32 %v366_v40  ;;  %v368_v58 = vadd.f32 %v363_v44, %v362_v62  ;;  %v377_v59 = vmul.f32 %v376_v56, %v1115_v0  ;;  %v380_v48 = vmul.f32 %v1125_v2, %v370_v46 }
  0x70   :  { %v1455_v4 = vadd.f32 %v374_v55, %v373_v12  ;;  %v382_v21 = vmul.f32 %v1120_v1, %v376_v56  ;;  %v383_v19 = vmul.f32 %v1125_v2, %v372_v54  ;;  %v385_v27 = vmul.f32 %v1130_v3, %v370_v46 }
  0x71   :  { %1033 = vtanh.f32 %v368_v58  ;;  %v379_v45 = vadd.f32 %v378_v57, %v377_v59  ;;  %v387_v52 = vmul.f32 %v1125_v2, %v376_v56  ;;  %v388_v60 = vmul.f32 %v1130_v3, %v372_v54 }
  0x72   :  { %v384_v63 = vadd.f32 %v383_v19, %v382_v21  ;;  %v390_v5 = vmul.f32 %v1135_v6, %v370_v46  ;;  %v392_v0 = vmul.f32 %v1130_v3, %v376_v56  ;;  %v393_v7 = vmul.f32 %v1135_v6, %v372_v54 }
  0x73   :  { %v1465_v8 = vadd.f32 %v380_v48, %v379_v45  ;;  %v389_v1 = vadd.f32 %v388_v60, %v387_v52  ;;  %v395_v9 = vmul.f32 %v1143_v11, %v370_v46  ;;  %v397_v10 = vmul.f32 %v1135_v6, %v376_v56 }
  0x74   :  { %v1469_v26 = vadd.f32 %v385_v27, %v384_v63  ;;  %v394_v13 = vadd.f32 %v393_v7, %v392_v0  ;;  %v398_v2 = vmul.f32 %v1143_v11, %v372_v54  ;;  %v400_v34 = vmul.f32 %v1154_v16, %v370_v46 }
  0x75   :  { %v1473_v14 = vadd.f32 %v390_v5, %v389_v1  ;;  %v402_v3 = vmul.f32 %v1143_v11, %v376_v56  ;;  %v403_v15 = vmul.f32 %v1154_v16, %v372_v54  ;;  %v405_v17 = vmul.f32 %v1167_v25, %v370_v46 }
  0x76   :  { %v1478_v18 = vadd.f32 %v395_v9, %v394_v13  ;;  %v399_v20 = vadd.f32 %v398_v2, %v397_v10  ;;  %v407_v6 = vmul.f32 %v1154_v16, %v376_v56  ;;  %v408_v22 = vmul.f32 %v1167_v25, %v372_v54 }
  0x77   :  { %v1030_v23 = vpop.eup %1029  ;;  %v404_v24 = vadd.f32 %v403_v15, %v402_v3  ;;  %v1483_v28 = vmul.f32 %v1167_v25, %v376_v56  ;;  %vm411_vm14 = vcmp.ge.f32.partialorder %v1443_v53, %v1455_v4  ;;  %vm414_vm15 = vcmp.ge.f32.partialorder %v1443_v53, %v1465_v8 }
  0x78   :  { %v1489_v11 = vadd.f32 %v400_v34, %v399_v20  ;;  %v1491_v38 = vadd.f32 %v408_v22, %v407_v6  ;;  %v412_v29 = vsel %vm411_vm14, 1, %v1085_v49  ;;  %v415_v16 = vsel %vm414_vm15, 1, %v1085_v49  ;;  %978 = vst [vmem:[%s2071_s3] sm:$0xff] %v1030_v23 }
  0x79   :  { %v1032_v25 = vpop.eup %1031  ;;  %v1498_v42 = vadd.f32 %v405_v17, %v404_v24  ;;  %v413_v30 = vsub.s32 0, %v412_v29  ;;  %vm417_vm0 = vcmp.ge.f32.partialorder %v1443_v53, %v1469_v26  ;;  %vm420_vm1 = vcmp.ge.f32.partialorder %v1443_v53, %v1473_v14 }
  0x7a   :  { %v418_v31 = vsel %vm417_vm0, 1, %v1085_v49  ;;  %v421_v32 = vsel %vm420_vm1, 1, %v1085_v49  ;;  %vm423_vm2 = vcmp.ge.f32.partialorder %v1443_v53, %v1478_v18  ;;  %vm426_vm3 = vcmp.ge.f32.partialorder %v1443_v53, %v1489_v11  ;;  %1018 = vst [vmem:[%s2071_s3 + $0x8] sm:$0xff] %v1032_v25 }
  0x7b   :  { %v1034_v33 = vpop.eup %1033  ;;  %v416_v35 = vsub.s32 %v413_v30, %v415_v16  ;;  %v424_v36 = vsel %vm423_vm2, 1, %v1085_v49  ;;  %v427_v37 = vsel %vm426_vm3, 1, %v1085_v49  ;;  %vm429_vm4 = vcmp.ge.f32.partialorder %v1443_v53, %v1498_v42 }
  0x7c   :  { %v430_v39 = vsel %vm429_vm4, 1, %v1085_v49  ;;  %vm432_vm5 = vcmp.ge.f32.partialorder %v1443_v53, %v1491_v38  ;;  %vm435_vm6 = vcmp.ge.f32.partialorder %v1443_v53, %v1483_v28  ;;  %vm438_vm7 = vcmp.ge.f32.partialorder %v1455_v4, %v1465_v8  ;;  %1019 = vst [vmem:[%s2071_s3 + $0x10] sm:$0xff] %v1034_v33 }
  0x7d   :  { %v419_v41 = vsub.s32 %v416_v35, %v418_v31  ;;  %v433_v43 = vsel %vm432_vm5, 1, %v1085_v49  ;;  %v1529_v44 = vsel %vm435_vm6, 1, %v1085_v49  ;;  %v439_v46 = vsel %vm438_vm7, 1, %v1085_v49 }
  0x7e   :  { %v440_v61 = vadd.s32 %v439_v46, %v415_v16  ;;  %v441_v50 = vsub.s32 %v412_v29, %v439_v46  ;;  %vm442_vm8 = vcmp.ge.f32.partialorder %v1455_v4, %v1469_v26  ;;  %vm446_vm9 = vcmp.ge.f32.partialorder %v1455_v4, %v1473_v14 }
  0x7f   :  { %v422_v51 = vsub.s32 %v419_v41, %v421_v32  ;;  %v443_v47 = vsel %vm442_vm8, 1, %v1085_v49  ;;  %v447_v54 = vsel %vm446_vm9, 1, %v1085_v49  ;;  %vm450_vm10 = vcmp.ge.f32.partialorder %v1455_v4, %v1478_v18 }
  0x80   :  { %v444_v40 = vadd.s32 %v443_v47, %v418_v31  ;;  %v445_v12 = vsub.s32 %v441_v50, %v443_v47  ;;  %v448_v62 = vadd.s32 %v447_v54, %v421_v32  ;;  %v451_v55 = vsel %vm450_vm10, 1, %v1085_v49 }
  0x81   :  { %v425_v56 = vsub.s32 %v422_v51, %v424_v36  ;;  %v452_v57 = vadd.s32 %v451_v55, %v424_v36  ;;  %vm454_vm11 = vcmp.ge.f32.partialorder %v1455_v4, %v1489_v11  ;;  %vm458_vm12 = vcmp.ge.f32.partialorder %v1455_v4, %v1498_v42 }
  0x82   :  { %v449_v58 = vsub.s32 %v445_v12, %v447_v54  ;;  %v455_v59 = vsel %vm454_vm11, 1, %v1085_v49  ;;  %v459_v48 = vsel %vm458_vm12, 1, %v1085_v49  ;;  %vm462_vm13 = vcmp.ge.f32.partialorder %v1455_v4, %v1491_v38 }
  0x83   :  { %v428_v21 = vsub.s32 %v425_v56, %v427_v37  ;;  %v456_v19 = vadd.s32 %v455_v59, %v427_v37  ;;  %v460_v27 = vadd.s32 %v459_v48, %v430_v39  ;;  %v463_v45 = vsel %vm462_vm13, 1, %v1085_v49 }
  0x84   :  { %v453_v52 = vsub.s32 %v449_v58, %v451_v55  ;;  %v464_v60 = vadd.s32 %v463_v45, %v433_v43  ;;  %vm466_vm14 = vcmp.ge.f32.partialorder %v1455_v4, %v1483_v28  ;;  %vm470_vm15 = vcmp.ge.f32.partialorder %v1465_v8, %v1469_v26 }
  0x85   :  { %v431_v63 = vsub.s32 %v428_v21, %v430_v39  ;;  %v467_v5 = vsel %vm466_vm14, 1, %v1085_v49  ;;  %v471_v0 = vsel %vm470_vm15, 1, %v1085_v49  ;;  %vm474_vm0 = vcmp.ge.f32.partialorder %v1465_v8, %v1473_v14 }
  0x86   :  { %v457_v7 = vsub.s32 %v453_v52, %v455_v59  ;;  %v468_v1 = vadd.s32 %v467_v5, %v1529_v44  ;;  %v472_v9 = vadd.s32 %v471_v0, %v444_v40  ;;  %v473_v10 = vsub.s32 %v440_v61, %v471_v0 }
  0x87   :  { %v1559_v13 = vsub.s32 %v431_v63, %v433_v43  ;;  %v475_v2 = vsel %vm474_vm0, 1, %v1085_v49  ;;  %vm478_vm1 = vcmp.ge.f32.partialorder %v1465_v8, %v1478_v18  ;;  %vm482_vm2 = vcmp.ge.f32.partialorder %v1465_v8, %v1489_v11 }
  0x88   :  { %v461_v34 = vsub.s32 %v457_v7, %v459_v48  ;;  %v476_v3 = vadd.s32 %v475_v2, %v448_v62  ;;  %v477_v15 = vsub.s32 %v473_v10, %v475_v2  ;;  %v479_v17 = vsel %vm478_vm1, 1, %v1085_v49 }
  0x89   :  { %v437_v20 = vsub.s32 %v1559_v13, %v1529_v44  ;;  %v480_v6 = vadd.s32 %v479_v17, %v452_v57  ;;  %v483_v22 = vsel %vm482_vm2, 1, %v1085_v49  ;;  %vm486_vm3 = vcmp.ge.f32.partialorder %v1465_v8, %v1498_v42 }
  0x8a   :  { %v465_v23 = vsub.s32 %v461_v34, %v463_v45  ;;  %v481_v24 = vsub.s32 %v477_v15, %v479_v17  ;;  %v484_v29 = vadd.s32 %v483_v22, %v456_v19  ;;  %v487_v16 = vsel %vm486_vm3, 1, %v1085_v49 }
  0x8b   :  { %v488_v25 = vadd.s32 %v487_v16, %v460_v27  ;;  %vm490_vm4 = vcmp.ge.f32.partialorder %v1465_v8, %v1491_v38  ;;  %vm494_vm5 = vcmp.ge.f32.partialorder %v1465_v8, %v1483_v28  ;;  %vm498_vm6 = vcmp.ge.f32.partialorder %v1469_v26, %v1473_v14 }
  0x8c   :  { %v1579_v30 = vsub.s32 %v465_v23, %v467_v5  ;;  %v485_v31 = vsub.s32 %v481_v24, %v483_v22  ;;  %v491_v32 = vsel %vm490_vm4, 1, %v1085_v49  ;;  %v1583_v33 = vsel %vm494_vm5, 1, %v1085_v49 }
  0x8d   :  { %v492_v35 = vadd.s32 %v491_v32, %v464_v60  ;;  %v496_v36 = vadd.s32 %v1583_v33, %v468_v1  ;;  %v499_v37 = vsel %vm498_vm6, 1, %v1085_v49  ;;  %vm502_vm7 = vcmp.ge.f32.partialorder %v1469_v26, %v1478_v18 }
  0x8e   :  { %v489_v39 = vsub.s32 %v485_v31, %v487_v16  ;;  %v500_v41 = vadd.s32 %v499_v37, %v476_v3  ;;  %v501_v43 = vsub.s32 %v472_v9, %v499_v37  ;;  %v503_v46 = vsel %vm502_vm7, 1, %v1085_v49 }
  0x8f   :  { %v504_v61 = vadd.s32 %v503_v46, %v480_v6  ;;  %vm506_vm8 = vcmp.ge.f32.partialorder %v1469_v26, %v1489_v11  ;;  %vm510_vm9 = vcmp.ge.f32.partialorder %v1469_v26, %v1498_v42  ;;  %vm514_vm10 = vcmp.ge.f32.partialorder %v1469_v26, %v1491_v38 }
  0x90   :  { %v1596_v50 = vsub.s32 %v489_v39, %v491_v32  ;;  %v505_v51 = vsub.s32 %v501_v43, %v503_v46  ;;  %v507_v47 = vsel %vm506_vm8, 1, %v1085_v49  ;;  %v511_v54 = vsel %vm510_vm9, 1, %v1085_v49 }
  0x91   :  { %v508_v40 = vadd.s32 %v507_v47, %v484_v29  ;;  %v512_v12 = vadd.s32 %v511_v54, %v488_v25  ;;  %v515_v62 = vsel %vm514_vm10, 1, %v1085_v49  ;;  %vm518_vm11 = vcmp.ge.f32.partialorder %v1469_v26, %v1483_v28 }
  0x92   :  { %v497_v55 = vsub.s32 %v1596_v50, %v1583_v33  ;;  %v509_v56 = vsub.s32 %v505_v51, %v507_v47  ;;  %v516_v57 = vadd.s32 %v515_v62, %v492_v35  ;;  %v519_v58 = vsel %vm518_vm11, 1, %v1085_v49 }
  0x93   :  { %v520_v59 = vadd.s32 %v519_v58, %v496_v36  ;;  %vm522_vm12 = vcmp.ge.f32.partialorder %v1473_v14, %v1478_v18  ;;  %vm526_vm13 = vcmp.ge.f32.partialorder %v1473_v14, %v1489_v11  ;;  %vm530_vm14 = vcmp.ge.f32.partialorder %v1473_v14, %v1498_v42 }
  0x94   :  { %v513_v48 = vsub.s32 %v509_v56, %v511_v54  ;;  %v523_v21 = vsel %vm522_vm12, 1, %v1085_v49  ;;  %v527_v19 = vsel %vm526_vm13, 1, %v1085_v49  ;;  %v531_v27 = vsel %vm530_vm14, 1, %v1085_v49 }
  0x95   :  { %v524_v45 = vadd.s32 %v523_v21, %v504_v61  ;;  %v525_v52 = vsub.s32 %v500_v41, %v523_v21  ;;  %v528_v60 = vadd.s32 %v527_v19, %v508_v40  ;;  %v532_v63 = vadd.s32 %v531_v27, %v512_v12 }
  0x96   :  { %v517_v5 = vsub.s32 %v513_v48, %v515_v62  ;;  %vm534_vm15 = vcmp.ge.f32.partialorder %v1473_v14, %v1491_v38  ;;  %vm538_vm0 = vcmp.ge.f32.partialorder %v1473_v14, %v1483_v28  ;;  %vm542_vm1 = vcmp.ge.f32.partialorder %v1478_v18, %v1489_v11 }
  0x97   :  { %v529_v0 = vsub.s32 %v525_v52, %v527_v19  ;;  %v535_v7 = vsel %vm534_vm15, 1, %v1085_v49  ;;  %v539_v1 = vsel %vm538_vm0, 1, %v1085_v49  ;;  %v543_v9 = vsel %vm542_vm1, 1, %v1085_v49 }
  0x98   :  { %v1624_v10 = vsub.s32 %v517_v5, %v519_v58  ;;  %v536_v2 = vadd.s32 %v535_v7, %v516_v57  ;;  %v540_v34 = vadd.s32 %v539_v1, %v520_v59  ;;  %v544_v3 = vadd.s32 %v543_v9, %v528_v60 }
  0x99   :  { %v533_v15 = vsub.s32 %v529_v0, %v531_v27  ;;  %v545_v17 = vsub.s32 %v524_v45, %v543_v9  ;;  %vm546_vm2 = vcmp.ge.f32.partialorder %v1478_v18, %v1498_v42  ;;  %vm550_vm3 = vcmp.ge.f32.partialorder %v1478_v18, %v1491_v38 }
  0x9a   :  { %v547_v6 = vsel %vm546_vm2, 1, %v1085_v49  ;;  %v551_v22 = vsel %vm550_vm3, 1, %v1085_v49  ;;  %vm554_vm4 = vcmp.ge.f32.partialorder %v1478_v18, %v1483_v28  ;;  %vm558_vm5 = vcmp.ge.f32.partialorder %v1489_v11, %v1498_v42 }
  0x9b   :  { %v537_v23 = vsub.s32 %v533_v15, %v535_v7  ;;  %v548_v24 = vadd.s32 %v547_v6, %v532_v63  ;;  %v549_v29 = vsub.s32 %v545_v17, %v547_v6  ;;  %v552_v16 = vadd.s32 %v551_v22, %v536_v2 }
  0x9c   :  { %v555_v25 = vsel %vm554_vm4, 1, %v1085_v49  ;;  %v559_v31 = vsel %vm558_vm5, 1, %v1085_v49  ;;  %vm562_vm6 = vcmp.ge.f32.partialorder %v1489_v11, %v1491_v38  ;;  %vm566_vm7 = vcmp.ge.f32.partialorder %v1489_v11, %v1483_v28 }
  0x9d   :  { %v541_v32 = vsub.s32 %v537_v23, %v539_v1  ;;  %v553_v35 = vsub.s32 %v549_v29, %v551_v22  ;;  %v556_v36 = vadd.s32 %v555_v25, %v540_v34  ;;  %v560_v37 = vadd.s32 %v559_v31, %v548_v24 }
  0x9e   :  { %v561_v39 = vsub.s32 %v544_v3, %v559_v31  ;;  %v563_v41 = vsel %vm562_vm6, 1, %v1085_v49  ;;  %v567_v43 = vsel %vm566_vm7, 1, %v1085_v49  ;;  %vm570_vm8 = vcmp.ge.f32.partialorder %v1498_v42, %v1491_v38 }
  0x9f   :  { %v1646_v46 = vsub.s32 %v553_v35, %v555_v25  ;;  %v564_v61 = vadd.s32 %v563_v41, %v552_v16  ;;  %v568_v51 = vadd.s32 %v567_v43, %v556_v36  ;;  %v571_v47 = vsel %vm570_vm8, 1, %v1085_v49 }
  0xa0   :  { %v565_v54 = vsub.s32 %v561_v39, %v563_v41  ;;  %v573_v40 = vsub.s32 %v560_v37, %v571_v47  ;;  %vm574_vm9 = vcmp.ge.f32.partialorder %v1498_v42, %v1483_v28  ;;  %vm578_vm10 = vcmp.ge.f32.partialorder %v1491_v38, %v1483_v28 }
  0xa1   :  { %v1653_v12 = vadd.s32 %v571_v47, %v564_v61  ;;  %v575_v62 = vsel %vm574_vm9, 1, %v1085_v49  ;;  %v1657_v56 = vsel %vm578_vm10, 1, %v1085_v49  ;;  %vm1662_vm11 = vcmp.lt.s32.totalorder %v437_v20, 4294967290 }
  0xa2   :  { %v569_v58 = vsub.s32 %v565_v54, %v567_v43  ;;  %v576_v59 = vadd.s32 %v575_v62, %v568_v51  ;;  %v1666_v48 = vsub.s32 %v573_v40, %v575_v62  ;;  %v585_v21 = vsel %vm1662_vm11, %v1443_v53, 0.0  ;;  %v1047_v62 = vld [vmem:[%s2068_s0] sm:$0xff] }
  0xa3   :  { %v581_v19 = vsub.s32 %v1653_v12, %v1657_v56  ;;  %v586_v27 = vsel %vm1662_vm11, 1, %v1085_v49  ;;  %vm587_vm12 = vcmp.lt.s32.totalorder %v1579_v30, 4294967291  ;;  %vm595_vm13 = vcmp.lt.s32.totalorder %v497_v55, 4294967292 }
  0xa4   :  { %v1681_v44 = vadd.s32 %v1657_v56, %v576_v59  ;;  %v588_v13 = vsel %vm587_vm12, %v586_v27, 3  ;;  %v593_v20 = vsel %vm587_vm12, 1, %v1085_v49  ;;  %v603_v53 = vsel %vm595_vm13, 1, %v1085_v49 }
  0xa5   :  { %vm589_vm14 = vcmp.eq.s32.totalorder %v588_v13, 0  ;;  %vm591_vm15 = vcmp.eq.s32.totalorder %v588_v13, 1  ;;  %v594_v45 = vadd.s32 %v593_v20, %v586_v27  ;;  %vm605_vm0 = vcmp.lt.s32.totalorder %v1624_v10, 4294967293 }
  0xa6   :  { %v590_v52 = vsel %vm589_vm14, %v1455_v4, %v585_v21  ;;  %v592_v30 = vsel %vm591_vm15, %v1455_v4, 0.0  ;;  %v613_v33 = vsel %vm605_vm0, 1, %v1085_v49  ;;  %vm1691_vm1 = vcmp.lt.s32.totalorder %v541_v32, 4294967294 }
  0xa7   :  { %v596_v55 = vsel %vm595_vm13, %v594_v45, 3  ;;  %v604_v60 = vadd.s32 %v603_v53, %v594_v45  ;;  %v623_v63 = vsel %vm1691_vm1, 1, %v1085_v49  ;;  %vm625_vm2 = vcmp.lt.s32.totalorder %v1646_v46, 4294967295 }
  0xa8   :  { %vm597_vm3 = vcmp.eq.s32.totalorder %v596_v55, 0  ;;  %vm599_vm4 = vcmp.eq.s32.totalorder %v596_v55, 1  ;;  %vm601_vm5 = vcmp.eq.s32.totalorder %v596_v55, 2  ;;  %v633_v4 = vsel %vm625_vm2, 1, %v1085_v49 }
  0xa9   :  { %v598_v5 = vsel %vm597_vm3, %v1465_v8, %v590_v52  ;;  %v600_v0 = vsel %vm599_vm4, %v1465_v8, %v592_v30  ;;  %v602_v7 = vsel %vm601_vm5, %v1465_v8, 0.0  ;;  %v606_v1 = vsel %vm605_vm0, %v604_v60, 3  ;;  %v1049_v52 = vld [vmem:[%s2068_s0 + $0x10] sm:$0xff] }
  0xaa   :  { %vm607_vm6 = vcmp.eq.s32.totalorder %v606_v1, 0  ;;  %vm609_vm7 = vcmp.eq.s32.totalorder %v606_v1, 1  ;;  %vm611_vm8 = vcmp.eq.s32.totalorder %v606_v1, 2  ;;  %v614_v9 = vadd.s32 %v613_v33, %v604_v60  ;;  %v1050_v60 = vld [vmem:[%s2068_s0 + $0x18] sm:$0xff] }
  0xab   :  { %v608_v2 = vsel %vm607_vm6, %v1469_v26, %v598_v5  ;;  %v610_v34 = vsel %vm609_vm7, %v1469_v26, %v600_v0  ;;  %v612_v3 = vsel %vm611_vm8, %v1469_v26, %v602_v7  ;;  %vm1712_vm9 = vcmp.lt.s32.totalorder %v569_v58, 0  ;;  %v1051_v5 = vld [vmem:[%s2068_s0 + $0x20] sm:$0xff] }
  0xac   :  { %v616_v8 = vsel %vm1691_vm1, %v614_v9, 3  ;;  %v624_v10 = vadd.s32 %v623_v63, %v614_v9  ;;  %v643_v17 = vsel %vm1712_vm9, 1, %v1085_v49  ;;  %vm645_vm10 = vcmp.lt.s32.totalorder %v1666_v48, 1 }
  0xad   :  { %vm617_vm11 = vcmp.eq.s32.totalorder %v616_v8, 0  ;;  %vm619_vm12 = vcmp.eq.s32.totalorder %v616_v8, 1  ;;  %vm621_vm13 = vcmp.eq.s32.totalorder %v616_v8, 2  ;;  %v653_v26 = vsel %vm645_vm10, 1, %v1085_v49 }
  0xae   :  { %v618_v6 = vsel %vm617_vm11, %v1473_v14, %v608_v2  ;;  %v620_v22 = vsel %vm619_vm12, %v1473_v14, %v610_v34  ;;  %v622_v23 = vsel %vm621_vm13, %v1473_v14, %v612_v3  ;;  %v626_v24 = vsel %vm625_vm2, %v624_v10, 3  ;;  %v1052_v34 = vld [vmem:[%s2068_s0 + $0x28] sm:$0xff] }
  0xaf   :  { %vm627_vm14 = vcmp.eq.s32.totalorder %v626_v24, 0  ;;  %vm629_vm15 = vcmp.eq.s32.totalorder %v626_v24, 1  ;;  %vm631_vm0 = vcmp.eq.s32.totalorder %v626_v24, 2  ;;  %v634_v29 = vadd.s32 %v633_v4, %v624_v10 }
  0xb0   :  { %v628_v16 = vsel %vm627_vm14, %v1478_v18, %v618_v6  ;;  %v630_v25 = vsel %vm629_vm15, %v1478_v18, %v620_v22  ;;  %v632_v31 = vsel %vm631_vm0, %v1478_v18, %v622_v23  ;;  %vm1737_vm1 = vcmp.lt.s32.totalorder %v581_v19, 2 }
  0xb1   :  { %v636_v14 = vsel %vm1712_vm9, %v634_v29, 3  ;;  %v644_v35 = vadd.s32 %v643_v17, %v634_v29  ;;  %v661_v36 = vsel %vm1737_vm1, 1, %v1085_v49  ;;  %vm663_vm2 = vcmp.lt.s32.totalorder %v1681_v44, 3  ;;  %v1053_v17 = vld [vmem:[%s2068_s0 + $0x30] sm:$0xff] }
  0xb2   :  { %vm637_vm3 = vcmp.eq.s32.totalorder %v636_v14, 0  ;;  %vm639_vm4 = vcmp.eq.s32.totalorder %v636_v14, 1  ;;  %vm641_vm5 = vcmp.eq.s32.totalorder %v636_v14, 2  ;;  %v667_v18 = vstv %s1707_s2 }
  0xb3   :  { %v638_v37 = vsel %vm637_vm3, %v1489_v11, %v628_v16  ;;  %v640_v39 = vsel %vm639_vm4, %v1489_v11, %v630_v25  ;;  %v642_v41 = vsel %vm641_vm5, %v1489_v11, %v632_v31  ;;  %v646_v43 = vsel %vm645_vm10, %v644_v35, 3  ;;  %v1054_v25 = vld [vmem:[%s2068_s0 + $0x38] sm:$0xff] }
  0xb4   :  { %vm647_vm6 = vcmp.eq.s32.totalorder %v646_v43, 0  ;;  %vm649_vm7 = vcmp.eq.s32.totalorder %v646_v43, 1  ;;  %vm651_vm8 = vcmp.eq.s32.totalorder %v646_v43, 2  ;;  %v654_v46 = vadd.s32 %v653_v26, %v644_v35 }
  0xb5   :  { %v648_v61 = vsel %vm647_vm6, %v1498_v42, %v638_v37  ;;  %v650_v51 = vsel %vm649_vm7, %v1498_v42, %v640_v39  ;;  %v652_v47 = vsel %vm651_vm8, %v1498_v42, %v642_v41  ;;  %v674_v54 = vstv %s1722_s21  ;;  %v1048_v42 = vld [vmem:[%s2068_s0 + $0x8] sm:$0xff] }
  0xb6   :  { %v656_v40 = vsel %vm1737_vm1, %v654_v46, 3  ;;  %v662_v12 = vadd.s32 %v661_v36, %v654_v46  ;;  %v668_v11 = vadd.f32 %v667_v18, %v648_v61  ;;  %v1764_v56 = vmul.f32 %v1047_v62, %v674_v54 }
  0xb7   :  { %vm657_vm9 = vcmp.eq.s32.totalorder %v656_v40, 1  ;;  %vm659_vm10 = vcmp.eq.s32.totalorder %v656_v40, 2  ;;  %v676_v57 = vstv %s1732_s22  ;;  %v678_v58 = vmul.f32 %v1048_v42, %v674_v54 }
  0xb8   :  { %v658_v59 = vsel %vm657_vm9, %v1491_v38, %v650_v51  ;;  %v660_v48 = vsel %vm659_vm10, %v1491_v38, %v652_v47  ;;  %v664_v21 = vsel %vm663_vm2, %v662_v12, 3  ;;  %1035 = vtanh.f32 %v668_v11 }
  0xb9   :  { %vm665_vm11 = vcmp.eq.s32.totalorder %v664_v21, 2  ;;  %v670_v19 = vadd.f32 %v667_v18, %v658_v59  ;;  %v677_v27 = vmul.f32 %v1047_v62, %v676_v57  ;;  %v680_v13 = vstv %s1741_s23 }
  0xba   :  { %v666_v20 = vsel %vm665_vm11, %v1483_v28, %v660_v48  ;;  %v681_v53 = vmul.f32 %v1047_v62, %v680_v13  ;;  %v682_v45 = vmul.f32 %v1048_v42, %v676_v57  ;;  %v684_v30 = vmul.f32 %v1049_v52, %v674_v54 }
  0xbb   :  { %1037 = vtanh.f32 %v670_v19  ;;  %v672_v33 = vadd.f32 %v667_v18, %v666_v20  ;;  %v1779_v38 = vadd.f32 %v678_v58, %v677_v27  ;;  %v686_v44 = vmul.f32 %v1048_v42, %v680_v13 }
  0xbc   :  { %v683_v50 = vadd.f32 %v682_v45, %v681_v53  ;;  %v687_v55 = vmul.f32 %v1049_v52, %v676_v57  ;;  %v689_v63 = vmul.f32 %v1050_v60, %v674_v54  ;;  %v691_v28 = vmul.f32 %v1049_v52, %v680_v13 }
  0xbd   :  { %1039 = vtanh.f32 %v672_v33  ;;  %v692_v4 = vmul.f32 %v1050_v60, %v676_v57  ;;  %v694_v0 = vmul.f32 %v1051_v5, %v674_v54  ;;  %v696_v7 = vmul.f32 %v1050_v60, %v680_v13 }
  0xbe   :  { %v1787_v1 = vadd.f32 %v684_v30, %v683_v50  ;;  %v688_v9 = vadd.f32 %v687_v55, %v686_v44  ;;  %v697_v2 = vmul.f32 %v1051_v5, %v676_v57  ;;  %v699_v3 = vmul.f32 %v1052_v34, %v674_v54 }
  0xbf   :  { %v693_v15 = vadd.f32 %v692_v4, %v691_v28  ;;  %v701_v8 = vmul.f32 %v1051_v5, %v680_v13  ;;  %v702_v10 = vmul.f32 %v1052_v34, %v676_v57  ;;  %v704_v26 = vmul.f32 %v1053_v17, %v674_v54 }
  0xc0   :  { %v1795_v6 = vadd.f32 %v689_v63, %v688_v9  ;;  %v698_v22 = vadd.f32 %v697_v2, %v696_v7  ;;  %v706_v23 = vmul.f32 %v1052_v34, %v680_v13  ;;  %v707_v24 = vmul.f32 %v1053_v17, %v676_v57 }
  0xc1   :  { %v1797_v29 = vadd.f32 %v694_v0, %v693_v15  ;;  %v703_v16 = vadd.f32 %v702_v10, %v701_v8  ;;  %v709_v31 = vmul.f32 %v1054_v25, %v674_v54  ;;  %v711_v32 = vmul.f32 %v1053_v17, %v680_v13 }
  0xc2   :  { %v1036_v14 = vpop.eup %1035  ;;  %v1802_v35 = vadd.f32 %v699_v3, %v698_v22  ;;  %v708_v36 = vadd.f32 %v707_v24, %v706_v23  ;;  %v712_v18 = vmul.f32 %v1054_v25, %v676_v57  ;;  %v1804_v37 = vmul.f32 %v1054_v25, %v680_v13 }
  0xc3   :  { %v1806_v39 = vadd.f32 %v704_v26, %v703_v16  ;;  %vm715_vm12 = vcmp.ge.f32.partialorder %v1764_v56, %v1779_v38  ;;  %vm718_vm13 = vcmp.ge.f32.partialorder %v1764_v56, %v1787_v1  ;;  %vm721_vm14 = vcmp.ge.f32.partialorder %v1764_v56, %v1795_v6  ;;  %1020 = vst [vmem:[%s2071_s3 + $0x18] sm:$0xff] %v1036_v14 }
  0xc4   :  { %v1817_v41 = vadd.f32 %v709_v31, %v708_v36  ;;  %v1819_v43 = vadd.f32 %v712_v18, %v711_v32  ;;  %v716_v46 = vsel %vm715_vm12, 1, %v1085_v49  ;;  %v719_v61 = vsel %vm718_vm13, 1, %v1085_v49 }
  0xc5   :  { %v1038_v51 = vpop.eup %1037  ;;  %v717_v47 = vsub.s32 0, %v716_v46  ;;  %v722_v54 = vsel %vm721_vm14, 1, %v1085_v49  ;;  %vm724_vm15 = vcmp.ge.f32.partialorder %v1764_v56, %v1797_v29  ;;  %vm727_vm0 = vcmp.ge.f32.partialorder %v1764_v56, %v1802_v35 }
  0xc6   :  { %v725_v40 = vsel %vm724_vm15, 1, %v1085_v49  ;;  %v728_v12 = vsel %vm727_vm0, 1, %v1085_v49  ;;  %vm730_vm1 = vcmp.ge.f32.partialorder %v1764_v56, %v1806_v39  ;;  %vm733_vm2 = vcmp.ge.f32.partialorder %v1764_v56, %v1817_v41  ;;  %1021 = vst [vmem:[%s2071_s3 + $0x20] sm:$0xff] %v1038_v51 }
  0xc7   :  { %v1040_v11 = vpop.eup %1039  ;;  %v720_v62 = vsub.s32 %v717_v47, %v719_v61  ;;  %v731_v57 = vsel %vm730_vm1, 1, %v1085_v49  ;;  %v734_v42 = vsel %vm733_vm2, 1, %v1085_v49  ;;  %vm736_vm3 = vcmp.ge.f32.partialorder %v1764_v56, %v1819_v43 }
  0xc8   :  { %v737_v58 = vsel %vm736_vm3, 1, %v1085_v49  ;;  %vm739_vm4 = vcmp.ge.f32.partialorder %v1764_v56, %v1804_v37  ;;  %vm742_vm5 = vcmp.ge.f32.partialorder %v1779_v38, %v1787_v1  ;;  %vm746_vm6 = vcmp.ge.f32.partialorder %v1779_v38, %v1795_v6  ;;  %1022 = vst [vmem:[%s2071_s3 + $0x28] sm:$0xff] %v1040_v11 }
  0xc9   :  { %v723_v59 = vsub.s32 %v720_v62, %v722_v54  ;;  %v1852_v48 = vsel %vm739_vm4, 1, %v1085_v49  ;;  %v743_v21 = vsel %vm742_vm5, 1, %v1085_v49  ;;  %v747_v19 = vsel %vm746_vm6, 1, %v1085_v49 }
  0xca   :  { %v744_v27 = vadd.s32 %v743_v21, %v719_v61  ;;  %v745_v13 = vsub.s32 %v716_v46, %v743_v21  ;;  %v748_v20 = vadd.s32 %v747_v19, %v722_v54  ;;  %vm750_vm7 = vcmp.ge.f32.partialorder %v1779_v38, %v1797_v29 }
  0xcb   :  { %v726_v53 = vsub.s32 %v723_v59, %v725_v40  ;;  %v751_v45 = vsel %vm750_vm7, 1, %v1085_v49  ;;  %vm754_vm8 = vcmp.ge.f32.partialorder %v1779_v38, %v1802_v35  ;;  %vm758_vm9 = vcmp.ge.f32.partialorder %v1779_v38, %v1806_v39 }
  0xcc   :  { %v749_v52 = vsub.s32 %v745_v13, %v747_v19  ;;  %v752_v30 = vadd.s32 %v751_v45, %v725_v40  ;;  %v755_v33 = vsel %vm754_vm8, 1, %v1085_v49  ;;  %v759_v44 = vsel %vm758_vm9, 1, %v1085_v49 }
  0xcd   :  { %v729_v50 = vsub.s32 %v726_v53, %v728_v12  ;;  %v756_v55 = vadd.s32 %v755_v33, %v728_v12  ;;  %v760_v60 = vadd.s32 %v759_v44, %v731_v57  ;;  %vm762_vm10 = vcmp.ge.f32.partialorder %v1779_v38, %v1817_v41 }
  0xce   :  { %v753_v63 = vsub.s32 %v749_v52, %v751_v45  ;;  %v763_v28 = vsel %vm762_vm10, 1, %v1085_v49  ;;  %vm766_vm11 = vcmp.ge.f32.partialorder %v1779_v38, %v1819_v43  ;;  %vm770_vm12 = vcmp.ge.f32.partialorder %v1779_v38, %v1804_v37 }
  0xcf   :  { %v732_v4 = vsub.s32 %v729_v50, %v731_v57  ;;  %v764_v5 = vadd.s32 %v763_v28, %v734_v42  ;;  %v767_v0 = vsel %vm766_vm11, 1, %v1085_v49  ;;  %v771_v7 = vsel %vm770_vm12, 1, %v1085_v49 }
  0xd0   :  { %v757_v9 = vsub.s32 %v753_v63, %v755_v33  ;;  %v768_v2 = vadd.s32 %v767_v0, %v737_v58  ;;  %v772_v34 = vadd.s32 %v771_v7, %v1852_v48  ;;  %vm774_vm13 = vcmp.ge.f32.partialorder %v1787_v1, %v1795_v6 }
  0xd1   :  { %v735_v3 = vsub.s32 %v732_v4, %v734_v42  ;;  %v775_v15 = vsel %vm774_vm13, 1, %v1085_v49  ;;  %vm778_vm14 = vcmp.ge.f32.partialorder %v1787_v1, %v1797_v29  ;;  %vm782_vm15 = vcmp.ge.f32.partialorder %v1787_v1, %v1802_v35 }
  0xd2   :  { %v761_v8 = vsub.s32 %v757_v9, %v759_v44  ;;  %v776_v10 = vadd.s32 %v775_v15, %v748_v20  ;;  %v777_v17 = vsub.s32 %v744_v27, %v775_v15  ;;  %v779_v26 = vsel %vm778_vm14, 1, %v1085_v49 }
  0xd3   :  { %v1883_v22 = vsub.s32 %v735_v3, %v737_v58  ;;  %v780_v23 = vadd.s32 %v779_v26, %v752_v30  ;;  %v783_v24 = vsel %vm782_vm15, 1, %v1085_v49  ;;  %vm786_vm0 = vcmp.ge.f32.partialorder %v1787_v1, %v1806_v39 }
  0xd4   :  { %v765_v16 = vsub.s32 %v761_v8, %v763_v28  ;;  %v781_v25 = vsub.s32 %v777_v17, %v779_v26  ;;  %v784_v31 = vadd.s32 %v783_v24, %v756_v55  ;;  %v787_v32 = vsel %vm786_vm0, 1, %v1085_v49 }
  0xd5   :  { %v741_v14 = vsub.s32 %v1883_v22, %v1852_v48  ;;  %v788_v36 = vadd.s32 %v787_v32, %v760_v60  ;;  %vm790_vm1 = vcmp.ge.f32.partialorder %v1787_v1, %v1817_v41  ;;  %vm794_vm2 = vcmp.ge.f32.partialorder %v1787_v1, %v1819_v43 }
  0xd6   :  { %v769_v18 = vsub.s32 %v765_v16, %v767_v0  ;;  %v785_v46 = vsub.s32 %v781_v25, %v783_v24  ;;  %v791_v61 = vsel %vm790_vm1, 1, %v1085_v49  ;;  %v795_v51 = vsel %vm794_vm2, 1, %v1085_v49 }
  0xd7   :  { %v792_v47 = vadd.s32 %v791_v61, %v764_v5  ;;  %v796_v54 = vadd.s32 %v795_v51, %v768_v2  ;;  %vm798_vm3 = vcmp.ge.f32.partialorder %v1787_v1, %v1804_v37  ;;  %vm802_vm4 = vcmp.ge.f32.partialorder %v1795_v6, %v1797_v29 }
  0xd8   :  { %v1901_v40 = vsub.s32 %v769_v18, %v771_v7  ;;  %v789_v12 = vsub.s32 %v785_v46, %v787_v32  ;;  %v1904_v11 = vsel %vm798_vm3, 1, %v1085_v49  ;;  %v803_v62 = vsel %vm802_vm4, 1, %v1085_v49 }
  0xd9   :  { %v800_v57 = vadd.s32 %v1904_v11, %v772_v34  ;;  %v804_v42 = vadd.s32 %v803_v62, %v780_v23  ;;  %v805_v58 = vsub.s32 %v776_v10, %v803_v62  ;;  %vm806_vm5 = vcmp.ge.f32.partialorder %v1795_v6, %v1802_v35 }
  0xda   :  { %v793_v59 = vsub.s32 %v789_v12, %v791_v61  ;;  %v807_v21 = vsel %vm806_vm5, 1, %v1085_v49  ;;  %vm810_vm6 = vcmp.ge.f32.partialorder %v1795_v6, %v1806_v39  ;;  %vm814_vm7 = vcmp.ge.f32.partialorder %v1795_v6, %v1817_v41 }
  0xdb   :  { %v808_v19 = vadd.s32 %v807_v21, %v784_v31  ;;  %v809_v27 = vsub.s32 %v805_v58, %v807_v21  ;;  %v811_v13 = vsel %vm810_vm6, 1, %v1085_v49  ;;  %v815_v20 = vsel %vm814_vm7, 1, %v1085_v49 }
  0xdc   :  { %v1917_v53 = vsub.s32 %v793_v59, %v795_v51  ;;  %v812_v45 = vadd.s32 %v811_v13, %v788_v36  ;;  %v816_v52 = vadd.s32 %v815_v20, %v792_v47  ;;  %vm818_vm8 = vcmp.ge.f32.partialorder %v1795_v6, %v1819_v43 }
  0xdd   :  { %v813_v30 = vsub.s32 %v809_v27, %v811_v13  ;;  %v819_v33 = vsel %vm818_vm8, 1, %v1085_v49  ;;  %vm822_vm9 = vcmp.ge.f32.partialorder %v1795_v6, %v1804_v37  ;;  %vm826_vm10 = vcmp.ge.f32.partialorder %v1797_v29, %v1802_v35 }
  0xde   :  { %v801_v44 = vsub.s32 %v1917_v53, %v1904_v11  ;;  %v820_v50 = vadd.s32 %v819_v33, %v796_v54  ;;  %v823_v55 = vsel %vm822_vm9, 1, %v1085_v49  ;;  %v827_v60 = vsel %vm826_vm10, 1, %v1085_v49 }
  0xdf   :  { %v817_v63 = vsub.s32 %v813_v30, %v815_v20  ;;  %v824_v28 = vadd.s32 %v823_v55, %v800_v57  ;;  %v828_v4 = vadd.s32 %v827_v60, %v808_v19  ;;  %v829_v5 = vsub.s32 %v804_v42, %v827_v60 }
  0xe0   :  { %vm830_vm11 = vcmp.ge.f32.partialorder %v1797_v29, %v1806_v39  ;;  %vm834_vm12 = vcmp.ge.f32.partialorder %v1797_v29, %v1817_v41  ;;  %vm838_vm13 = vcmp.ge.f32.partialorder %v1797_v29, %v1819_v43  ;;  %vm842_vm14 = vcmp.ge.f32.partialorder %v1797_v29, %v1804_v37 }
  0xe1   :  { %v821_v0 = vsub.s32 %v817_v63, %v819_v33  ;;  %v831_v7 = vsel %vm830_vm11, 1, %v1085_v49  ;;  %v835_v9 = vsel %vm834_vm12, 1, %v1085_v49  ;;  %v839_v2 = vsel %vm838_vm13, 1, %v1085_v49 }
  0xe2   :  { %v832_v34 = vadd.s32 %v831_v7, %v812_v45  ;;  %v833_v3 = vsub.s32 %v829_v5, %v831_v7  ;;  %v836_v15 = vadd.s32 %v835_v9, %v816_v52  ;;  %v840_v8 = vadd.s32 %v839_v2, %v820_v50 }
  0xe3   :  { %v1941_v10 = vsub.s32 %v821_v0, %v823_v55  ;;  %v843_v17 = vsel %vm842_vm14, 1, %v1085_v49  ;;  %vm846_vm15 = vcmp.ge.f32.partialorder %v1802_v35, %v1806_v39  ;;  %vm850_vm0 = vcmp.ge.f32.partialorder %v1802_v35, %v1817_v41 }
  0xe4   :  { %v837_v26 = vsub.s32 %v833_v3, %v835_v9  ;;  %v844_v23 = vadd.s32 %v843_v17, %v824_v28  ;;  %v847_v24 = vsel %vm846_vm15, 1, %v1085_v49  ;;  %v851_v16 = vsel %vm850_vm0, 1, %v1085_v49 }
  0xe5   :  { %v848_v25 = vadd.s32 %v847_v24, %v832_v34  ;;  %v849_v31 = vsub.s32 %v828_v4, %v847_v24  ;;  %v852_v32 = vadd.s32 %v851_v16, %v836_v15  ;;  %vm854_vm1 = vcmp.ge.f32.partialorder %v1802_v35, %v1819_v43 }
  0xe6   :  { %v841_v36 = vsub.s32 %v837_v26, %v839_v2  ;;  %v855_v18 = vsel %vm854_vm1, 1, %v1085_v49  ;;  %vm858_vm2 = vcmp.ge.f32.partialorder %v1802_v35, %v1804_v37  ;;  %vm862_vm3 = vcmp.ge.f32.partialorder %v1806_v39, %v1817_v41 }
  0xe7   :  { %v853_v46 = vsub.s32 %v849_v31, %v851_v16  ;;  %v856_v61 = vadd.s32 %v855_v18, %v840_v8  ;;  %v859_v51 = vsel %vm858_vm2, 1, %v1085_v49  ;;  %v863_v47 = vsel %vm862_vm3, 1, %v1085_v49 }
  0xe8   :  { %v845_v54 = vsub.s32 %v841_v36, %v843_v17  ;;  %v860_v12 = vadd.s32 %v859_v51, %v844_v23  ;;  %v864_v62 = vadd.s32 %v863_v47, %v852_v32  ;;  %v865_v57 = vsub.s32 %v848_v25, %v863_v47 }
  0xe9   :  { %v857_v42 = vsub.s32 %v853_v46, %v855_v18  ;;  %vm866_vm4 = vcmp.ge.f32.partialorder %v1806_v39, %v1819_v43  ;;  %vm870_vm5 = vcmp.ge.f32.partialorder %v1806_v39, %v1804_v37  ;;  %vm874_vm6 = vcmp.ge.f32.partialorder %v1817_v41, %v1819_v43 }
  0xea   :  { %v867_v58 = vsel %vm866_vm4, 1, %v1085_v49  ;;  %v871_v59 = vsel %vm870_vm5, 1, %v1085_v49  ;;  %v875_v21 = vsel %vm874_vm6, 1, %v1085_v49  ;;  %vm878_vm7 = vcmp.ge.f32.partialorder %v1817_v41, %v1804_v37 }
  0xeb   :  { %v861_v19 = vsub.s32 %v857_v42, %v859_v51  ;;  %v868_v27 = vadd.s32 %v867_v58, %v856_v61  ;;  %v869_v13 = vsub.s32 %v865_v57, %v867_v58  ;;  %v872_v20 = vadd.s32 %v871_v59, %v860_v12 }
  0xec   :  { %v877_v45 = vsub.s32 %v864_v62, %v875_v21  ;;  %v879_v52 = vsel %vm878_vm7, 1, %v1085_v49  ;;  %vm882_vm8 = vcmp.ge.f32.partialorder %v1819_v43, %v1804_v37  ;;  %vm1976_vm9 = vcmp.lt.s32.totalorder %v741_v14, 4294967290 }
  0xed   :  { %v873_v33 = vsub.s32 %v869_v13, %v871_v59  ;;  %v1980_v50 = vadd.s32 %v875_v21, %v868_v27  ;;  %v880_v55 = vadd.s32 %v879_v52, %v872_v20  ;;  %v883_v60 = vsel %vm882_vm8, 1, %v1085_v49 }
  0xee   :  { %v1983_v63 = vsub.s32 %v877_v45, %v879_v52  ;;  %v889_v28 = vsel %vm1976_vm9, %v1764_v56, 0.0  ;;  %v890_v48 = vsel %vm1976_vm9, 1, %v1085_v49  ;;  %vm891_vm10 = vcmp.lt.s32.totalorder %v1901_v40, 4294967291 }
  0xef   :  { %v1992_v22 = vadd.s32 %v883_v60, %v880_v55  ;;  %v885_v14 = vsub.s32 %v1980_v50, %v883_v60  ;;  %v892_v4 = vsel %vm891_vm10, %v890_v48, 3  ;;  %v897_v5 = vsel %vm891_vm10, 1, %v1085_v49 }
  0xf0   :  { %vm893_vm11 = vcmp.eq.s32.totalorder %v892_v4, 0  ;;  %vm895_vm12 = vcmp.eq.s32.totalorder %v892_v4, 1  ;;  %v898_v0 = vadd.s32 %v897_v5, %v890_v48  ;;  %vm899_vm13 = vcmp.lt.s32.totalorder %v801_v44, 4294967292 }
  0xf1   :  { %v894_v56 = vsel %vm893_vm11, %v1779_v38, %v889_v28  ;;  %v896_v7 = vsel %vm895_vm12, %v1779_v38, 0.0  ;;  %v907_v40 = vsel %vm899_vm13, 1, %v1085_v49  ;;  %vm909_vm14 = vcmp.lt.s32.totalorder %v1941_v10, 4294967293 }
  0xf2   :  { %v900_v9 = vsel %vm899_vm13, %v898_v0, 3  ;;  %v908_v2 = vadd.s32 %v907_v40, %v898_v0  ;;  %v917_v34 = vsel %vm909_vm14, 1, %v1085_v49  ;;  %vm2004_vm15 = vcmp.lt.s32.totalorder %v845_v54, 4294967294 }
  0xf3   :  { %vm901_vm0 = vcmp.eq.s32.totalorder %v900_v9, 0  ;;  %vm903_vm1 = vcmp.eq.s32.totalorder %v900_v9, 1  ;;  %vm905_vm2 = vcmp.eq.s32.totalorder %v900_v9, 2  ;;  %v927_v11 = vsel %vm2004_vm15, 1, %v1085_v49 }
  0xf4   :  { %v902_v38 = vsel %vm901_vm0, %v1787_v1, %v894_v56  ;;  %v904_v53 = vsel %vm903_vm1, %v1787_v1, %v896_v7  ;;  %v906_v44 = vsel %vm905_vm2, %v1787_v1, 0.0  ;;  %v910_v15 = vsel %vm909_vm14, %v908_v2, 3 }
  0xf5   :  { %vm911_vm3 = vcmp.eq.s32.totalorder %v910_v15, 0  ;;  %vm913_vm4 = vcmp.eq.s32.totalorder %v910_v15, 1  ;;  %vm915_vm5 = vcmp.eq.s32.totalorder %v910_v15, 2  ;;  %v918_v8 = vadd.s32 %v917_v34, %v908_v2 }
  0xf6   :  { %v912_v10 = vsel %vm911_vm3, %v1795_v6, %v902_v38  ;;  %v914_v17 = vsel %vm913_vm4, %v1795_v6, %v904_v53  ;;  %v916_v26 = vsel %vm915_vm5, %v1795_v6, %v906_v44  ;;  %vm929_vm6 = vcmp.lt.s32.totalorder %v861_v19, 4294967295 }
  0xf7   :  { %v920_v23 = vsel %vm2004_vm15, %v918_v8, 3  ;;  %v928_v24 = vadd.s32 %v927_v11, %v918_v8  ;;  %v937_v16 = vsel %vm929_vm6, 1, %v1085_v49  ;;  %vm2020_vm7 = vcmp.lt.s32.totalorder %v873_v33, 0 }
  0xf8   :  { %vm921_vm8 = vcmp.eq.s32.totalorder %v920_v23, 0  ;;  %vm923_vm9 = vcmp.eq.s32.totalorder %v920_v23, 1  ;;  %vm925_vm10 = vcmp.eq.s32.totalorder %v920_v23, 2  ;;  %v947_v25 = vsel %vm2020_vm7, 1, %v1085_v49 }
  0xf9   :  { %v922_v6 = vsel %vm921_vm8, %v1797_v29, %v912_v10  ;;  %v924_v31 = vsel %vm923_vm9, %v1797_v29, %v914_v17  ;;  %v926_v32 = vsel %vm925_vm10, %v1797_v29, %v916_v26  ;;  %v930_v36 = vsel %vm929_vm6, %v928_v24, 3 }
  0xfa   :  { %vm931_vm11 = vcmp.eq.s32.totalorder %v930_v36, 0  ;;  %vm933_vm12 = vcmp.eq.s32.totalorder %v930_v36, 1  ;;  %vm935_vm13 = vcmp.eq.s32.totalorder %v930_v36, 2  ;;  %v938_v18 = vadd.s32 %v937_v16, %v928_v24 }
  0xfb   :  { %v932_v46 = vsel %vm931_vm11, %v1802_v35, %v922_v6  ;;  %v934_v61 = vsel %vm933_vm12, %v1802_v35, %v924_v31  ;;  %v936_v51 = vsel %vm935_vm13, %v1802_v35, %v926_v32  ;;  %vm949_vm14 = vcmp.lt.s32.totalorder %v1983_v63, 1 }
  0xfc   :  { %v940_v47 = vsel %vm2020_vm7, %v938_v18, 3  ;;  %v948_v54 = vadd.s32 %v947_v25, %v938_v18  ;;  %v957_v12 = vsel %vm949_vm14, 1, %v1085_v49  ;;  %vm2039_vm15 = vcmp.lt.s32.totalorder %v885_v14, 2 }
  0xfd   :  { %vm941_vm0 = vcmp.eq.s32.totalorder %v940_v47, 0  ;;  %vm943_vm1 = vcmp.eq.s32.totalorder %v940_v47, 1  ;;  %vm945_vm2 = vcmp.eq.s32.totalorder %v940_v47, 2  ;;  %v965_v35 = vsel %vm2039_vm15, 1, %v1085_v49 }
  0xfe   :  { %v942_v62 = vsel %vm941_vm0, %v1806_v39, %v932_v46  ;;  %v944_v57 = vsel %vm943_vm1, %v1806_v39, %v934_v61  ;;  %v946_v42 = vsel %vm945_vm2, %v1806_v39, %v936_v51  ;;  %v950_v58 = vsel %vm949_vm14, %v948_v54, 3 }
  0xff   :  { %vm951_vm3 = vcmp.eq.s32.totalorder %v950_v58, 0  ;;  %vm953_vm4 = vcmp.eq.s32.totalorder %v950_v58, 1  ;;  %vm955_vm5 = vcmp.eq.s32.totalorder %v950_v58, 2  ;;  %v958_v59 = vadd.s32 %v957_v12, %v948_v54 }
 0x100   :  { %v952_v21 = vsel %vm951_vm3, %v1817_v41, %v942_v62  ;;  %v954_v19 = vsel %vm953_vm4, %v1817_v41, %v944_v57  ;;  %v956_v27 = vsel %vm955_vm5, %v1817_v41, %v946_v42  ;;  %vm967_vm6 = vcmp.lt.s32.totalorder %v1992_v22, 3 }
 0x101   :  { %v960_v49 = vsel %vm2039_vm15, %v958_v59, 3  ;;  %v966_v13 = vadd.s32 %v965_v35, %v958_v59  ;;  %v971_v20 = vstv %s2027_s18 }
 0x102   :  { %vm961_vm7 = vcmp.eq.s32.totalorder %v960_v49, 1  ;;  %vm963_vm8 = vcmp.eq.s32.totalorder %v960_v49, 2  ;;  %v972_v39 = vadd.f32 %v971_v20, %v952_v21 }
 0x103   :  { %v962_v45 = vsel %vm961_vm7, %v1819_v43, %v954_v19  ;;  %v964_v52 = vsel %vm963_vm8, %v1819_v43, %v956_v27  ;;  %v968_v30 = vsel %vm967_vm6, %v966_v13, 3 }
 0x104   :  { %vm969_vm9 = vcmp.eq.s32.totalorder %v968_v30, 2  ;;  %1041 = vtanh.f32 %v972_v39  ;;  %v974_v33 = vadd.f32 %v971_v20, %v962_v45 }
 0x105   :  { %v970_v41 = vsel %vm969_vm9, %v1804_v37, %v964_v52 }
 0x106   :  { %1043 = vtanh.f32 %v974_v33  ;;  %v976_v50 = vadd.f32 %v971_v20, %v970_v41 }
 0x108   :  { %1045 = vtanh.f32 %v976_v50 }
 0x10e   :  { %v1042_v55 = vpop.eup %1041 }
 0x10f   :  { %1023 = vst [vmem:[%s2071_s3 + $0x30] sm:$0xff] %v1042_v55 }
 0x110   :  { %v1044_v60 = vpop.eup %1043 }
 0x111   :  { %1024 = vst [vmem:[%s2071_s3 + $0x38] sm:$0xff] %v1044_v60 }
 0x112   :  { %v1046_v43 = vpop.eup %1045 }
 0x113   :  { %1025 = vst [vmem:[%s2071_s3 + $0x40] sm:$0xff] %v1046_v43 }
 0x114   :  { %999 = vsyncpa [#allocation3], 1 }
 0x115   :  { %1000 = vsyncpa [#allocation5], 1 }

</bundles_post_ra>
